<compile_context>
chip_gen: v7x
topology: tpu7x:2x2x1
jax: 0.10.0
libtpu: 0.0.40
codegen_flags: <defaults>
</compile_context>

<pallas_src>
import functools

import jax
import jax.numpy as jnp
from jax.experimental import pallas as pl
from jax.experimental.pallas import tpu as pltpu


def _cdiv(a, b):
    return -(-a // b)


def _round_up(n, m):
    return _cdiv(n, m) * m


def mlp_kernel(x_ref, w1_ref, b1_ref, w2_ref, b2_ref, o_ref, *,
               groups, sub_rows, act_width, dot_dtype):
    """One grid step: TB = groups*sub_rows batch rows -> packed (sub_rows, groups*act_width) out tile."""
    # Resident weights / biases (constant index_map -> fetched once, reused every step).
    w1 = w1_ref[...]          # (D, H)   dot_dtype
    b1 = b1_ref[...]          # (1, H)   f32
    w2 = w2_ref[...]          # (H, A_eff) dot_dtype
    b2 = b2_ref[...]          # (1, A_eff) f32

    for g in range(groups):
        # Contiguous sub-tile of the batch tile; cast to matmul dtype in-kernel
        # (VPU cast hidden under the x DMA, no wrapper-side extra HBM pass).
        x_g = x_ref[pl.ds(g * sub_rows, sub_rows), :].astype(dot_dtype)    # (TJ, D)
        h = jnp.dot(x_g, w1, preferred_element_type=jnp.float32)          # (TJ, H) f32
        h = jnp.maximum(h + b1, 0.0)                                       # bias + ReLU in f32
        out_g = jnp.dot(h.astype(dot_dtype), w2,
                        preferred_element_type=jnp.float32) + b2           # (TJ, A_eff) f32
        # Pack this sub-tile's result into its lane block: the stored output row is
        # 128-lane dense, so the HBM writeback is only the real bytes.
        o_ref[:, pl.ds(g * act_width, act_width)] = out_g.astype(o_ref.dtype)


def mlp_forward(x, w1, b1, w2, b2, *, block_b=4096, dot_dtype=jnp.bfloat16):
    """x: (B, D) f32; w1: (D, H); b1: (1, H); w2: (H, A); b2: (1, A).

    Returns (B, A) f32 == relu(x @ w1 + b1) @ w2 + b2.
    dot_dtype=jnp.float32 gives exact-parity math (escape hatch).
    """
    B, D = x.shape
    H = w1.shape[1]
    A = w2.shape[1]

    # ---- Output packing configuration (lane-dense output without byte inflation). ----
    if A < 128 and 128 % A == 0:
        G = 128 // A          # batch sub-tiles packed per output row
        A_eff = A             # no padding of the action dim
    else:
        # Fallback: no packing, pad the action dim to a multiple of 128.
        G = 1
        A_eff = _round_up(A, 128)
        if A_eff != A:
            w2 = jnp.pad(w2, ((0, 0), (0, A_eff - A)))
            b2 = jnp.pad(b2, ((0, 0), (0, A_eff - A)))

    # ---- Batch tiling: TB rows per grid step, TJ = TB // G packed rows per step. ----
    mult = 8 * G if G > 1 else 16          # keeps the packed out block (TJ, 128) 8-row aligned
    n_tiles = max(1, _cdiv(B, block_b))
    TB = max(mult, _round_up(_cdiv(B, n_tiles), mult))
    grid0 = _cdiv(B, TB)
    B_pad = grid0 * TB
    if B_pad != B:
        x = jnp.pad(x, ((0, B_pad - B), (0, 0)))
    TJ = TB // G

    # Weights are tiny: cast them once in the wrapper. x stays f32 (cast in-kernel).
    w1_c = w1.astype(dot_dtype)
    w2_c = w2.astype(dot_dtype)
    b1_c = b1.astype(jnp.float32)
    b2_c = b2.astype(jnp.float32)

    kernel = functools.partial(
        mlp_kernel, groups=G, sub_rows=TJ, act_width=A_eff, dot_dtype=dot_dtype)

    flops = 2 * B_pad * (D * H + H * A_eff)
    bytes_accessed = (
        B_pad * D * x.dtype.itemsize                 # x read
        + B_pad * A_eff * 4                          # packed output write (real bytes)
        + D * H * w1_c.dtype.itemsize + H * 4        # w1, b1
        + H * A_eff * w2_c.dtype.itemsize + A_eff * 4)  # w2, b2
    cost = pl.CostEstimate(flops=int(flops), transcendentals=0,
                           bytes_accessed=int(bytes_accessed))

    out_packed = pl.pallas_call(
        kernel,
        out_shape=jax.ShapeDtypeStruct((B_pad // G, G * A_eff), jnp.float32),
        grid=(grid0,),
        in_specs=[
            pl.BlockSpec((TB, D), lambda i: (i, 0)),          # x tile: streams over batch
            pl.BlockSpec((D, H), lambda i: (0, 0)),           # w1: resident
            pl.BlockSpec((1, H), lambda i: (0, 0)),           # b1: resident
            pl.BlockSpec((H, A_eff), lambda i: (0, 0)),       # w2: resident
            pl.BlockSpec((1, A_eff), lambda i: (0, 0)),       # b2: resident
        ],
        out_specs=pl.BlockSpec((TJ, G * A_eff), lambda i: (i, 0)),
        compiler_params=pltpu.CompilerParams(
            dimension_semantics=("parallel",),                # megacore sharding on v7x
        ),
        cost_estimate=cost,
    )(x, w1_c, b1_c, w2_c, b2_c)

    # Undo the packing: packed[(i*TJ + j), g*A_eff + a] == out[i*TB + g*TJ + j, a].
    # The transpose touches only B_pad * A_eff * 4 bytes (tiny vs. the x read).
    out = (out_packed
           .reshape(grid0, TJ, G, A_eff)
           .transpose(0, 2, 1, 3)
           .reshape(B_pad, A_eff))
    return out[:B, :A]


def init_params(key, obs_dim, num_actions, hidden=256):
    # Mimics nn.Linear default init: uniform(-1/sqrt(fan_in), 1/sqrt(fan_in))
    k1, k2, k3, k4 = jax.random.split(key, 4)
    lim1 = 1.0 / jnp.sqrt(obs_dim)
    lim2 = 1.0 / jnp.sqrt(hidden)
    w1 = jax.random.uniform(k1, (obs_dim, hidden), jnp.float32, -lim1, lim1)
    b1 = jax.random.uniform(k2, (1, hidden), jnp.float32, -lim1, lim1)
    w2 = jax.random.uniform(k3, (hidden, num_actions), jnp.float32, -lim2, lim2)
    b2 = jax.random.uniform(k4, (1, num_actions), jnp.float32, -lim2, lim2)
    return w1, b1, w2, b2


def _ref(x, w1, b1, w2, b2):
    return jnp.maximum(x @ w1 + b1, 0.0) @ w2 + b2


if __name__ == "__main__":
    obs_dim = 32
    num_actions = 4
    batch = 2

    key = jax.random.PRNGKey(0)
    kx, kp = jax.random.split(key)
    x = jax.random.normal(kx, (batch, obs_dim), jnp.float32)
    w1, b1, w2, b2 = init_params(kp, obs_dim, num_actions)

    # 1) Small batch, packed-output path (bf16 matmul operands, f32 accumulate).
    out = jax.block_until_ready(mlp_forward(x, w1, b1, w2, b2))
    ref = _ref(x, w1, b1, w2, b2)
    assert out.shape == (batch, num_actions)
    assert jnp.allclose(out, ref, atol=3e-2, rtol=3e-2), (
        f"max abs err {jnp.max(jnp.abs(out - ref))}")

    # 2) f32 escape hatch: exact parity with the reference.
    out32 = jax.block_until_ready(mlp_forward(x, w1, b1, w2, b2, dot_dtype=jnp.float32))
    assert jnp.allclose(out32, ref, atol=1e-5, rtol=1e-5)

    # 3) Multi-tile packed path (pipelined grid, odd batch, batch padding exercised).
    xb = jax.random.normal(kx, (2048 + 13, obs_dim), jnp.float32)
    outb = jax.block_until_ready(mlp_forward(xb, w1, b1, w2, b2, block_b=512))
    refb = _ref(xb, w1, b1, w2, b2)
    assert outb.shape == refb.shape
    assert jnp.allclose(outb, refb, atol=3e-2, rtol=3e-2)

    # 4) Fallback (unpacked) path: num_actions that does not divide 128.
    w1f, b1f, w2f, b2f = init_params(kp, obs_dim, 7)
    xf = jax.random.normal(kx, (33, obs_dim), jnp.float32)
    outf = jax.block_until_ready(mlp_forward(xf, w1f, b1f, w2f, b2f))
    reff = _ref(xf, w1f, b1f, w2f, b2f)
    assert outf.shape == reff.shape
    assert jnp.allclose(outf, reff, atol=3e-2, rtol=3e-2)

    print("KERNEL_OK")
</pallas_src>

<mosaic_0001>
module attributes {stable_mosaic.version = 11 : i64} {
  func.func @mlp_kernel(%arg0: i32, %arg1: memref<256x32xf32, #tpu.memory_space<vmem>>, %arg2: memref<32x256xbf16, #tpu.memory_space<vmem>>, %arg3: memref<1x256xf32, #tpu.memory_space<vmem>>, %arg4: memref<256x4xbf16, #tpu.memory_space<vmem>>, %arg5: memref<1x4xf32, #tpu.memory_space<vmem>>, %arg6: memref<8x128xf32, #tpu.memory_space<vmem>>) attributes {dimension_semantics = [#tpu.dimension_semantics<parallel>], iteration_bounds = array<i64: 1>, scalar_prefetch = 0 : i64, scratch_operands = 0 : i64, tpu.core_type = #tpu.core_type<tc>, window_params = [{transform_indices = @transform_0, window_bounds = array<i64: 256, 32>}, {pipeline_mode = #tpu.pipeline_mode<synchronous>, transform_indices = @transform_1, window_bounds = array<i64: 32, 256>}, {pipeline_mode = #tpu.pipeline_mode<synchronous>, transform_indices = @transform_2, window_bounds = array<i64: 1, 256>}, {pipeline_mode = #tpu.pipeline_mode<synchronous>, transform_indices = @transform_3, window_bounds = array<i64: 256, 4>}, {pipeline_mode = #tpu.pipeline_mode<synchronous>, transform_indices = @transform_4, window_bounds = array<i64: 1, 4>}, {transform_indices = @transform_5, window_bounds = array<i64: 8, 128>}]} {
    %c0 = arith.constant 0 : index
    %c0_0 = arith.constant 0 : index
    %0 = vector.load %arg2[%c0, %c0_0] : memref<32x256xbf16, #tpu.memory_space<vmem>>, vector<32x256xbf16>
    %c0_1 = arith.constant 0 : index
    %c0_2 = arith.constant 0 : index
    %1 = vector.load %arg3[%c0_1, %c0_2] : memref<1x256xf32, #tpu.memory_space<vmem>>, vector<1x256xf32>
    %c0_3 = arith.constant 0 : index
    %c0_4 = arith.constant 0 : index
    %2 = vector.load %arg4[%c0_3, %c0_4] : memref<256x4xbf16, #tpu.memory_space<vmem>>, vector<256x4xbf16>
    %c0_5 = arith.constant 0 : index
    %c0_6 = arith.constant 0 : index
    %3 = vector.load %arg5[%c0_5, %c0_6] : memref<1x4xf32, #tpu.memory_space<vmem>>, vector<1x4xf32>
    %c0_7 = arith.constant 0 : index
    %c0_8 = arith.constant 0 : index
    %4 = vector.load %arg1[%c0_7, %c0_8] : memref<256x32xf32, #tpu.memory_space<vmem>>, vector<8x32xf32>
    %5 = arith.truncf %4 : vector<8x32xf32> to vector<8x32xbf16>
    %cst = arith.constant dense<0.000000e+00> : vector<8x256xf32>
    %6 = tpu.matmul %5, %0, %cst {dimension_numbers = #tpu.dot_dimension_numbers<[1], [0], [0], [1], [0, 0, 1, 1], [], []>} : vector<8x32xbf16>, vector<32x256xbf16>, vector<8x256xf32> -> vector<8x256xf32>
    %7 = vector.broadcast %1 : vector<1x256xf32> to vector<8x256xf32>
    %8 = arith.addf %6, %7 : vector<8x256xf32>
    %cst_9 = arith.constant 0.000000e+00 : f32
    %9 = vector.broadcast %cst_9 : f32 to vector<8x256xf32>
    %10 = arith.maximumf %8, %9 : vector<8x256xf32>
    %11 = arith.truncf %10 : vector<8x256xf32> to vector<8x256xbf16>
    %cst_10 = arith.constant dense<0.000000e+00> : vector<8x4xf32>
    %12 = tpu.matmul %11, %2, %cst_10 {dimension_numbers = #tpu.dot_dimension_numbers<[1], [0], [0], [1], [0, 0, 1, 1], [], []>} : vector<8x256xbf16>, vector<256x4xbf16>, vector<8x4xf32> -> vector<8x4xf32>
    %13 = vector.broadcast %3 : vector<1x4xf32> to vector<8x4xf32>
    %14 = arith.addf %12, %13 : vector<8x4xf32>
    %c0_11 = arith.constant 0 : index
    %c0_12 = arith.constant 0 : index
    %15 = vector.load %arg6[%c0_11, %c0_12] : memref<8x128xf32, #tpu.memory_space<vmem>>, vector<8x4xf32>
    tpu.vector_store %arg6[%c0_11, %c0_12], %14 {strides = array<i32>} : memref<8x128xf32, #tpu.memory_space<vmem>>, vector<8x4xf32>,
    %c8 = arith.constant 8 : index
    %c0_13 = arith.constant 0 : index
    %16 = vector.load %arg1[%c8, %c0_13] : memref<256x32xf32, #tpu.memory_space<vmem>>, vector<8x32xf32>
    %17 = arith.truncf %16 : vector<8x32xf32> to vector<8x32xbf16>
    %cst_14 = arith.constant dense<0.000000e+00> : vector<8x256xf32>
    %18 = tpu.matmul %17, %0, %cst_14 {dimension_numbers = #tpu.dot_dimension_numbers<[1], [0], [0], [1], [0, 0, 1, 1], [], []>} : vector<8x32xbf16>, vector<32x256xbf16>, vector<8x256xf32> -> vector<8x256xf32>
    %19 = vector.broadcast %1 : vector<1x256xf32> to vector<8x256xf32>
    %20 = arith.addf %18, %19 : vector<8x256xf32>
    %cst_15 = arith.constant 0.000000e+00 : f32
    %21 = vector.broadcast %cst_15 : f32 to vector<8x256xf32>
    %22 = arith.maximumf %20, %21 : vector<8x256xf32>
    %23 = arith.truncf %22 : vector<8x256xf32> to vector<8x256xbf16>
    %cst_16 = arith.constant dense<0.000000e+00> : vector<8x4xf32>
    %24 = tpu.matmul %23, %2, %cst_16 {dimension_numbers = #tpu.dot_dimension_numbers<[1], [0], [0], [1], [0, 0, 1, 1], [], []>} : vector<8x256xbf16>, vector<256x4xbf16>, vector<8x4xf32> -> vector<8x4xf32>
    %25 = vector.broadcast %3 : vector<1x4xf32> to vector<8x4xf32>
    %26 = arith.addf %24, %25 : vector<8x4xf32>
    %c0_17 = arith.constant 0 : index
    %c4 = arith.constant 4 : index
    %27 = vector.load %arg6[%c0_17, %c4] : memref<8x128xf32, #tpu.memory_space<vmem>>, vector<8x4xf32>
    tpu.vector_store %arg6[%c0_17, %c4], %26 {strides = array<i32>} : memref<8x128xf32, #tpu.memory_space<vmem>>, vector<8x4xf32>,
    %c16 = arith.constant 16 : index
    %c0_18 = arith.constant 0 : index
    %28 = vector.load %arg1[%c16, %c0_18] : memref<256x32xf32, #tpu.memory_space<vmem>>, vector<8x32xf32>
    %29 = arith.truncf %28 : vector<8x32xf32> to vector<8x32xbf16>
    %cst_19 = arith.constant dense<0.000000e+00> : vector<8x256xf32>
    %30 = tpu.matmul %29, %0, %cst_19 {dimension_numbers = #tpu.dot_dimension_numbers<[1], [0], [0], [1], [0, 0, 1, 1], [], []>} : vector<8x32xbf16>, vector<32x256xbf16>, vector<8x256xf32> -> vector<8x256xf32>
    %31 = vector.broadcast %1 : vector<1x256xf32> to vector<8x256xf32>
    %32 = arith.addf %30, %31 : vector<8x256xf32>
    %cst_20 = arith.constant 0.000000e+00 : f32
    %33 = vector.broadcast %cst_20 : f32 to vector<8x256xf32>
    %34 = arith.maximumf %32, %33 : vector<8x256xf32>
    %35 = arith.truncf %34 : vector<8x256xf32> to vector<8x256xbf16>
    %cst_21 = arith.constant dense<0.000000e+00> : vector<8x4xf32>
    %36 = tpu.matmul %35, %2, %cst_21 {dimension_numbers = #tpu.dot_dimension_numbers<[1], [0], [0], [1], [0, 0, 1, 1], [], []>} : vector<8x256xbf16>, vector<256x4xbf16>, vector<8x4xf32> -> vector<8x4xf32>
    %37 = vector.broadcast %3 : vector<1x4xf32> to vector<8x4xf32>
    %38 = arith.addf %36, %37 : vector<8x4xf32>
    %c0_22 = arith.constant 0 : index
    %c8_23 = arith.constant 8 : index
    %39 = vector.load %arg6[%c0_22, %c8_23] : memref<8x128xf32, #tpu.memory_space<vmem>>, vector<8x4xf32>
    tpu.vector_store %arg6[%c0_22, %c8_23], %38 {strides = array<i32>} : memref<8x128xf32, #tpu.memory_space<vmem>>, vector<8x4xf32>,
    %c24 = arith.constant 24 : index
    %c0_24 = arith.constant 0 : index
    %40 = vector.load %arg1[%c24, %c0_24] : memref<256x32xf32, #tpu.memory_space<vmem>>, vector<8x32xf32>
    %41 = arith.truncf %40 : vector<8x32xf32> to vector<8x32xbf16>
    %cst_25 = arith.constant dense<0.000000e+00> : vector<8x256xf32>
    %42 = tpu.matmul %41, %0, %cst_25 {dimension_numbers = #tpu.dot_dimension_numbers<[1], [0], [0], [1], [0, 0, 1, 1], [], []>} : vector<8x32xbf16>, vector<32x256xbf16>, vector<8x256xf32> -> vector<8x256xf32>
    %43 = vector.broadcast %1 : vector<1x256xf32> to vector<8x256xf32>
    %44 = arith.addf %42, %43 : vector<8x256xf32>
    %cst_26 = arith.constant 0.000000e+00 : f32
    %45 = vector.broadcast %cst_26 : f32 to vector<8x256xf32>
    %46 = arith.maximumf %44, %45 : vector<8x256xf32>
    %47 = arith.truncf %46 : vector<8x256xf32> to vector<8x256xbf16>
    %cst_27 = arith.constant dense<0.000000e+00> : vector<8x4xf32>
    %48 = tpu.matmul %47, %2, %cst_27 {dimension_numbers = #tpu.dot_dimension_numbers<[1], [0], [0], [1], [0, 0, 1, 1], [], []>} : vector<8x256xbf16>, vector<256x4xbf16>, vector<8x4xf32> -> vector<8x4xf32>
    %49 = vector.broadcast %3 : vector<1x4xf32> to vector<8x4xf32>
    %50 = arith.addf %48, %49 : vector<8x4xf32>
    %c0_28 = arith.constant 0 : index
    %c12 = arith.constant 12 : index
    %51 = vector.load %arg6[%c0_28, %c12] : memref<8x128xf32, #tpu.memory_space<vmem>>, vector<8x4xf32>
    tpu.vector_store %arg6[%c0_28, %c12], %50 {strides = array<i32>} : memref<8x128xf32, #tpu.memory_space<vmem>>, vector<8x4xf32>,
    %c32 = arith.constant 32 : index
    %c0_29 = arith.constant 0 : index
    %52 = vector.load %arg1[%c32, %c0_29] : memref<256x32xf32, #tpu.memory_space<vmem>>, vector<8x32xf32>
    %53 = arith.truncf %52 : vector<8x32xf32> to vector<8x32xbf16>
    %cst_30 = arith.constant dense<0.000000e+00> : vector<8x256xf32>
    %54 = tpu.matmul %53, %0, %cst_30 {dimension_numbers = #tpu.dot_dimension_numbers<[1], [0], [0], [1], [0, 0, 1, 1], [], []>} : vector<8x32xbf16>, vector<32x256xbf16>, vector<8x256xf32> -> vector<8x256xf32>
    %55 = vector.broadcast %1 : vector<1x256xf32> to vector<8x256xf32>
    %56 = arith.addf %54, %55 : vector<8x256xf32>
    %cst_31 = arith.constant 0.000000e+00 : f32
    %57 = vector.broadcast %cst_31 : f32 to vector<8x256xf32>
    %58 = arith.maximumf %56, %57 : vector<8x256xf32>
    %59 = arith.truncf %58 : vector<8x256xf32> to vector<8x256xbf16>
    %cst_32 = arith.constant dense<0.000000e+00> : vector<8x4xf32>
    %60 = tpu.matmul %59, %2, %cst_32 {dimension_numbers = #tpu.dot_dimension_numbers<[1], [0], [0], [1], [0, 0, 1, 1], [], []>} : vector<8x256xbf16>, vector<256x4xbf16>, vector<8x4xf32> -> vector<8x4xf32>
    %61 = vector.broadcast %3 : vector<1x4xf32> to vector<8x4xf32>
    %62 = arith.addf %60, %61 : vector<8x4xf32>
    %c0_33 = arith.constant 0 : index
    %c16_34 = arith.constant 16 : index
    %63 = vector.load %arg6[%c0_33, %c16_34] : memref<8x128xf32, #tpu.memory_space<vmem>>, vector<8x4xf32>
    tpu.vector_store %arg6[%c0_33, %c16_34], %62 {strides = array<i32>} : memref<8x128xf32, #tpu.memory_space<vmem>>, vector<8x4xf32>,
    %c40 = arith.constant 40 : index
    %c0_35 = arith.constant 0 : index
    %64 = vector.load %arg1[%c40, %c0_35] : memref<256x32xf32, #tpu.memory_space<vmem>>, vector<8x32xf32>
    %65 = arith.truncf %64 : vector<8x32xf32> to vector<8x32xbf16>
    %cst_36 = arith.constant dense<0.000000e+00> : vector<8x256xf32>
    %66 = tpu.matmul %65, %0, %cst_36 {dimension_numbers = #tpu.dot_dimension_numbers<[1], [0], [0], [1], [0, 0, 1, 1], [], []>} : vector<8x32xbf16>, vector<32x256xbf16>, vector<8x256xf32> -> vector<8x256xf32>
    %67 = vector.broadcast %1 : vector<1x256xf32> to vector<8x256xf32>
    %68 = arith.addf %66, %67 : vector<8x256xf32>
    %cst_37 = arith.constant 0.000000e+00 : f32
    %69 = vector.broadcast %cst_37 : f32 to vector<8x256xf32>
    %70 = arith.maximumf %68, %69 : vector<8x256xf32>
    %71 = arith.truncf %70 : vector<8x256xf32> to vector<8x256xbf16>
    %cst_38 = arith.constant dense<0.000000e+00> : vector<8x4xf32>
    %72 = tpu.matmul %71, %2, %cst_38 {dimension_numbers = #tpu.dot_dimension_numbers<[1], [0], [0], [1], [0, 0, 1, 1], [], []>} : vector<8x256xbf16>, vector<256x4xbf16>, vector<8x4xf32> -> vector<8x4xf32>
    %73 = vector.broadcast %3 : vector<1x4xf32> to vector<8x4xf32>
    %74 = arith.addf %72, %73 : vector<8x4xf32>
    %c0_39 = arith.constant 0 : index
    %c20 = arith.constant 20 : index
    %75 = vector.load %arg6[%c0_39, %c20] : memref<8x128xf32, #tpu.memory_space<vmem>>, vector<8x4xf32>
    tpu.vector_store %arg6[%c0_39, %c20], %74 {strides = array<i32>} : memref<8x128xf32, #tpu.memory_space<vmem>>, vector<8x4xf32>,
    %c48 = arith.constant 48 : index
    %c0_40 = arith.constant 0 : index
    %76 = vector.load %arg1[%c48, %c0_40] : memref<256x32xf32, #tpu.memory_space<vmem>>, vector<8x32xf32>
    %77 = arith.truncf %76 : vector<8x32xf32> to vector<8x32xbf16>
    %cst_41 = arith.constant dense<0.000000e+00> : vector<8x256xf32>
    %78 = tpu.matmul %77, %0, %cst_41 {dimension_numbers = #tpu.dot_dimension_numbers<[1], [0], [0], [1], [0, 0, 1, 1], [], []>} : vector<8x32xbf16>, vector<32x256xbf16>, vector<8x256xf32> -> vector<8x256xf32>
    %79 = vector.broadcast %1 : vector<1x256xf32> to vector<8x256xf32>
    %80 = arith.addf %78, %79 : vector<8x256xf32>
    %cst_42 = arith.constant 0.000000e+00 : f32
    %81 = vector.broadcast %cst_42 : f32 to vector<8x256xf32>
    %82 = arith.maximumf %80, %81 : vector<8x256xf32>
    %83 = arith.truncf %82 : vector<8x256xf32> to vector<8x256xbf16>
    %cst_43 = arith.constant dense<0.000000e+00> : vector<8x4xf32>
    %84 = tpu.matmul %83, %2, %cst_43 {dimension_numbers = #tpu.dot_dimension_numbers<[1], [0], [0], [1], [0, 0, 1, 1], [], []>} : vector<8x256xbf16>, vector<256x4xbf16>, vector<8x4xf32> -> vector<8x4xf32>
    %85 = vector.broadcast %3 : vector<1x4xf32> to vector<8x4xf32>
    %86 = arith.addf %84, %85 : vector<8x4xf32>
    %c0_44 = arith.constant 0 : index
    %c24_45 = arith.constant 24 : index
    %87 = vector.load %arg6[%c0_44, %c24_45] : memref<8x128xf32, #tpu.memory_space<vmem>>, vector<8x4xf32>
    tpu.vector_store %arg6[%c0_44, %c24_45], %86 {strides = array<i32>} : memref<8x128xf32, #tpu.memory_space<vmem>>, vector<8x4xf32>,
    %c56 = arith.constant 56 : index
    %c0_46 = arith.constant 0 : index
    %88 = vector.load %arg1[%c56, %c0_46] : memref<256x32xf32, #tpu.memory_space<vmem>>, vector<8x32xf32>
    %89 = arith.truncf %88 : vector<8x32xf32> to vector<8x32xbf16>
    %cst_47 = arith.constant dense<0.000000e+00> : vector<8x256xf32>
    %90 = tpu.matmul %89, %0, %cst_47 {dimension_numbers = #tpu.dot_dimension_numbers<[1], [0], [0], [1], [0, 0, 1, 1], [], []>} : vector<8x32xbf16>, vector<32x256xbf16>, vector<8x256xf32> -> vector<8x256xf32>
    %91 = vector.broadcast %1 : vector<1x256xf32> to vector<8x256xf32>
    %92 = arith.addf %90, %91 : vector<8x256xf32>
    %cst_48 = arith.constant 0.000000e+00 : f32
    %93 = vector.broadcast %cst_48 : f32 to vector<8x256xf32>
    %94 = arith.maximumf %92, %93 : vector<8x256xf32>
    %95 = arith.truncf %94 : vector<8x256xf32> to vector<8x256xbf16>
    %cst_49 = arith.constant dense<0.000000e+00> : vector<8x4xf32>
    %96 = tpu.matmul %95, %2, %cst_49 {dimension_numbers = #tpu.dot_dimension_numbers<[1], [0], [0], [1], [0, 0, 1, 1], [], []>} : vector<8x256xbf16>, vector<256x4xbf16>, vector<8x4xf32> -> vector<8x4xf32>
    %97 = vector.broadcast %3 : vector<1x4xf32> to vector<8x4xf32>
    %98 = arith.addf %96, %97 : vector<8x4xf32>
    %c0_50 = arith.constant 0 : index
    %c28 = arith.constant 28 : index
    %99 = vector.load %arg6[%c0_50, %c28] : memref<8x128xf32, #tpu.memory_space<vmem>>, vector<8x4xf32>
    tpu.vector_store %arg6[%c0_50, %c28], %98 {strides = array<i32>} : memref<8x128xf32, #tpu.memory_space<vmem>>, vector<8x4xf32>,
    %c64 = arith.constant 64 : index
    %c0_51 = arith.constant 0 : index
    %100 = vector.load %arg1[%c64, %c0_51] : memref<256x32xf32, #tpu.memory_space<vmem>>, vector<8x32xf32>
    %101 = arith.truncf %100 : vector<8x32xf32> to vector<8x32xbf16>
    %cst_52 = arith.constant dense<0.000000e+00> : vector<8x256xf32>
    %102 = tpu.matmul %101, %0, %cst_52 {dimension_numbers = #tpu.dot_dimension_numbers<[1], [0], [0], [1], [0, 0, 1, 1], [], []>} : vector<8x32xbf16>, vector<32x256xbf16>, vector<8x256xf32> -> vector<8x256xf32>
    %103 = vector.broadcast %1 : vector<1x256xf32> to vector<8x256xf32>
    %104 = arith.addf %102, %103 : vector<8x256xf32>
    %cst_53 = arith.constant 0.000000e+00 : f32
    %105 = vector.broadcast %cst_53 : f32 to vector<8x256xf32>
    %106 = arith.maximumf %104, %105 : vector<8x256xf32>
    %107 = arith.truncf %106 : vector<8x256xf32> to vector<8x256xbf16>
    %cst_54 = arith.constant dense<0.000000e+00> : vector<8x4xf32>
    %108 = tpu.matmul %107, %2, %cst_54 {dimension_numbers = #tpu.dot_dimension_numbers<[1], [0], [0], [1], [0, 0, 1, 1], [], []>} : vector<8x256xbf16>, vector<256x4xbf16>, vector<8x4xf32> -> vector<8x4xf32>
    %109 = vector.broadcast %3 : vector<1x4xf32> to vector<8x4xf32>
    %110 = arith.addf %108, %109 : vector<8x4xf32>
    %c0_55 = arith.constant 0 : index
    %c32_56 = arith.constant 32 : index
    %111 = vector.load %arg6[%c0_55, %c32_56] : memref<8x128xf32, #tpu.memory_space<vmem>>, vector<8x4xf32>
    tpu.vector_store %arg6[%c0_55, %c32_56], %110 {strides = array<i32>} : memref<8x128xf32, #tpu.memory_space<vmem>>, vector<8x4xf32>,
    %c72 = arith.constant 72 : index
    %c0_57 = arith.constant 0 : index
    %112 = vector.load %arg1[%c72, %c0_57] : memref<256x32xf32, #tpu.memory_space<vmem>>, vector<8x32xf32>
    %113 = arith.truncf %112 : vector<8x32xf32> to vector<8x32xbf16>
    %cst_58 = arith.constant dense<0.000000e+00> : vector<8x256xf32>
    %114 = tpu.matmul %113, %0, %cst_58 {dimension_numbers = #tpu.dot_dimension_numbers<[1], [0], [0], [1], [0, 0, 1, 1], [], []>} : vector<8x32xbf16>, vector<32x256xbf16>, vector<8x256xf32> -> vector<8x256xf32>
    %115 = vector.broadcast %1 : vector<1x256xf32> to vector<8x256xf32>
    %116 = arith.addf %114, %115 : vector<8x256xf32>
    %cst_59 = arith.constant 0.000000e+00 : f32
    %117 = vector.broadcast %cst_59 : f32 to vector<8x256xf32>
    %118 = arith.maximumf %116, %117 : vector<8x256xf32>
    %119 = arith.truncf %118 : vector<8x256xf32> to vector<8x256xbf16>
    %cst_60 = arith.constant dense<0.000000e+00> : vector<8x4xf32>
    %120 = tpu.matmul %119, %2, %cst_60 {dimension_numbers = #tpu.dot_dimension_numbers<[1], [0], [0], [1], [0, 0, 1, 1], [], []>} : vector<8x256xbf16>, vector<256x4xbf16>, vector<8x4xf32> -> vector<8x4xf32>
    %121 = vector.broadcast %3 : vector<1x4xf32> to vector<8x4xf32>
    %122 = arith.addf %120, %121 : vector<8x4xf32>
    %c0_61 = arith.constant 0 : index
    %c36 = arith.constant 36 : index
    %123 = vector.load %arg6[%c0_61, %c36] : memref<8x128xf32, #tpu.memory_space<vmem>>, vector<8x4xf32>
    tpu.vector_store %arg6[%c0_61, %c36], %122 {strides = array<i32>} : memref<8x128xf32, #tpu.memory_space<vmem>>, vector<8x4xf32>,
    %c80 = arith.constant 80 : index
    %c0_62 = arith.constant 0 : index
    %124 = vector.load %arg1[%c80, %c0_62] : memref<256x32xf32, #tpu.memory_space<vmem>>, vector<8x32xf32>
    %125 = arith.truncf %124 : vector<8x32xf32> to vector<8x32xbf16>
    %cst_63 = arith.constant dense<0.000000e+00> : vector<8x256xf32>
    %126 = tpu.matmul %125, %0, %cst_63 {dimension_numbers = #tpu.dot_dimension_numbers<[1], [0], [0], [1], [0, 0, 1, 1], [], []>} : vector<8x32xbf16>, vector<32x256xbf16>, vector<8x256xf32> -> vector<8x256xf32>
    %127 = vector.broadcast %1 : vector<1x256xf32> to vector<8x256xf32>
    %128 = arith.addf %126, %127 : vector<8x256xf32>
    %cst_64 = arith.constant 0.000000e+00 : f32
    %129 = vector.broadcast %cst_64 : f32 to vector<8x256xf32>
    %130 = arith.maximumf %128, %129 : vector<8x256xf32>
    %131 = arith.truncf %130 : vector<8x256xf32> to vector<8x256xbf16>
    %cst_65 = arith.constant dense<0.000000e+00> : vector<8x4xf32>
    %132 = tpu.matmul %131, %2, %cst_65 {dimension_numbers = #tpu.dot_dimension_numbers<[1], [0], [0], [1], [0, 0, 1, 1], [], []>} : vector<8x256xbf16>, vector<256x4xbf16>, vector<8x4xf32> -> vector<8x4xf32>
    %133 = vector.broadcast %3 : vector<1x4xf32> to vector<8x4xf32>
    %134 = arith.addf %132, %133 : vector<8x4xf32>
    %c0_66 = arith.constant 0 : index
    %c40_67 = arith.constant 40 : index
    %135 = vector.load %arg6[%c0_66, %c40_67] : memref<8x128xf32, #tpu.memory_space<vmem>>, vector<8x4xf32>
    tpu.vector_store %arg6[%c0_66, %c40_67], %134 {strides = array<i32>} : memref<8x128xf32, #tpu.memory_space<vmem>>, vector<8x4xf32>,
    %c88 = arith.constant 88 : index
    %c0_68 = arith.constant 0 : index
    %136 = vector.load %arg1[%c88, %c0_68] : memref<256x32xf32, #tpu.memory_space<vmem>>, vector<8x32xf32>
    %137 = arith.truncf %136 : vector<8x32xf32> to vector<8x32xbf16>
    %cst_69 = arith.constant dense<0.000000e+00> : vector<8x256xf32>
    %138 = tpu.matmul %137, %0, %cst_69 {dimension_numbers = #tpu.dot_dimension_numbers<[1], [0], [0], [1], [0, 0, 1, 1], [], []>} : vector<8x32xbf16>, vector<32x256xbf16>, vector<8x256xf32> -> vector<8x256xf32>
    %139 = vector.broadcast %1 : vector<1x256xf32> to vector<8x256xf32>
    %140 = arith.addf %138, %139 : vector<8x256xf32>
    %cst_70 = arith.constant 0.000000e+00 : f32
    %141 = vector.broadcast %cst_70 : f32 to vector<8x256xf32>
    %142 = arith.maximumf %140, %141 : vector<8x256xf32>
    %143 = arith.truncf %142 : vector<8x256xf32> to vector<8x256xbf16>
    %cst_71 = arith.constant dense<0.000000e+00> : vector<8x4xf32>
    %144 = tpu.matmul %143, %2, %cst_71 {dimension_numbers = #tpu.dot_dimension_numbers<[1], [0], [0], [1], [0, 0, 1, 1], [], []>} : vector<8x256xbf16>, vector<256x4xbf16>, vector<8x4xf32> -> vector<8x4xf32>
    %145 = vector.broadcast %3 : vector<1x4xf32> to vector<8x4xf32>
    %146 = arith.addf %144, %145 : vector<8x4xf32>
    %c0_72 = arith.constant 0 : index
    %c44 = arith.constant 44 : index
    %147 = vector.load %arg6[%c0_72, %c44] : memref<8x128xf32, #tpu.memory_space<vmem>>, vector<8x4xf32>
    tpu.vector_store %arg6[%c0_72, %c44], %146 {strides = array<i32>} : memref<8x128xf32, #tpu.memory_space<vmem>>, vector<8x4xf32>,
    %c96 = arith.constant 96 : index
    %c0_73 = arith.constant 0 : index
    %148 = vector.load %arg1[%c96, %c0_73] : memref<256x32xf32, #tpu.memory_space<vmem>>, vector<8x32xf32>
    %149 = arith.truncf %148 : vector<8x32xf32> to vector<8x32xbf16>
    %cst_74 = arith.constant dense<0.000000e+00> : vector<8x256xf32>
    %150 = tpu.matmul %149, %0, %cst_74 {dimension_numbers = #tpu.dot_dimension_numbers<[1], [0], [0], [1], [0, 0, 1, 1], [], []>} : vector<8x32xbf16>, vector<32x256xbf16>, vector<8x256xf32> -> vector<8x256xf32>
    %151 = vector.broadcast %1 : vector<1x256xf32> to vector<8x256xf32>
    %152 = arith.addf %150, %151 : vector<8x256xf32>
    %cst_75 = arith.constant 0.000000e+00 : f32
    %153 = vector.broadcast %cst_75 : f32 to vector<8x256xf32>
    %154 = arith.maximumf %152, %153 : vector<8x256xf32>
    %155 = arith.truncf %154 : vector<8x256xf32> to vector<8x256xbf16>
    %cst_76 = arith.constant dense<0.000000e+00> : vector<8x4xf32>
    %156 = tpu.matmul %155, %2, %cst_76 {dimension_numbers = #tpu.dot_dimension_numbers<[1], [0], [0], [1], [0, 0, 1, 1], [], []>} : vector<8x256xbf16>, vector<256x4xbf16>, vector<8x4xf32> -> vector<8x4xf32>
    %157 = vector.broadcast %3 : vector<1x4xf32> to vector<8x4xf32>
    %158 = arith.addf %156, %157 : vector<8x4xf32>
    %c0_77 = arith.constant 0 : index
    %c48_78 = arith.constant 48 : index
    %159 = vector.load %arg6[%c0_77, %c48_78] : memref<8x128xf32, #tpu.memory_space<vmem>>, vector<8x4xf32>
    tpu.vector_store %arg6[%c0_77, %c48_78], %158 {strides = array<i32>} : memref<8x128xf32, #tpu.memory_space<vmem>>, vector<8x4xf32>,
    %c104 = arith.constant 104 : index
    %c0_79 = arith.constant 0 : index
    %160 = vector.load %arg1[%c104, %c0_79] : memref<256x32xf32, #tpu.memory_space<vmem>>, vector<8x32xf32>
    %161 = arith.truncf %160 : vector<8x32xf32> to vector<8x32xbf16>
    %cst_80 = arith.constant dense<0.000000e+00> : vector<8x256xf32>
    %162 = tpu.matmul %161, %0, %cst_80 {dimension_numbers = #tpu.dot_dimension_numbers<[1], [0], [0], [1], [0, 0, 1, 1], [], []>} : vector<8x32xbf16>, vector<32x256xbf16>, vector<8x256xf32> -> vector<8x256xf32>
    %163 = vector.broadcast %1 : vector<1x256xf32> to vector<8x256xf32>
    %164 = arith.addf %162, %163 : vector<8x256xf32>
    %cst_81 = arith.constant 0.000000e+00 : f32
    %165 = vector.broadcast %cst_81 : f32 to vector<8x256xf32>
    %166 = arith.maximumf %164, %165 : vector<8x256xf32>
    %167 = arith.truncf %166 : vector<8x256xf32> to vector<8x256xbf16>
    %cst_82 = arith.constant dense<0.000000e+00> : vector<8x4xf32>
    %168 = tpu.matmul %167, %2, %cst_82 {dimension_numbers = #tpu.dot_dimension_numbers<[1], [0], [0], [1], [0, 0, 1, 1], [], []>} : vector<8x256xbf16>, vector<256x4xbf16>, vector<8x4xf32> -> vector<8x4xf32>
    %169 = vector.broadcast %3 : vector<1x4xf32> to vector<8x4xf32>
    %170 = arith.addf %168, %169 : vector<8x4xf32>
    %c0_83 = arith.constant 0 : index
    %c52 = arith.constant 52 : index
    %171 = vector.load %arg6[%c0_83, %c52] : memref<8x128xf32, #tpu.memory_space<vmem>>, vector<8x4xf32>
    tpu.vector_store %arg6[%c0_83, %c52], %170 {strides = array<i32>} : memref<8x128xf32, #tpu.memory_space<vmem>>, vector<8x4xf32>,
    %c112 = arith.constant 112 : index
    %c0_84 = arith.constant 0 : index
    %172 = vector.load %arg1[%c112, %c0_84] : memref<256x32xf32, #tpu.memory_space<vmem>>, vector<8x32xf32>
    %173 = arith.truncf %172 : vector<8x32xf32> to vector<8x32xbf16>
    %cst_85 = arith.constant dense<0.000000e+00> : vector<8x256xf32>
    %174 = tpu.matmul %173, %0, %cst_85 {dimension_numbers = #tpu.dot_dimension_numbers<[1], [0], [0], [1], [0, 0, 1, 1], [], []>} : vector<8x32xbf16>, vector<32x256xbf16>, vector<8x256xf32> -> vector<8x256xf32>
    %175 = vector.broadcast %1 : vector<1x256xf32> to vector<8x256xf32>
    %176 = arith.addf %174, %175 : vector<8x256xf32>
    %cst_86 = arith.constant 0.000000e+00 : f32
    %177 = vector.broadcast %cst_86 : f32 to vector<8x256xf32>
    %178 = arith.maximumf %176, %177 : vector<8x256xf32>
    %179 = arith.truncf %178 : vector<8x256xf32> to vector<8x256xbf16>
    %cst_87 = arith.constant dense<0.000000e+00> : vector<8x4xf32>
    %180 = tpu.matmul %179, %2, %cst_87 {dimension_numbers = #tpu.dot_dimension_numbers<[1], [0], [0], [1], [0, 0, 1, 1], [], []>} : vector<8x256xbf16>, vector<256x4xbf16>, vector<8x4xf32> -> vector<8x4xf32>
    %181 = vector.broadcast %3 : vector<1x4xf32> to vector<8x4xf32>
    %182 = arith.addf %180, %181 : vector<8x4xf32>
    %c0_88 = arith.constant 0 : index
    %c56_89 = arith.constant 56 : index
    %183 = vector.load %arg6[%c0_88, %c56_89] : memref<8x128xf32, #tpu.memory_space<vmem>>, vector<8x4xf32>
    tpu.vector_store %arg6[%c0_88, %c56_89], %182 {strides = array<i32>} : memref<8x128xf32, #tpu.memory_space<vmem>>, vector<8x4xf32>,
    %c120 = arith.constant 120 : index
    %c0_90 = arith.constant 0 : index
    %184 = vector.load %arg1[%c120, %c0_90] : memref<256x32xf32, #tpu.memory_space<vmem>>, vector<8x32xf32>
    %185 = arith.truncf %184 : vector<8x32xf32> to vector<8x32xbf16>
    %cst_91 = arith.constant dense<0.000000e+00> : vector<8x256xf32>
    %186 = tpu.matmul %185, %0, %cst_91 {dimension_numbers = #tpu.dot_dimension_numbers<[1], [0], [0], [1], [0, 0, 1, 1], [], []>} : vector<8x32xbf16>, vector<32x256xbf16>, vector<8x256xf32> -> vector<8x256xf32>
    %187 = vector.broadcast %1 : vector<1x256xf32> to vector<8x256xf32>
    %188 = arith.addf %186, %187 : vector<8x256xf32>
    %cst_92 = arith.constant 0.000000e+00 : f32
    %189 = vector.broadcast %cst_92 : f32 to vector<8x256xf32>
    %190 = arith.maximumf %188, %189 : vector<8x256xf32>
    %191 = arith.truncf %190 : vector<8x256xf32> to vector<8x256xbf16>
    %cst_93 = arith.constant dense<0.000000e+00> : vector<8x4xf32>
    %192 = tpu.matmul %191, %2, %cst_93 {dimension_numbers = #tpu.dot_dimension_numbers<[1], [0], [0], [1], [0, 0, 1, 1], [], []>} : vector<8x256xbf16>, vector<256x4xbf16>, vector<8x4xf32> -> vector<8x4xf32>
    %193 = vector.broadcast %3 : vector<1x4xf32> to vector<8x4xf32>
    %194 = arith.addf %192, %193 : vector<8x4xf32>
    %c0_94 = arith.constant 0 : index
    %c60 = arith.constant 60 : index
    %195 = vector.load %arg6[%c0_94, %c60] : memref<8x128xf32, #tpu.memory_space<vmem>>, vector<8x4xf32>
    tpu.vector_store %arg6[%c0_94, %c60], %194 {strides = array<i32>} : memref<8x128xf32, #tpu.memory_space<vmem>>, vector<8x4xf32>,
    %c128 = arith.constant 128 : index
    %c0_95 = arith.constant 0 : index
    %196 = vector.load %arg1[%c128, %c0_95] : memref<256x32xf32, #tpu.memory_space<vmem>>, vector<8x32xf32>
    %197 = arith.truncf %196 : vector<8x32xf32> to vector<8x32xbf16>
    %cst_96 = arith.constant dense<0.000000e+00> : vector<8x256xf32>
    %198 = tpu.matmul %197, %0, %cst_96 {dimension_numbers = #tpu.dot_dimension_numbers<[1], [0], [0], [1], [0, 0, 1, 1], [], []>} : vector<8x32xbf16>, vector<32x256xbf16>, vector<8x256xf32> -> vector<8x256xf32>
    %199 = vector.broadcast %1 : vector<1x256xf32> to vector<8x256xf32>
    %200 = arith.addf %198, %199 : vector<8x256xf32>
    %cst_97 = arith.constant 0.000000e+00 : f32
    %201 = vector.broadcast %cst_97 : f32 to vector<8x256xf32>
    %202 = arith.maximumf %200, %201 : vector<8x256xf32>
    %203 = arith.truncf %202 : vector<8x256xf32> to vector<8x256xbf16>
    %cst_98 = arith.constant dense<0.000000e+00> : vector<8x4xf32>
    %204 = tpu.matmul %203, %2, %cst_98 {dimension_numbers = #tpu.dot_dimension_numbers<[1], [0], [0], [1], [0, 0, 1, 1], [], []>} : vector<8x256xbf16>, vector<256x4xbf16>, vector<8x4xf32> -> vector<8x4xf32>
    %205 = vector.broadcast %3 : vector<1x4xf32> to vector<8x4xf32>
    %206 = arith.addf %204, %205 : vector<8x4xf32>
    %c0_99 = arith.constant 0 : index
    %c64_100 = arith.constant 64 : index
    %207 = vector.load %arg6[%c0_99, %c64_100] : memref<8x128xf32, #tpu.memory_space<vmem>>, vector<8x4xf32>
    tpu.vector_store %arg6[%c0_99, %c64_100], %206 {strides = array<i32>} : memref<8x128xf32, #tpu.memory_space<vmem>>, vector<8x4xf32>,
    %c136 = arith.constant 136 : index
    %c0_101 = arith.constant 0 : index
    %208 = vector.load %arg1[%c136, %c0_101] : memref<256x32xf32, #tpu.memory_space<vmem>>, vector<8x32xf32>
    %209 = arith.truncf %208 : vector<8x32xf32> to vector<8x32xbf16>
    %cst_102 = arith.constant dense<0.000000e+00> : vector<8x256xf32>
    %210 = tpu.matmul %209, %0, %cst_102 {dimension_numbers = #tpu.dot_dimension_numbers<[1], [0], [0], [1], [0, 0, 1, 1], [], []>} : vector<8x32xbf16>, vector<32x256xbf16>, vector<8x256xf32> -> vector<8x256xf32>
    %211 = vector.broadcast %1 : vector<1x256xf32> to vector<8x256xf32>
    %212 = arith.addf %210, %211 : vector<8x256xf32>
    %cst_103 = arith.constant 0.000000e+00 : f32
    %213 = vector.broadcast %cst_103 : f32 to vector<8x256xf32>
    %214 = arith.maximumf %212, %213 : vector<8x256xf32>
    %215 = arith.truncf %214 : vector<8x256xf32> to vector<8x256xbf16>
    %cst_104 = arith.constant dense<0.000000e+00> : vector<8x4xf32>
    %216 = tpu.matmul %215, %2, %cst_104 {dimension_numbers = #tpu.dot_dimension_numbers<[1], [0], [0], [1], [0, 0, 1, 1], [], []>} : vector<8x256xbf16>, vector<256x4xbf16>, vector<8x4xf32> -> vector<8x4xf32>
    %217 = vector.broadcast %3 : vector<1x4xf32> to vector<8x4xf32>
    %218 = arith.addf %216, %217 : vector<8x4xf32>
    %c0_105 = arith.constant 0 : index
    %c68 = arith.constant 68 : index
    %219 = vector.load %arg6[%c0_105, %c68] : memref<8x128xf32, #tpu.memory_space<vmem>>, vector<8x4xf32>
    tpu.vector_store %arg6[%c0_105, %c68], %218 {strides = array<i32>} : memref<8x128xf32, #tpu.memory_space<vmem>>, vector<8x4xf32>,
    %c144 = arith.constant 144 : index
    %c0_106 = arith.constant 0 : index
    %220 = vector.load %arg1[%c144, %c0_106] : memref<256x32xf32, #tpu.memory_space<vmem>>, vector<8x32xf32>
    %221 = arith.truncf %220 : vector<8x32xf32> to vector<8x32xbf16>
    %cst_107 = arith.constant dense<0.000000e+00> : vector<8x256xf32>
    %222 = tpu.matmul %221, %0, %cst_107 {dimension_numbers = #tpu.dot_dimension_numbers<[1], [0], [0], [1], [0, 0, 1, 1], [], []>} : vector<8x32xbf16>, vector<32x256xbf16>, vector<8x256xf32> -> vector<8x256xf32>
    %223 = vector.broadcast %1 : vector<1x256xf32> to vector<8x256xf32>
    %224 = arith.addf %222, %223 : vector<8x256xf32>
    %cst_108 = arith.constant 0.000000e+00 : f32
    %225 = vector.broadcast %cst_108 : f32 to vector<8x256xf32>
    %226 = arith.maximumf %224, %225 : vector<8x256xf32>
    %227 = arith.truncf %226 : vector<8x256xf32> to vector<8x256xbf16>
    %cst_109 = arith.constant dense<0.000000e+00> : vector<8x4xf32>
    %228 = tpu.matmul %227, %2, %cst_109 {dimension_numbers = #tpu.dot_dimension_numbers<[1], [0], [0], [1], [0, 0, 1, 1], [], []>} : vector<8x256xbf16>, vector<256x4xbf16>, vector<8x4xf32> -> vector<8x4xf32>
    %229 = vector.broadcast %3 : vector<1x4xf32> to vector<8x4xf32>
    %230 = arith.addf %228, %229 : vector<8x4xf32>
    %c0_110 = arith.constant 0 : index
    %c72_111 = arith.constant 72 : index
    %231 = vector.load %arg6[%c0_110, %c72_111] : memref<8x128xf32, #tpu.memory_space<vmem>>, vector<8x4xf32>
    tpu.vector_store %arg6[%c0_110, %c72_111], %230 {strides = array<i32>} : memref<8x128xf32, #tpu.memory_space<vmem>>, vector<8x4xf32>,
    %c152 = arith.constant 152 : index
    %c0_112 = arith.constant 0 : index
    %232 = vector.load %arg1[%c152, %c0_112] : memref<256x32xf32, #tpu.memory_space<vmem>>, vector<8x32xf32>
    %233 = arith.truncf %232 : vector<8x32xf32> to vector<8x32xbf16>
    %cst_113 = arith.constant dense<0.000000e+00> : vector<8x256xf32>
    %234 = tpu.matmul %233, %0, %cst_113 {dimension_numbers = #tpu.dot_dimension_numbers<[1], [0], [0], [1], [0, 0, 1, 1], [], []>} : vector<8x32xbf16>, vector<32x256xbf16>, vector<8x256xf32> -> vector<8x256xf32>
    %235 = vector.broadcast %1 : vector<1x256xf32> to vector<8x256xf32>
    %236 = arith.addf %234, %235 : vector<8x256xf32>
    %cst_114 = arith.constant 0.000000e+00 : f32
    %237 = vector.broadcast %cst_114 : f32 to vector<8x256xf32>
    %238 = arith.maximumf %236, %237 : vector<8x256xf32>
    %239 = arith.truncf %238 : vector<8x256xf32> to vector<8x256xbf16>
    %cst_115 = arith.constant dense<0.000000e+00> : vector<8x4xf32>
    %240 = tpu.matmul %239, %2, %cst_115 {dimension_numbers = #tpu.dot_dimension_numbers<[1], [0], [0], [1], [0, 0, 1, 1], [], []>} : vector<8x256xbf16>, vector<256x4xbf16>, vector<8x4xf32> -> vector<8x4xf32>
    %241 = vector.broadcast %3 : vector<1x4xf32> to vector<8x4xf32>
    %242 = arith.addf %240, %241 : vector<8x4xf32>
    %c0_116 = arith.constant 0 : index
    %c76 = arith.constant 76 : index
    %243 = vector.load %arg6[%c0_116, %c76] : memref<8x128xf32, #tpu.memory_space<vmem>>, vector<8x4xf32>
    tpu.vector_store %arg6[%c0_116, %c76], %242 {strides = array<i32>} : memref<8x128xf32, #tpu.memory_space<vmem>>, vector<8x4xf32>,
    %c160 = arith.constant 160 : index
    %c0_117 = arith.constant 0 : index
    %244 = vector.load %arg1[%c160, %c0_117] : memref<256x32xf32, #tpu.memory_space<vmem>>, vector<8x32xf32>
    %245 = arith.truncf %244 : vector<8x32xf32> to vector<8x32xbf16>
    %cst_118 = arith.constant dense<0.000000e+00> : vector<8x256xf32>
    %246 = tpu.matmul %245, %0, %cst_118 {dimension_numbers = #tpu.dot_dimension_numbers<[1], [0], [0], [1], [0, 0, 1, 1], [], []>} : vector<8x32xbf16>, vector<32x256xbf16>, vector<8x256xf32> -> vector<8x256xf32>
    %247 = vector.broadcast %1 : vector<1x256xf32> to vector<8x256xf32>
    %248 = arith.addf %246, %247 : vector<8x256xf32>
    %cst_119 = arith.constant 0.000000e+00 : f32
    %249 = vector.broadcast %cst_119 : f32 to vector<8x256xf32>
    %250 = arith.maximumf %248, %249 : vector<8x256xf32>
    %251 = arith.truncf %250 : vector<8x256xf32> to vector<8x256xbf16>
    %cst_120 = arith.constant dense<0.000000e+00> : vector<8x4xf32>
    %252 = tpu.matmul %251, %2, %cst_120 {dimension_numbers = #tpu.dot_dimension_numbers<[1], [0], [0], [1], [0, 0, 1, 1], [], []>} : vector<8x256xbf16>, vector<256x4xbf16>, vector<8x4xf32> -> vector<8x4xf32>
    %253 = vector.broadcast %3 : vector<1x4xf32> to vector<8x4xf32>
    %254 = arith.addf %252, %253 : vector<8x4xf32>
    %c0_121 = arith.constant 0 : index
    %c80_122 = arith.constant 80 : index
    %255 = vector.load %arg6[%c0_121, %c80_122] : memref<8x128xf32, #tpu.memory_space<vmem>>, vector<8x4xf32>
    tpu.vector_store %arg6[%c0_121, %c80_122], %254 {strides = array<i32>} : memref<8x128xf32, #tpu.memory_space<vmem>>, vector<8x4xf32>,
    %c168 = arith.constant 168 : index
    %c0_123 = arith.constant 0 : index
    %256 = vector.load %arg1[%c168, %c0_123] : memref<256x32xf32, #tpu.memory_space<vmem>>, vector<8x32xf32>
    %257 = arith.truncf %256 : vector<8x32xf32> to vector<8x32xbf16>
    %cst_124 = arith.constant dense<0.000000e+00> : vector<8x256xf32>
    %258 = tpu.matmul %257, %0, %cst_124 {dimension_numbers = #tpu.dot_dimension_numbers<[1], [0], [0], [1], [0, 0, 1, 1], [], []>} : vector<8x32xbf16>, vector<32x256xbf16>, vector<8x256xf32> -> vector<8x256xf32>
    %259 = vector.broadcast %1 : vector<1x256xf32> to vector<8x256xf32>
    %260 = arith.addf %258, %259 : vector<8x256xf32>
    %cst_125 = arith.constant 0.000000e+00 : f32
    %261 = vector.broadcast %cst_125 : f32 to vector<8x256xf32>
    %262 = arith.maximumf %260, %261 : vector<8x256xf32>
    %263 = arith.truncf %262 : vector<8x256xf32> to vector<8x256xbf16>
    %cst_126 = arith.constant dense<0.000000e+00> : vector<8x4xf32>
    %264 = tpu.matmul %263, %2, %cst_126 {dimension_numbers = #tpu.dot_dimension_numbers<[1], [0], [0], [1], [0, 0, 1, 1], [], []>} : vector<8x256xbf16>, vector<256x4xbf16>, vector<8x4xf32> -> vector<8x4xf32>
    %265 = vector.broadcast %3 : vector<1x4xf32> to vector<8x4xf32>
    %266 = arith.addf %264, %265 : vector<8x4xf32>
    %c0_127 = arith.constant 0 : index
    %c84 = arith.constant 84 : index
    %267 = vector.load %arg6[%c0_127, %c84] : memref<8x128xf32, #tpu.memory_space<vmem>>, vector<8x4xf32>
    tpu.vector_store %arg6[%c0_127, %c84], %266 {strides = array<i32>} : memref<8x128xf32, #tpu.memory_space<vmem>>, vector<8x4xf32>,
    %c176 = arith.constant 176 : index
    %c0_128 = arith.constant 0 : index
    %268 = vector.load %arg1[%c176, %c0_128] : memref<256x32xf32, #tpu.memory_space<vmem>>, vector<8x32xf32>
    %269 = arith.truncf %268 : vector<8x32xf32> to vector<8x32xbf16>
    %cst_129 = arith.constant dense<0.000000e+00> : vector<8x256xf32>
    %270 = tpu.matmul %269, %0, %cst_129 {dimension_numbers = #tpu.dot_dimension_numbers<[1], [0], [0], [1], [0, 0, 1, 1], [], []>} : vector<8x32xbf16>, vector<32x256xbf16>, vector<8x256xf32> -> vector<8x256xf32>
    %271 = vector.broadcast %1 : vector<1x256xf32> to vector<8x256xf32>
    %272 = arith.addf %270, %271 : vector<8x256xf32>
    %cst_130 = arith.constant 0.000000e+00 : f32
    %273 = vector.broadcast %cst_130 : f32 to vector<8x256xf32>
    %274 = arith.maximumf %272, %273 : vector<8x256xf32>
    %275 = arith.truncf %274 : vector<8x256xf32> to vector<8x256xbf16>
    %cst_131 = arith.constant dense<0.000000e+00> : vector<8x4xf32>
    %276 = tpu.matmul %275, %2, %cst_131 {dimension_numbers = #tpu.dot_dimension_numbers<[1], [0], [0], [1], [0, 0, 1, 1], [], []>} : vector<8x256xbf16>, vector<256x4xbf16>, vector<8x4xf32> -> vector<8x4xf32>
    %277 = vector.broadcast %3 : vector<1x4xf32> to vector<8x4xf32>
    %278 = arith.addf %276, %277 : vector<8x4xf32>
    %c0_132 = arith.constant 0 : index
    %c88_133 = arith.constant 88 : index
    %279 = vector.load %arg6[%c0_132, %c88_133] : memref<8x128xf32, #tpu.memory_space<vmem>>, vector<8x4xf32>
    tpu.vector_store %arg6[%c0_132, %c88_133], %278 {strides = array<i32>} : memref<8x128xf32, #tpu.memory_space<vmem>>, vector<8x4xf32>,
    %c184 = arith.constant 184 : index
    %c0_134 = arith.constant 0 : index
    %280 = vector.load %arg1[%c184, %c0_134] : memref<256x32xf32, #tpu.memory_space<vmem>>, vector<8x32xf32>
    %281 = arith.truncf %280 : vector<8x32xf32> to vector<8x32xbf16>
    %cst_135 = arith.constant dense<0.000000e+00> : vector<8x256xf32>
    %282 = tpu.matmul %281, %0, %cst_135 {dimension_numbers = #tpu.dot_dimension_numbers<[1], [0], [0], [1], [0, 0, 1, 1], [], []>} : vector<8x32xbf16>, vector<32x256xbf16>, vector<8x256xf32> -> vector<8x256xf32>
    %283 = vector.broadcast %1 : vector<1x256xf32> to vector<8x256xf32>
    %284 = arith.addf %282, %283 : vector<8x256xf32>
    %cst_136 = arith.constant 0.000000e+00 : f32
    %285 = vector.broadcast %cst_136 : f32 to vector<8x256xf32>
    %286 = arith.maximumf %284, %285 : vector<8x256xf32>
    %287 = arith.truncf %286 : vector<8x256xf32> to vector<8x256xbf16>
    %cst_137 = arith.constant dense<0.000000e+00> : vector<8x4xf32>
    %288 = tpu.matmul %287, %2, %cst_137 {dimension_numbers = #tpu.dot_dimension_numbers<[1], [0], [0], [1], [0, 0, 1, 1], [], []>} : vector<8x256xbf16>, vector<256x4xbf16>, vector<8x4xf32> -> vector<8x4xf32>
    %289 = vector.broadcast %3 : vector<1x4xf32> to vector<8x4xf32>
    %290 = arith.addf %288, %289 : vector<8x4xf32>
    %c0_138 = arith.constant 0 : index
    %c92 = arith.constant 92 : index
    %291 = vector.load %arg6[%c0_138, %c92] : memref<8x128xf32, #tpu.memory_space<vmem>>, vector<8x4xf32>
    tpu.vector_store %arg6[%c0_138, %c92], %290 {strides = array<i32>} : memref<8x128xf32, #tpu.memory_space<vmem>>, vector<8x4xf32>,
    %c192 = arith.constant 192 : index
    %c0_139 = arith.constant 0 : index
    %292 = vector.load %arg1[%c192, %c0_139] : memref<256x32xf32, #tpu.memory_space<vmem>>, vector<8x32xf32>
    %293 = arith.truncf %292 : vector<8x32xf32> to vector<8x32xbf16>
    %cst_140 = arith.constant dense<0.000000e+00> : vector<8x256xf32>
    %294 = tpu.matmul %293, %0, %cst_140 {dimension_numbers = #tpu.dot_dimension_numbers<[1], [0], [0], [1], [0, 0, 1, 1], [], []>} : vector<8x32xbf16>, vector<32x256xbf16>, vector<8x256xf32> -> vector<8x256xf32>
    %295 = vector.broadcast %1 : vector<1x256xf32> to vector<8x256xf32>
    %296 = arith.addf %294, %295 : vector<8x256xf32>
    %cst_141 = arith.constant 0.000000e+00 : f32
    %297 = vector.broadcast %cst_141 : f32 to vector<8x256xf32>
    %298 = arith.maximumf %296, %297 : vector<8x256xf32>
    %299 = arith.truncf %298 : vector<8x256xf32> to vector<8x256xbf16>
    %cst_142 = arith.constant dense<0.000000e+00> : vector<8x4xf32>
    %300 = tpu.matmul %299, %2, %cst_142 {dimension_numbers = #tpu.dot_dimension_numbers<[1], [0], [0], [1], [0, 0, 1, 1], [], []>} : vector<8x256xbf16>, vector<256x4xbf16>, vector<8x4xf32> -> vector<8x4xf32>
    %301 = vector.broadcast %3 : vector<1x4xf32> to vector<8x4xf32>
    %302 = arith.addf %300, %301 : vector<8x4xf32>
    %c0_143 = arith.constant 0 : index
    %c96_144 = arith.constant 96 : index
    %303 = vector.load %arg6[%c0_143, %c96_144] : memref<8x128xf32, #tpu.memory_space<vmem>>, vector<8x4xf32>
    tpu.vector_store %arg6[%c0_143, %c96_144], %302 {strides = array<i32>} : memref<8x128xf32, #tpu.memory_space<vmem>>, vector<8x4xf32>,
    %c200 = arith.constant 200 : index
    %c0_145 = arith.constant 0 : index
    %304 = vector.load %arg1[%c200, %c0_145] : memref<256x32xf32, #tpu.memory_space<vmem>>, vector<8x32xf32>
    %305 = arith.truncf %304 : vector<8x32xf32> to vector<8x32xbf16>
    %cst_146 = arith.constant dense<0.000000e+00> : vector<8x256xf32>
    %306 = tpu.matmul %305, %0, %cst_146 {dimension_numbers = #tpu.dot_dimension_numbers<[1], [0], [0], [1], [0, 0, 1, 1], [], []>} : vector<8x32xbf16>, vector<32x256xbf16>, vector<8x256xf32> -> vector<8x256xf32>
    %307 = vector.broadcast %1 : vector<1x256xf32> to vector<8x256xf32>
    %308 = arith.addf %306, %307 : vector<8x256xf32>
    %cst_147 = arith.constant 0.000000e+00 : f32
    %309 = vector.broadcast %cst_147 : f32 to vector<8x256xf32>
    %310 = arith.maximumf %308, %309 : vector<8x256xf32>
    %311 = arith.truncf %310 : vector<8x256xf32> to vector<8x256xbf16>
    %cst_148 = arith.constant dense<0.000000e+00> : vector<8x4xf32>
    %312 = tpu.matmul %311, %2, %cst_148 {dimension_numbers = #tpu.dot_dimension_numbers<[1], [0], [0], [1], [0, 0, 1, 1], [], []>} : vector<8x256xbf16>, vector<256x4xbf16>, vector<8x4xf32> -> vector<8x4xf32>
    %313 = vector.broadcast %3 : vector<1x4xf32> to vector<8x4xf32>
    %314 = arith.addf %312, %313 : vector<8x4xf32>
    %c0_149 = arith.constant 0 : index
    %c100 = arith.constant 100 : index
    %315 = vector.load %arg6[%c0_149, %c100] : memref<8x128xf32, #tpu.memory_space<vmem>>, vector<8x4xf32>
    tpu.vector_store %arg6[%c0_149, %c100], %314 {strides = array<i32>} : memref<8x128xf32, #tpu.memory_space<vmem>>, vector<8x4xf32>,
    %c208 = arith.constant 208 : index
    %c0_150 = arith.constant 0 : index
    %316 = vector.load %arg1[%c208, %c0_150] : memref<256x32xf32, #tpu.memory_space<vmem>>, vector<8x32xf32>
    %317 = arith.truncf %316 : vector<8x32xf32> to vector<8x32xbf16>
    %cst_151 = arith.constant dense<0.000000e+00> : vector<8x256xf32>
    %318 = tpu.matmul %317, %0, %cst_151 {dimension_numbers = #tpu.dot_dimension_numbers<[1], [0], [0], [1], [0, 0, 1, 1], [], []>} : vector<8x32xbf16>, vector<32x256xbf16>, vector<8x256xf32> -> vector<8x256xf32>
    %319 = vector.broadcast %1 : vector<1x256xf32> to vector<8x256xf32>
    %320 = arith.addf %318, %319 : vector<8x256xf32>
    %cst_152 = arith.constant 0.000000e+00 : f32
    %321 = vector.broadcast %cst_152 : f32 to vector<8x256xf32>
    %322 = arith.maximumf %320, %321 : vector<8x256xf32>
    %323 = arith.truncf %322 : vector<8x256xf32> to vector<8x256xbf16>
    %cst_153 = arith.constant dense<0.000000e+00> : vector<8x4xf32>
    %324 = tpu.matmul %323, %2, %cst_153 {dimension_numbers = #tpu.dot_dimension_numbers<[1], [0], [0], [1], [0, 0, 1, 1], [], []>} : vector<8x256xbf16>, vector<256x4xbf16>, vector<8x4xf32> -> vector<8x4xf32>
    %325 = vector.broadcast %3 : vector<1x4xf32> to vector<8x4xf32>
    %326 = arith.addf %324, %325 : vector<8x4xf32>
    %c0_154 = arith.constant 0 : index
    %c104_155 = arith.constant 104 : index
    %327 = vector.load %arg6[%c0_154, %c104_155] : memref<8x128xf32, #tpu.memory_space<vmem>>, vector<8x4xf32>
    tpu.vector_store %arg6[%c0_154, %c104_155], %326 {strides = array<i32>} : memref<8x128xf32, #tpu.memory_space<vmem>>, vector<8x4xf32>,
    %c216 = arith.constant 216 : index
    %c0_156 = arith.constant 0 : index
    %328 = vector.load %arg1[%c216, %c0_156] : memref<256x32xf32, #tpu.memory_space<vmem>>, vector<8x32xf32>
    %329 = arith.truncf %328 : vector<8x32xf32> to vector<8x32xbf16>
    %cst_157 = arith.constant dense<0.000000e+00> : vector<8x256xf32>
    %330 = tpu.matmul %329, %0, %cst_157 {dimension_numbers = #tpu.dot_dimension_numbers<[1], [0], [0], [1], [0, 0, 1, 1], [], []>} : vector<8x32xbf16>, vector<32x256xbf16>, vector<8x256xf32> -> vector<8x256xf32>
    %331 = vector.broadcast %1 : vector<1x256xf32> to vector<8x256xf32>
    %332 = arith.addf %330, %331 : vector<8x256xf32>
    %cst_158 = arith.constant 0.000000e+00 : f32
    %333 = vector.broadcast %cst_158 : f32 to vector<8x256xf32>
    %334 = arith.maximumf %332, %333 : vector<8x256xf32>
    %335 = arith.truncf %334 : vector<8x256xf32> to vector<8x256xbf16>
    %cst_159 = arith.constant dense<0.000000e+00> : vector<8x4xf32>
    %336 = tpu.matmul %335, %2, %cst_159 {dimension_numbers = #tpu.dot_dimension_numbers<[1], [0], [0], [1], [0, 0, 1, 1], [], []>} : vector<8x256xbf16>, vector<256x4xbf16>, vector<8x4xf32> -> vector<8x4xf32>
    %337 = vector.broadcast %3 : vector<1x4xf32> to vector<8x4xf32>
    %338 = arith.addf %336, %337 : vector<8x4xf32>
    %c0_160 = arith.constant 0 : index
    %c108 = arith.constant 108 : index
    %339 = vector.load %arg6[%c0_160, %c108] : memref<8x128xf32, #tpu.memory_space<vmem>>, vector<8x4xf32>
    tpu.vector_store %arg6[%c0_160, %c108], %338 {strides = array<i32>} : memref<8x128xf32, #tpu.memory_space<vmem>>, vector<8x4xf32>,
    %c224 = arith.constant 224 : index
    %c0_161 = arith.constant 0 : index
    %340 = vector.load %arg1[%c224, %c0_161] : memref<256x32xf32, #tpu.memory_space<vmem>>, vector<8x32xf32>
    %341 = arith.truncf %340 : vector<8x32xf32> to vector<8x32xbf16>
    %cst_162 = arith.constant dense<0.000000e+00> : vector<8x256xf32>
    %342 = tpu.matmul %341, %0, %cst_162 {dimension_numbers = #tpu.dot_dimension_numbers<[1], [0], [0], [1], [0, 0, 1, 1], [], []>} : vector<8x32xbf16>, vector<32x256xbf16>, vector<8x256xf32> -> vector<8x256xf32>
    %343 = vector.broadcast %1 : vector<1x256xf32> to vector<8x256xf32>
    %344 = arith.addf %342, %343 : vector<8x256xf32>
    %cst_163 = arith.constant 0.000000e+00 : f32
    %345 = vector.broadcast %cst_163 : f32 to vector<8x256xf32>
    %346 = arith.maximumf %344, %345 : vector<8x256xf32>
    %347 = arith.truncf %346 : vector<8x256xf32> to vector<8x256xbf16>
    %cst_164 = arith.constant dense<0.000000e+00> : vector<8x4xf32>
    %348 = tpu.matmul %347, %2, %cst_164 {dimension_numbers = #tpu.dot_dimension_numbers<[1], [0], [0], [1], [0, 0, 1, 1], [], []>} : vector<8x256xbf16>, vector<256x4xbf16>, vector<8x4xf32> -> vector<8x4xf32>
    %349 = vector.broadcast %3 : vector<1x4xf32> to vector<8x4xf32>
    %350 = arith.addf %348, %349 : vector<8x4xf32>
    %c0_165 = arith.constant 0 : index
    %c112_166 = arith.constant 112 : index
    %351 = vector.load %arg6[%c0_165, %c112_166] : memref<8x128xf32, #tpu.memory_space<vmem>>, vector<8x4xf32>
    tpu.vector_store %arg6[%c0_165, %c112_166], %350 {strides = array<i32>} : memref<8x128xf32, #tpu.memory_space<vmem>>, vector<8x4xf32>,
    %c232 = arith.constant 232 : index
    %c0_167 = arith.constant 0 : index
    %352 = vector.load %arg1[%c232, %c0_167] : memref<256x32xf32, #tpu.memory_space<vmem>>, vector<8x32xf32>
    %353 = arith.truncf %352 : vector<8x32xf32> to vector<8x32xbf16>
    %cst_168 = arith.constant dense<0.000000e+00> : vector<8x256xf32>
    %354 = tpu.matmul %353, %0, %cst_168 {dimension_numbers = #tpu.dot_dimension_numbers<[1], [0], [0], [1], [0, 0, 1, 1], [], []>} : vector<8x32xbf16>, vector<32x256xbf16>, vector<8x256xf32> -> vector<8x256xf32>
    %355 = vector.broadcast %1 : vector<1x256xf32> to vector<8x256xf32>
    %356 = arith.addf %354, %355 : vector<8x256xf32>
    %cst_169 = arith.constant 0.000000e+00 : f32
    %357 = vector.broadcast %cst_169 : f32 to vector<8x256xf32>
    %358 = arith.maximumf %356, %357 : vector<8x256xf32>
    %359 = arith.truncf %358 : vector<8x256xf32> to vector<8x256xbf16>
    %cst_170 = arith.constant dense<0.000000e+00> : vector<8x4xf32>
    %360 = tpu.matmul %359, %2, %cst_170 {dimension_numbers = #tpu.dot_dimension_numbers<[1], [0], [0], [1], [0, 0, 1, 1], [], []>} : vector<8x256xbf16>, vector<256x4xbf16>, vector<8x4xf32> -> vector<8x4xf32>
    %361 = vector.broadcast %3 : vector<1x4xf32> to vector<8x4xf32>
    %362 = arith.addf %360, %361 : vector<8x4xf32>
    %c0_171 = arith.constant 0 : index
    %c116 = arith.constant 116 : index
    %363 = vector.load %arg6[%c0_171, %c116] : memref<8x128xf32, #tpu.memory_space<vmem>>, vector<8x4xf32>
    tpu.vector_store %arg6[%c0_171, %c116], %362 {strides = array<i32>} : memref<8x128xf32, #tpu.memory_space<vmem>>, vector<8x4xf32>,
    %c240 = arith.constant 240 : index
    %c0_172 = arith.constant 0 : index
    %364 = vector.load %arg1[%c240, %c0_172] : memref<256x32xf32, #tpu.memory_space<vmem>>, vector<8x32xf32>
    %365 = arith.truncf %364 : vector<8x32xf32> to vector<8x32xbf16>
    %cst_173 = arith.constant dense<0.000000e+00> : vector<8x256xf32>
    %366 = tpu.matmul %365, %0, %cst_173 {dimension_numbers = #tpu.dot_dimension_numbers<[1], [0], [0], [1], [0, 0, 1, 1], [], []>} : vector<8x32xbf16>, vector<32x256xbf16>, vector<8x256xf32> -> vector<8x256xf32>
    %367 = vector.broadcast %1 : vector<1x256xf32> to vector<8x256xf32>
    %368 = arith.addf %366, %367 : vector<8x256xf32>
    %cst_174 = arith.constant 0.000000e+00 : f32
    %369 = vector.broadcast %cst_174 : f32 to vector<8x256xf32>
    %370 = arith.maximumf %368, %369 : vector<8x256xf32>
    %371 = arith.truncf %370 : vector<8x256xf32> to vector<8x256xbf16>
    %cst_175 = arith.constant dense<0.000000e+00> : vector<8x4xf32>
    %372 = tpu.matmul %371, %2, %cst_175 {dimension_numbers = #tpu.dot_dimension_numbers<[1], [0], [0], [1], [0, 0, 1, 1], [], []>} : vector<8x256xbf16>, vector<256x4xbf16>, vector<8x4xf32> -> vector<8x4xf32>
    %373 = vector.broadcast %3 : vector<1x4xf32> to vector<8x4xf32>
    %374 = arith.addf %372, %373 : vector<8x4xf32>
    %c0_176 = arith.constant 0 : index
    %c120_177 = arith.constant 120 : index
    %375 = vector.load %arg6[%c0_176, %c120_177] : memref<8x128xf32, #tpu.memory_space<vmem>>, vector<8x4xf32>
    tpu.vector_store %arg6[%c0_176, %c120_177], %374 {strides = array<i32>} : memref<8x128xf32, #tpu.memory_space<vmem>>, vector<8x4xf32>,
    %c248 = arith.constant 248 : index
    %c0_178 = arith.constant 0 : index
    %376 = vector.load %arg1[%c248, %c0_178] : memref<256x32xf32, #tpu.memory_space<vmem>>, vector<8x32xf32>
    %377 = arith.truncf %376 : vector<8x32xf32> to vector<8x32xbf16>
    %cst_179 = arith.constant dense<0.000000e+00> : vector<8x256xf32>
    %378 = tpu.matmul %377, %0, %cst_179 {dimension_numbers = #tpu.dot_dimension_numbers<[1], [0], [0], [1], [0, 0, 1, 1], [], []>} : vector<8x32xbf16>, vector<32x256xbf16>, vector<8x256xf32> -> vector<8x256xf32>
    %379 = vector.broadcast %1 : vector<1x256xf32> to vector<8x256xf32>
    %380 = arith.addf %378, %379 : vector<8x256xf32>
    %cst_180 = arith.constant 0.000000e+00 : f32
    %381 = vector.broadcast %cst_180 : f32 to vector<8x256xf32>
    %382 = arith.maximumf %380, %381 : vector<8x256xf32>
    %383 = arith.truncf %382 : vector<8x256xf32> to vector<8x256xbf16>
    %cst_181 = arith.constant dense<0.000000e+00> : vector<8x4xf32>
    %384 = tpu.matmul %383, %2, %cst_181 {dimension_numbers = #tpu.dot_dimension_numbers<[1], [0], [0], [1], [0, 0, 1, 1], [], []>} : vector<8x256xbf16>, vector<256x4xbf16>, vector<8x4xf32> -> vector<8x4xf32>
    %385 = vector.broadcast %3 : vector<1x4xf32> to vector<8x4xf32>
    %386 = arith.addf %384, %385 : vector<8x4xf32>
    %c0_182 = arith.constant 0 : index
    %c124 = arith.constant 124 : index
    %387 = vector.load %arg6[%c0_182, %c124] : memref<8x128xf32, #tpu.memory_space<vmem>>, vector<8x4xf32>
    tpu.vector_store %arg6[%c0_182, %c124], %386 {strides = array<i32>} : memref<8x128xf32, #tpu.memory_space<vmem>>, vector<8x4xf32>,
    return
  }
  func.func @transform_0(%arg0: i32) -> (i32, i32) {
    %c0_i32 = arith.constant 0 : i32
    %c0_i32_0 = arith.constant 0 : i32
    return %arg0, %c0_i32 : i32, i32
  }
  func.func @transform_1(%arg0: i32) -> (i32, i32) {
    %c0_i32 = arith.constant 0 : i32
    %c0_i32_0 = arith.constant 0 : i32
    %c0_i32_1 = arith.constant 0 : i32
    return %c0_i32, %c0_i32_0 : i32, i32
  }
  func.func @transform_2(%arg0: i32) -> (i32, i32) {
    %c0_i32 = arith.constant 0 : i32
    %c0_i32_0 = arith.constant 0 : i32
    %c0_i32_1 = arith.constant 0 : i32
    return %c0_i32, %c0_i32_0 : i32, i32
  }
  func.func @transform_3(%arg0: i32) -> (i32, i32) {
    %c0_i32 = arith.constant 0 : i32
    %c0_i32_0 = arith.constant 0 : i32
    %c0_i32_1 = arith.constant 0 : i32
    return %c0_i32, %c0_i32_0 : i32, i32
  }
  func.func @transform_4(%arg0: i32) -> (i32, i32) {
    %c0_i32 = arith.constant 0 : i32
    %c0_i32_0 = arith.constant 0 : i32
    %c0_i32_1 = arith.constant 0 : i32
    return %c0_i32, %c0_i32_0 : i32, i32
  }
  func.func @transform_5(%arg0: i32) -> (i32, i32) {
    %c0_i32 = arith.constant 0 : i32
    %c0_i32_0 = arith.constant 0 : i32
    return %arg0, %c0_i32 : i32, i32
  }
}

</mosaic_0001>

<bundles_post_ra>
// kernel: tpu_custom_call.1
= control target key start
LH: loop header
LB: loop body
LE: loop exit
PB: predicated region body
PF: predicated region fallthrough
CT: control target
= control target key end

     0   :  { %v4154_v2 = vmov 0   ;;  %vm93_vm0 = vcmask 261120   ;;  %s5447_s0 = inlined_call_operand.vmem [shape: f32[256,32], index: 0, kind: input, shape index: {}]   ;;  %s5448_s1 = inlined_call_operand.vmem [shape: bf16[32,256], index: 1, kind: input, shape index: {}]   ;;  %s5449_s2 = inlined_call_operand.vmem [shape: f32[1,256], index: 2, kind: input, shape index: {}]   ;;  %s5450_s3 = inlined_call_operand.vmem [shape: bf16[256,4], index: 3, kind: input, shape index: {}]   ;;  %s5451_s4 = inlined_call_operand.vmem [shape: f32[1,4], index: 4, kind: input, shape index: {}]   ;;  %s5452_s5 = inlined_call_operand.hbm [shape: f32[8,128], index: 5, kind: output, shape index: {}]  }
   0x1   :  { %v4220_v0 = vld [vmem:[%s5448_s1 + $0x4] ss:$8 sps:$4 sm:$0xff]   ;;  %v4225_v1 = vld [vmem:[%s5448_s1] ss:$8 sps:$4 sm:$0xff]   ;;  %129 = vmatprep.mubr.bf16.mxu1 %v4154_v2  ;;  %323 = vmatprep.mubr.bf16.mxu0 %v4154_v2  ;;  %v4234_v3 = vld [vmem:[%s5448_s1 + $0x14] ss:$8 sps:$4 sm:$0xff]  }
   0x2   :  { %97 = vmatprep.subr.bf16.mxu1 %v4220_v0  ;;  %291 = vmatprep.subr.bf16.mxu0 %v4220_v0  ;;  %v4239_v4 = vld [vmem:[%s5448_s1 + $0x10] ss:$8 sps:$4 sm:$0xff]   ;;  %v60_v5 = vld [vmem:[%s5447_s0] sm:$0xff]  ;;  %v286_v6 = vld [vmem:[%s5447_s0 + $0x8] sm:$0xff] }
   0x3   :  { %98 = vmatpush1.bf16.msra.mxu1 %v4225_v1  ;;  %292 = vmatpush1.bf16.msra.mxu0 %v4225_v1  ;;  %v4254_v7 = vld [vmem:[%s5450_s3 + $0x40] sm:$0xff]   ;;  %v61_v8 = vpack.c.bf16 %v60_v5, %v60_v5  ;;  %v287_v9 = vpack.c.bf16 %v286_v6, %v286_v6  ;;  %v4268_v11 = vld [vmem:[%s5450_s3 + $0x48] sm:$0xff]   ;;  %v4284_v13 = vld [vmem:[%s5450_s3 + $0x50] sm:$0xff]  }
   0x4   :  { %99 = vmatprep.subr.bf16.mxu1 %v4234_v3  ;;  %293 = vmatprep.subr.bf16.mxu0 %v4234_v3  ;;  %v4261_v10 = vld [vmem:[%s5450_s3] sm:$0xff]   ;;  %v4277_v12 = vld [vmem:[%s5450_s3 + $0x8] sm:$0xff]   ;;  %v4291_v14 = vld [vmem:[%s5450_s3 + $0x10] sm:$0xff]  }
   0x5   :  { %v4296_v15 = vld [vmem:[%s5450_s3 + $0x58] sm:$0xff]  }
   0x7   :  { %100 = vmatpush1.bf16.msra.mxu1 %v4239_v4  ;;  %294 = vmatpush1.bf16.msra.mxu0 %v4239_v4 }
   0x8   :  { %3329 = vmatprep.subr.bf16.mxu1 %v4254_v7  ;;  %3351 = vmatprep.subr.bf16.mxu0 %v4254_v7 }
   0xa   :  { %3280 = vmatmul.mubr.msk.bf16.vlgmr.msra.gmra.mrb[0].mxu1 %vm93_vm0, %v61_v8  ;;  %3298 = vmatmul.mubr.msk.bf16.vlgmr.msra.gmra.mrb[0].mxu0 %vm93_vm0, %v287_v9 }
   0xb   :  { %3330 = vmatpush3.bf16.msra.mxu1 %v4261_v10  ;;  %3352 = vmatpush3.bf16.msra.mxu0 %v4261_v10 }
   0xc   :  { %3331 = vmatprep.subr.bf16.mxu1 %v4268_v11  ;;  %3353 = vmatprep.subr.bf16.mxu0 %v4268_v11 }
   0xf   :  { %3332 = vmatpush3.bf16.msra.mxu1 %v4277_v12  ;;  %3354 = vmatpush3.bf16.msra.mxu0 %v4277_v12 }
  0x10   :  { %3333 = vmatprep.subr.bf16.mxu1 %v4284_v13  ;;  %3355 = vmatprep.subr.bf16.mxu0 %v4284_v13 }
  0x11   :  { %10 = vsyncpa [#allocation3], 0  ;;  %v4305_v16 = vld [vmem:[%s5450_s3 + $0x18] sm:$0xff]   ;;  %v4312_v17 = vld [vmem:[%s5450_s3 + $0x60] sm:$0xff]   ;;  %v63_v25 = vlaneseq  ;;  %vm284_vm1 = vcmask 31744   ;;  %s4155_s19 = smov 4  }
  0x12   :  { %v4319_v18 = vld [vmem:[%s5450_s3 + $0x20] sm:$0xff]   ;;  %v4326_v19 = vld [vmem:[%s5450_s3 + $0x68] sm:$0xff]   ;;  %v4342_v21 = vld [vmem:[%s5450_s3 + $0x70] sm:$0xff]   ;;  %vm380_vm2 = vcmask 64544   ;;  %s4156_s24 = smov 12   ;;  %s4157_s25 = smov 8  }
  0x13   :  { %3334 = vmatpush3.bf16.msra.mxu1 %v4291_v14  ;;  %3356 = vmatpush3.bf16.msra.mxu0 %v4291_v14  ;;  %v4333_v20 = vld [vmem:[%s5450_s3 + $0x28] sm:$0xff]   ;;  %v4347_v22 = vld [vmem:[%s5450_s3 + $0x30] sm:$0xff]   ;;  %v4356_v23 = vld [vmem:[%s5450_s3 + $0x78] sm:$0xff]   ;;  %v64_v26 = vshrl.u32 %v63_v25, 7  ;;  %vm476_vm3 = vcmask 97344   ;;  %vm572_vm4 = vcmask 130144  }
  0x14   :  { %3335 = vmatprep.subr.bf16.mxu1 %v4296_v15  ;;  %3357 = vmatprep.subr.bf16.mxu0 %v4296_v15  ;;  %v4361_v24 = vld [vmem:[%s5450_s3 + $0x38] sm:$0xff]   ;;  %v26_v28 = vld [vmem:[%s5449_s2] sm:$0x3]  ;;  %v382_v52 = vld [vmem:[%s5447_s0 + $0x10] sm:$0xff]  ;;  %s4158_s30 = smov 16   ;;  %s4159_s6 = smov 20  }
  0x15   :  { %v65_v27 = vsub.s32 0, %v64_v26  ;;  %v69_v29 = vsub.s32 1, %v64_v26  ;;  %v478_v53 = vld [vmem:[%s5447_s0 + $0x18] sm:$0xff]  ;;  %v383_v54 = vpack.c.bf16 %v382_v52, %v382_v52  ;;  %v4433_v58 = vld [vmem:[%s5451_s4] ss:$0 sm:$0xff]  ;;  %vm668_vm5 = vcmask 162944  }
  0x16   :  { %v479_v55 = vpack.c.bf16 %v478_v53, %v478_v53  ;;  %vm764_vm6 = vcmask 195744   ;;  %s4160_s11 = smov 24   ;;  %s4161_s12 = smov 28   ;;  %vm860_vm7 = vcmask 228544   ;;  %vm956_vm8 = vcmask 261344  }
  0x17   :  { %3336 = vmatpush3.bf16.msra.mxu1 %v4305_v16  ;;  %3358 = vmatpush3.bf16.msra.mxu0 %v4305_v16  ;;  %v4372_v30 = vrot.slane %v26_v28, %v65_v27  ;;  %v4374_v31 = vrot.slane %v26_v28, %v69_v29  ;;  %s4162_s18 = smov 32   ;;  %vm1052_vm9 = vcmask 294144   ;;  %vm1148_vm10 = vcmask 326944   ;;  %s4177_s9 = smov 92  }
  0x18   :  { %3337 = vmatprep.subr.bf16.mxu1 %v4312_v17  ;;  %3359 = vmatprep.subr.bf16.mxu0 %v4312_v17  ;;  %vm1244_vm11 = vcmask 359744   ;;  %vm1340_vm12 = vcmask 392544   ;;  %vm1436_vm13 = vcmask 425344   ;;  %vm1532_vm14 = vcmask 458144   ;;  %s4178_s15 = smov 96   ;;  %s4179_s16 = smov 100  }
  0x19   :  { %vm1628_vm15 = vcmask 490944   ;;  %s4180_s20 = smov 104   ;;  %s4181_s21 = smov 108  }
  0x1a   :  { %s4183_s26 = smov 116   ;;  %s4184_s27 = smov 120  }
  0x1b   :  { %3338 = vmatpush3.bf16.msra.mxu1 %v4319_v18  ;;  %3360 = vmatpush3.bf16.msra.mxu0 %v4319_v18  ;;  %s4185_s28 = smov 124   ;;  %s4186_s29 = smov [#allocation2]  }
  0x1c   :  { %3339 = vmatprep.subr.bf16.mxu1 %v4326_v19  ;;  %3361 = vmatprep.subr.bf16.mxu0 %v4326_v19 }
  0x1f   :  { %3340 = vmatpush3.bf16.msra.mxu1 %v4333_v20  ;;  %3362 = vmatpush3.bf16.msra.mxu0 %v4333_v20 }
  0x20   :  { %3341 = vmatprep.subr.bf16.mxu1 %v4342_v21  ;;  %3363 = vmatprep.subr.bf16.mxu0 %v4342_v21 }
  0x23   :  { %3342 = vmatpush3.bf16.msra.mxu1 %v4347_v22  ;;  %3364 = vmatpush3.bf16.msra.mxu0 %v4347_v22 }
  0x24   :  { %3343 = vmatprep.subr.bf16.mxu1 %v4356_v23  ;;  %3365 = vmatprep.subr.bf16.mxu0 %v4356_v23 }
  0x27   :  { %3344 = vmatpush3.bf16.msra.mxu1 %v4361_v24  ;;  %3366 = vmatpush3.bf16.msra.mxu0 %v4361_v24 }
  0x28   :  { %387 = vmatprep.subr.bf16.mxu1 %v4220_v0  ;;  %483 = vmatprep.subr.bf16.mxu0 %v4220_v0 }
  0xdd   :  { %v131_v32 = vpop.f32.mrb[0].mxu1  ;;  %v325_v33 = vpop.f32.mrb[0].mxu0 }
  0xde   :  { %v132_v34 = vadd.f32 %v131_v32, %v4372_v30  ;;  %v326_v35 = vadd.f32 %v325_v33, %v4372_v30  ;;  %v133_v36 = vpop.f32.mrb[1].mxu1  ;;  %v327_v37 = vpop.f32.mrb[1].mxu0 }
  0xdf   :  { %v134_v38 = vadd.f32 %v133_v36, %v4374_v31  ;;  %v328_v39 = vadd.f32 %v327_v37, %v4374_v31  ;;  %v135_v40 = vpop.f32.mrb[2].mxu1  ;;  %v329_v41 = vpop.f32.mrb[2].mxu0 }
  0xe0   :  { %v138_v42 = vmax.f32 %v132_v34, 0.0  ;;  %v332_v43 = vmax.f32 %v326_v35, 0.0  ;;  %v136_v44 = vpop.f32.mrb[3].mxu1  ;;  %v330_v45 = vpop.f32.mrb[3].mxu0 }
  0xe1   :  { %v139_v46 = vmax.f32 %v134_v38, 0.0  ;;  %v333_v47 = vmax.f32 %v328_v39, 0.0 }
  0xe2   :  { %v334_v48 = vpack.c.bf16 %v332_v43, %v332_v43  ;;  %v140_v51 = vpack.c.bf16 %v138_v42, %v138_v42 }
  0xe3   :  { %v141_v49 = vpack.c.bf16 %v139_v46, %v139_v46  ;;  %v335_v50 = vpack.c.bf16 %v333_v47, %v333_v47 }
  0xe5   :  { %276 = vmatprep.mubr.bf16.mxu1 %v141_v49  ;;  %368 = vmatprep.mubr.bf16.mxu0 %v335_v50  ;;  %v670_v49 = vld [vmem:[%s5447_s0 + $0x28] sm:$0xff] }
  0xe6   :  { %277 = vmatmul.mubr.bf16.vlgmr.msra.gmra.mrb[4].mxu1 %v140_v51  ;;  %369 = vmatmul.mubr.bf16.vlgmr.msra.gmra.mrb[4].mxu0 %v334_v48  ;;  %v574_v48 = vld [vmem:[%s5447_s0 + $0x20] sm:$0xff]  ;;  %v671_v51 = vpack.c.bf16 %v670_v49, %v670_v49 }
  0xe7   :  { %388 = vmatpush1.bf16.msra.mxu1 %v4225_v1  ;;  %484 = vmatpush1.bf16.msra.mxu0 %v4225_v1  ;;  %v575_v50 = vpack.c.bf16 %v574_v48, %v574_v48 }
  0xe8   :  { %389 = vmatprep.subr.bf16.mxu1 %v4234_v3  ;;  %485 = vmatprep.subr.bf16.mxu0 %v4234_v3 }
  0xe9   :  { %419 = vmatprep.mubr.bf16.mxu1 %v4154_v2  ;;  %515 = vmatprep.mubr.bf16.mxu0 %v4154_v2 }
  0xeb   :  { %390 = vmatpush1.bf16.msra.mxu1 %v4239_v4  ;;  %486 = vmatpush1.bf16.msra.mxu0 %v4239_v4 }
  0xec   :  { %3373 = vmatprep.subr.bf16.mxu1 %v4254_v7  ;;  %3395 = vmatprep.subr.bf16.mxu0 %v4254_v7 }
  0xee   :  { %3299 = vmatmul.mubr.msk.bf16.vlgmr.msra.gmra.mrb[8].mxu1 %vm93_vm0, %v383_v54  ;;  %3300 = vmatmul.mubr.msk.bf16.vlgmr.msra.gmra.mrb[8].mxu0 %vm93_vm0, %v479_v55 }
  0xef   :  { %3374 = vmatpush3.bf16.msra.mxu1 %v4261_v10  ;;  %3396 = vmatpush3.bf16.msra.mxu0 %v4261_v10 }
  0xf0   :  { %3375 = vmatprep.subr.bf16.mxu1 %v4268_v11  ;;  %3397 = vmatprep.subr.bf16.mxu0 %v4268_v11 }
  0xf3   :  { %3376 = vmatpush3.bf16.msra.mxu1 %v4277_v12  ;;  %3398 = vmatpush3.bf16.msra.mxu0 %v4277_v12 }
  0xf4   :  { %3377 = vmatprep.subr.bf16.mxu1 %v4284_v13  ;;  %3399 = vmatprep.subr.bf16.mxu0 %v4284_v13 }
  0xf7   :  { %3378 = vmatpush3.bf16.msra.mxu1 %v4291_v14  ;;  %3400 = vmatpush3.bf16.msra.mxu0 %v4291_v14 }
  0xf8   :  { %3379 = vmatprep.subr.bf16.mxu1 %v4296_v15  ;;  %3401 = vmatprep.subr.bf16.mxu0 %v4296_v15 }
  0xfb   :  { %3380 = vmatpush3.bf16.msra.mxu1 %v4305_v16  ;;  %3402 = vmatpush3.bf16.msra.mxu0 %v4305_v16 }
  0xfc   :  { %3381 = vmatprep.subr.bf16.mxu1 %v4312_v17  ;;  %3403 = vmatprep.subr.bf16.mxu0 %v4312_v17 }
  0xff   :  { %3382 = vmatpush3.bf16.msra.mxu1 %v4319_v18  ;;  %3404 = vmatpush3.bf16.msra.mxu0 %v4319_v18 }
 0x100   :  { %3383 = vmatprep.subr.bf16.mxu1 %v4326_v19  ;;  %3405 = vmatprep.subr.bf16.mxu0 %v4326_v19 }
 0x103   :  { %3384 = vmatpush3.bf16.msra.mxu1 %v4333_v20  ;;  %3406 = vmatpush3.bf16.msra.mxu0 %v4333_v20 }
 0x104   :  { %3385 = vmatprep.subr.bf16.mxu1 %v4342_v21  ;;  %3407 = vmatprep.subr.bf16.mxu0 %v4342_v21 }
 0x107   :  { %3386 = vmatpush3.bf16.msra.mxu1 %v4347_v22  ;;  %3408 = vmatpush3.bf16.msra.mxu0 %v4347_v22 }
 0x108   :  { %3387 = vmatprep.subr.bf16.mxu1 %v4356_v23  ;;  %3409 = vmatprep.subr.bf16.mxu0 %v4356_v23 }
 0x10b   :  { %3388 = vmatpush3.bf16.msra.mxu1 %v4361_v24  ;;  %3410 = vmatpush3.bf16.msra.mxu0 %v4361_v24 }
 0x10c   :  { %579 = vmatprep.subr.bf16.mxu1 %v4220_v0  ;;  %675 = vmatprep.subr.bf16.mxu0 %v4220_v0 }
 0x1b9   :  { %v3345_v56 = vpop.f32.mrb[4].mxu1  ;;  %v3367_v57 = vpop.f32.mrb[4].mxu0 }
 0x1ba   :  { %v3346_v59 = vpop.f32.mrb[5].mxu1  ;;  %v3368_v60 = vpop.f32.mrb[5].mxu0 }
 0x1bb   :  { %v3347_v61 = vadd.f32 %v3346_v59, %v3345_v56  ;;  %v3369_v62 = vadd.f32 %v3368_v60, %v3367_v57  ;;  %v3348_v63 = vpop.f32.mrb[6].mxu1  ;;  %v3370_v5 = vpop.f32.mrb[6].mxu0 }
 0x1bc   :  { %v3349_v6 = vpop.f32.mrb[7].mxu1  ;;  %v3371_v8 = vpop.f32.mrb[7].mxu0 }
 0x1bd   :  { %v279_v9 = vadd.f32 %v3347_v61, %v4433_v58  ;;  %v371_v25 = vadd.f32 %v3369_v62, %v4433_v58 }
 0x1bf   :  { %377 = vrot.lane.b32.xlu0 %v371_v25, %s4155_s19  ;;  %285 = vst.msk [vmem:[#allocation2] sm:$0xff] %vm284_vm1, %v279_v9  ;;  %s4163_s19 = smov 36   ;;  %vm1724_vm1 = vcmask 523744  }
 0x1c1   :  { %v421_v26 = vpop.f32.mrb[8].mxu1  ;;  %v517_v27 = vpop.f32.mrb[8].mxu0 }
 0x1c2   :  { %v422_v28 = vadd.f32 %v421_v26, %v4372_v30  ;;  %v518_v29 = vadd.f32 %v517_v27, %v4372_v30  ;;  %v423_v32 = vpop.f32.mrb[9].mxu1  ;;  %v519_v33 = vpop.f32.mrb[9].mxu0 }
 0x1c3   :  { %v424_v34 = vadd.f32 %v423_v32, %v4374_v31  ;;  %v520_v35 = vadd.f32 %v519_v33, %v4374_v31  ;;  %v425_v36 = vpop.f32.mrb[10].mxu1  ;;  %v521_v37 = vpop.f32.mrb[10].mxu0 }
 0x1c4   :  { %v428_v38 = vmax.f32 %v422_v28, 0.0  ;;  %v524_v39 = vmax.f32 %v518_v29, 0.0  ;;  %v426_v40 = vpop.f32.mrb[11].mxu1  ;;  %v522_v41 = vpop.f32.mrb[11].mxu0 }
 0x1c5   :  { %v429_v42 = vmax.f32 %v424_v34, 0.0  ;;  %v525_v43 = vmax.f32 %v520_v35, 0.0 }
 0x1c6   :  { %v526_v44 = vpack.c.bf16 %v524_v39, %v524_v39  ;;  %v430_v47 = vpack.c.bf16 %v428_v38, %v428_v38 }
 0x1c7   :  { %v431_v45 = vpack.c.bf16 %v429_v42, %v429_v42  ;;  %v527_v46 = vpack.c.bf16 %v525_v43, %v525_v43 }
 0x1c9   :  { %464 = vmatprep.mubr.bf16.mxu1 %v431_v45  ;;  %560 = vmatprep.mubr.bf16.mxu0 %v527_v46  ;;  %v766_v45 = vld [vmem:[%s5447_s0 + $0x30] sm:$0xff]  ;;  %v862_v46 = vld [vmem:[%s5447_s0 + $0x38] sm:$0xff] }
 0x1ca   :  { %465 = vmatmul.mubr.bf16.vlgmr.msra.gmra.mrb[12].mxu1 %v430_v47  ;;  %561 = vmatmul.mubr.bf16.vlgmr.msra.gmra.mrb[12].mxu0 %v526_v44  ;;  %v767_v47 = vpack.c.bf16 %v766_v45, %v766_v45  ;;  %v863_v48 = vpack.c.bf16 %v862_v46, %v862_v46 }
 0x1cb   :  { %580 = vmatpush1.bf16.msra.mxu1 %v4225_v1  ;;  %676 = vmatpush1.bf16.msra.mxu0 %v4225_v1 }
 0x1cc   :  { %581 = vmatprep.subr.bf16.mxu1 %v4234_v3  ;;  %677 = vmatprep.subr.bf16.mxu0 %v4234_v3 }
 0x1cd   :  { %611 = vmatprep.mubr.bf16.mxu1 %v4154_v2  ;;  %707 = vmatprep.mubr.bf16.mxu0 %v4154_v2 }
 0x1cf   :  { %582 = vmatpush1.bf16.msra.mxu1 %v4239_v4  ;;  %678 = vmatpush1.bf16.msra.mxu0 %v4239_v4 }
 0x1d0   :  { %3417 = vmatprep.subr.bf16.mxu1 %v4254_v7  ;;  %3439 = vmatprep.subr.bf16.mxu0 %v4254_v7 }
 0x1d2   :  { %3301 = vmatmul.mubr.msk.bf16.vlgmr.msra.gmra.mrb[16].mxu1 %vm93_vm0, %v575_v50  ;;  %3302 = vmatmul.mubr.msk.bf16.vlgmr.msra.gmra.mrb[16].mxu0 %vm93_vm0, %v671_v51 }
 0x1d3   :  { %3418 = vmatpush3.bf16.msra.mxu1 %v4261_v10  ;;  %3440 = vmatpush3.bf16.msra.mxu0 %v4261_v10 }
 0x1d4   :  { %3419 = vmatprep.subr.bf16.mxu1 %v4268_v11  ;;  %3441 = vmatprep.subr.bf16.mxu0 %v4268_v11 }
 0x1d7   :  { %3420 = vmatpush3.bf16.msra.mxu1 %v4277_v12  ;;  %3442 = vmatpush3.bf16.msra.mxu0 %v4277_v12 }
 0x1d8   :  { %3421 = vmatprep.subr.bf16.mxu1 %v4284_v13  ;;  %3443 = vmatprep.subr.bf16.mxu0 %v4284_v13 }
 0x1db   :  { %3422 = vmatpush3.bf16.msra.mxu1 %v4291_v14  ;;  %3444 = vmatpush3.bf16.msra.mxu0 %v4291_v14 }
 0x1dc   :  { %3423 = vmatprep.subr.bf16.mxu1 %v4296_v15  ;;  %3445 = vmatprep.subr.bf16.mxu0 %v4296_v15 }
 0x1df   :  { %3424 = vmatpush3.bf16.msra.mxu1 %v4305_v16  ;;  %3446 = vmatpush3.bf16.msra.mxu0 %v4305_v16 }
 0x1e0   :  { %3425 = vmatprep.subr.bf16.mxu1 %v4312_v17  ;;  %3447 = vmatprep.subr.bf16.mxu0 %v4312_v17 }
 0x1e3   :  { %3426 = vmatpush3.bf16.msra.mxu1 %v4319_v18  ;;  %3448 = vmatpush3.bf16.msra.mxu0 %v4319_v18 }
 0x1e4   :  { %3427 = vmatprep.subr.bf16.mxu1 %v4326_v19  ;;  %3449 = vmatprep.subr.bf16.mxu0 %v4326_v19 }
 0x1e7   :  { %3428 = vmatpush3.bf16.msra.mxu1 %v4333_v20  ;;  %3450 = vmatpush3.bf16.msra.mxu0 %v4333_v20 }
 0x1e8   :  { %3429 = vmatprep.subr.bf16.mxu1 %v4342_v21  ;;  %3451 = vmatprep.subr.bf16.mxu0 %v4342_v21 }
 0x1eb   :  { %3430 = vmatpush3.bf16.msra.mxu1 %v4347_v22  ;;  %3452 = vmatpush3.bf16.msra.mxu0 %v4347_v22 }
 0x1ec   :  { %3431 = vmatprep.subr.bf16.mxu1 %v4356_v23  ;;  %3453 = vmatprep.subr.bf16.mxu0 %v4356_v23 }
 0x1ef   :  { %3432 = vmatpush3.bf16.msra.mxu1 %v4361_v24  ;;  %3454 = vmatpush3.bf16.msra.mxu0 %v4361_v24 }
 0x1f0   :  { %771 = vmatprep.subr.bf16.mxu1 %v4220_v0  ;;  %867 = vmatprep.subr.bf16.mxu0 %v4220_v0 }
 0x231   :  { %v378_v52 = vpop.permute.xlu0 %377 }
 0x232   :  { %381 = vst.msk [vmem:[#allocation2] sm:$0xff] %vm380_vm2, %v378_v52  ;;  %vm1820_vm2 = vcmask 556544  }
 0x29d   :  { %v3389_v53 = vpop.f32.mrb[12].mxu1  ;;  %v3411_v54 = vpop.f32.mrb[12].mxu0 }
 0x29e   :  { %v3390_v55 = vpop.f32.mrb[13].mxu1  ;;  %v3412_v56 = vpop.f32.mrb[13].mxu0 }
 0x29f   :  { %v3391_v57 = vadd.f32 %v3390_v55, %v3389_v53  ;;  %v3413_v59 = vadd.f32 %v3412_v56, %v3411_v54  ;;  %v3392_v60 = vpop.f32.mrb[14].mxu1  ;;  %v3414_v61 = vpop.f32.mrb[14].mxu0 }
 0x2a0   :  { %v3393_v62 = vpop.f32.mrb[15].mxu1  ;;  %v3415_v63 = vpop.f32.mrb[15].mxu0 }
 0x2a1   :  { %v467_v5 = vadd.f32 %v3391_v57, %v4433_v58  ;;  %v563_v6 = vadd.f32 %v3413_v59, %v4433_v58 }
 0x2a3   :  { %569 = vrot.lane.b32.xlu1 %v563_v6, %s4156_s24  ;;  %473 = vrot.lane.b32.xlu0 %v467_v5, %s4157_s25  ;;  %s4168_s24 = smov 56   ;;  %s4169_s25 = smov 60  }
 0x2a5   :  { %v613_v8 = vpop.f32.mrb[16].mxu1  ;;  %v709_v9 = vpop.f32.mrb[16].mxu0 }
 0x2a6   :  { %v614_v25 = vadd.f32 %v613_v8, %v4372_v30  ;;  %v710_v26 = vadd.f32 %v709_v9, %v4372_v30  ;;  %v615_v27 = vpop.f32.mrb[17].mxu1  ;;  %v711_v28 = vpop.f32.mrb[17].mxu0 }
 0x2a7   :  { %v616_v29 = vadd.f32 %v615_v27, %v4374_v31  ;;  %v712_v32 = vadd.f32 %v711_v28, %v4374_v31  ;;  %v617_v33 = vpop.f32.mrb[18].mxu1  ;;  %v713_v34 = vpop.f32.mrb[18].mxu0 }
 0x2a8   :  { %v620_v35 = vmax.f32 %v614_v25, 0.0  ;;  %v716_v36 = vmax.f32 %v710_v26, 0.0  ;;  %v618_v37 = vpop.f32.mrb[19].mxu1  ;;  %v714_v38 = vpop.f32.mrb[19].mxu0 }
 0x2a9   :  { %v621_v39 = vmax.f32 %v616_v29, 0.0  ;;  %v717_v40 = vmax.f32 %v712_v32, 0.0 }
 0x2aa   :  { %v718_v41 = vpack.c.bf16 %v716_v36, %v716_v36  ;;  %v622_v44 = vpack.c.bf16 %v620_v35, %v620_v35 }
 0x2ab   :  { %v623_v42 = vpack.c.bf16 %v621_v39, %v621_v39  ;;  %v719_v43 = vpack.c.bf16 %v717_v40, %v717_v40 }
 0x2ad   :  { %656 = vmatprep.mubr.bf16.mxu1 %v623_v42  ;;  %752 = vmatprep.mubr.bf16.mxu0 %v719_v43  ;;  %v958_v43 = vld [vmem:[%s5447_s0 + $0x40] sm:$0xff] }
 0x2ae   :  { %657 = vmatmul.mubr.bf16.vlgmr.msra.gmra.mrb[20].mxu1 %v622_v44  ;;  %753 = vmatmul.mubr.bf16.vlgmr.msra.gmra.mrb[20].mxu0 %v718_v41  ;;  %v1054_v44 = vld [vmem:[%s5447_s0 + $0x48] sm:$0xff]  ;;  %v959_v45 = vpack.c.bf16 %v958_v43, %v958_v43 }
 0x2af   :  { %772 = vmatpush1.bf16.msra.mxu1 %v4225_v1  ;;  %868 = vmatpush1.bf16.msra.mxu0 %v4225_v1  ;;  %v1055_v46 = vpack.c.bf16 %v1054_v44, %v1054_v44 }
 0x2b0   :  { %773 = vmatprep.subr.bf16.mxu1 %v4234_v3  ;;  %869 = vmatprep.subr.bf16.mxu0 %v4234_v3 }
 0x2b1   :  { %803 = vmatprep.mubr.bf16.mxu1 %v4154_v2  ;;  %899 = vmatprep.mubr.bf16.mxu0 %v4154_v2 }
 0x2b3   :  { %774 = vmatpush1.bf16.msra.mxu1 %v4239_v4  ;;  %870 = vmatpush1.bf16.msra.mxu0 %v4239_v4 }
 0x2b4   :  { %3461 = vmatprep.subr.bf16.mxu1 %v4254_v7  ;;  %3483 = vmatprep.subr.bf16.mxu0 %v4254_v7 }
 0x2b6   :  { %3303 = vmatmul.mubr.msk.bf16.vlgmr.msra.gmra.mrb[24].mxu1 %vm93_vm0, %v767_v47  ;;  %3304 = vmatmul.mubr.msk.bf16.vlgmr.msra.gmra.mrb[24].mxu0 %vm93_vm0, %v863_v48 }
 0x2b7   :  { %3462 = vmatpush3.bf16.msra.mxu1 %v4261_v10  ;;  %3484 = vmatpush3.bf16.msra.mxu0 %v4261_v10 }
 0x2b8   :  { %3463 = vmatprep.subr.bf16.mxu1 %v4268_v11  ;;  %3485 = vmatprep.subr.bf16.mxu0 %v4268_v11 }
 0x2bb   :  { %3464 = vmatpush3.bf16.msra.mxu1 %v4277_v12  ;;  %3486 = vmatpush3.bf16.msra.mxu0 %v4277_v12 }
 0x2bc   :  { %3465 = vmatprep.subr.bf16.mxu1 %v4284_v13  ;;  %3487 = vmatprep.subr.bf16.mxu0 %v4284_v13 }
 0x2bf   :  { %3466 = vmatpush3.bf16.msra.mxu1 %v4291_v14  ;;  %3488 = vmatpush3.bf16.msra.mxu0 %v4291_v14 }
 0x2c0   :  { %3467 = vmatprep.subr.bf16.mxu1 %v4296_v15  ;;  %3489 = vmatprep.subr.bf16.mxu0 %v4296_v15 }
 0x2c3   :  { %3468 = vmatpush3.bf16.msra.mxu1 %v4305_v16  ;;  %3490 = vmatpush3.bf16.msra.mxu0 %v4305_v16 }
 0x2c4   :  { %3469 = vmatprep.subr.bf16.mxu1 %v4312_v17  ;;  %3491 = vmatprep.subr.bf16.mxu0 %v4312_v17 }
 0x2c7   :  { %3470 = vmatpush3.bf16.msra.mxu1 %v4319_v18  ;;  %3492 = vmatpush3.bf16.msra.mxu0 %v4319_v18 }
 0x2c8   :  { %3471 = vmatprep.subr.bf16.mxu1 %v4326_v19  ;;  %3493 = vmatprep.subr.bf16.mxu0 %v4326_v19 }
 0x2cb   :  { %3472 = vmatpush3.bf16.msra.mxu1 %v4333_v20  ;;  %3494 = vmatpush3.bf16.msra.mxu0 %v4333_v20 }
 0x2cc   :  { %3473 = vmatprep.subr.bf16.mxu1 %v4342_v21  ;;  %3495 = vmatprep.subr.bf16.mxu0 %v4342_v21 }
 0x2cf   :  { %3474 = vmatpush3.bf16.msra.mxu1 %v4347_v22  ;;  %3496 = vmatpush3.bf16.msra.mxu0 %v4347_v22 }
 0x2d0   :  { %3475 = vmatprep.subr.bf16.mxu1 %v4356_v23  ;;  %3497 = vmatprep.subr.bf16.mxu0 %v4356_v23 }
 0x2d3   :  { %3476 = vmatpush3.bf16.msra.mxu1 %v4361_v24  ;;  %3498 = vmatpush3.bf16.msra.mxu0 %v4361_v24 }
 0x2d4   :  { %963 = vmatprep.subr.bf16.mxu1 %v4220_v0  ;;  %1059 = vmatprep.subr.bf16.mxu0 %v4220_v0 }
 0x315   :  { %v570_v49 = vpop.permute.xlu1 %569  ;;  %v474_v50 = vpop.permute.xlu0 %473 }
 0x316   :  { %477 = vst.msk [vmem:[#allocation2] sm:$0xff] %vm476_vm3, %v474_v50  ;;  %vm1916_vm3 = vcmask 589344  }
 0x317   :  { %573 = vst.msk [vmem:[#allocation2] sm:$0xff] %vm572_vm4, %v570_v49  ;;  %vm2012_vm4 = vcmask 622144  }
 0x381   :  { %v3433_v51 = vpop.f32.mrb[20].mxu1  ;;  %v3455_v52 = vpop.f32.mrb[20].mxu0 }
 0x382   :  { %v3434_v53 = vpop.f32.mrb[21].mxu1  ;;  %v3456_v54 = vpop.f32.mrb[21].mxu0 }
 0x383   :  { %v3435_v55 = vadd.f32 %v3434_v53, %v3433_v51  ;;  %v3457_v56 = vadd.f32 %v3456_v54, %v3455_v52  ;;  %v3436_v57 = vpop.f32.mrb[22].mxu1  ;;  %v3458_v59 = vpop.f32.mrb[22].mxu0 }
 0x384   :  { %v3437_v60 = vpop.f32.mrb[23].mxu1  ;;  %v3459_v61 = vpop.f32.mrb[23].mxu0 }
 0x385   :  { %v659_v62 = vadd.f32 %v3435_v55, %v4433_v58  ;;  %v755_v63 = vadd.f32 %v3457_v56, %v4433_v58 }
 0x387   :  { %665 = vrot.lane.b32.xlu1 %v659_v62, %s4158_s30  ;;  %761 = vrot.lane.b32.xlu0 %v755_v63, %s4159_s6  ;;  %s4170_s30 = smov 64   ;;  %s4171_s6 = smov 68  }
 0x389   :  { %v805_v5 = vpop.f32.mrb[24].mxu1  ;;  %v901_v6 = vpop.f32.mrb[24].mxu0 }
 0x38a   :  { %v806_v8 = vadd.f32 %v805_v5, %v4372_v30  ;;  %v902_v9 = vadd.f32 %v901_v6, %v4372_v30  ;;  %v807_v25 = vpop.f32.mrb[25].mxu1  ;;  %v903_v26 = vpop.f32.mrb[25].mxu0 }
 0x38b   :  { %v808_v27 = vadd.f32 %v807_v25, %v4374_v31  ;;  %v904_v28 = vadd.f32 %v903_v26, %v4374_v31  ;;  %v809_v29 = vpop.f32.mrb[26].mxu1  ;;  %v905_v32 = vpop.f32.mrb[26].mxu0 }
 0x38c   :  { %v812_v33 = vmax.f32 %v806_v8, 0.0  ;;  %v908_v34 = vmax.f32 %v902_v9, 0.0  ;;  %v810_v35 = vpop.f32.mrb[27].mxu1  ;;  %v906_v36 = vpop.f32.mrb[27].mxu0 }
 0x38d   :  { %v813_v37 = vmax.f32 %v808_v27, 0.0  ;;  %v909_v38 = vmax.f32 %v904_v28, 0.0 }
 0x38e   :  { %v910_v39 = vpack.c.bf16 %v908_v34, %v908_v34  ;;  %v814_v42 = vpack.c.bf16 %v812_v33, %v812_v33 }
 0x38f   :  { %v815_v40 = vpack.c.bf16 %v813_v37, %v813_v37  ;;  %v911_v41 = vpack.c.bf16 %v909_v38, %v909_v38 }
 0x391   :  { %848 = vmatprep.mubr.bf16.mxu1 %v815_v40  ;;  %944 = vmatprep.mubr.bf16.mxu0 %v911_v41  ;;  %v1150_v40 = vld [vmem:[%s5447_s0 + $0x50] sm:$0xff]  ;;  %v1246_v41 = vld [vmem:[%s5447_s0 + $0x58] sm:$0xff] }
 0x392   :  { %849 = vmatmul.mubr.bf16.vlgmr.msra.gmra.mrb[28].mxu1 %v814_v42  ;;  %945 = vmatmul.mubr.bf16.vlgmr.msra.gmra.mrb[28].mxu0 %v910_v39  ;;  %v1151_v42 = vpack.c.bf16 %v1150_v40, %v1150_v40  ;;  %v1247_v43 = vpack.c.bf16 %v1246_v41, %v1246_v41  ;;  %v4802_v40 = vld [vmem:[%s5450_s3 + $0x78] sm:$0xff]  }
 0x393   :  { %964 = vmatpush1.bf16.msra.mxu1 %v4225_v1  ;;  %1060 = vmatpush1.bf16.msra.mxu0 %v4225_v1  ;;  %v4809_v41 = vld [vmem:[%s5450_s3 + $0x38] sm:$0xff]  }
 0x394   :  { %965 = vmatprep.subr.bf16.mxu1 %v4234_v3  ;;  %1061 = vmatprep.subr.bf16.mxu0 %v4234_v3 }
 0x395   :  { %995 = vmatprep.mubr.bf16.mxu1 %v4154_v2  ;;  %1091 = vmatprep.mubr.bf16.mxu0 %v4154_v2 }
 0x397   :  { %966 = vmatpush1.bf16.msra.mxu1 %v4239_v4  ;;  %1062 = vmatpush1.bf16.msra.mxu0 %v4239_v4 }
 0x398   :  { %3505 = vmatprep.subr.bf16.mxu1 %v4254_v7  ;;  %3527 = vmatprep.subr.bf16.mxu0 %v4254_v7 }
 0x39a   :  { %3305 = vmatmul.mubr.msk.bf16.vlgmr.msra.gmra.mrb[32].mxu1 %vm93_vm0, %v959_v45  ;;  %3306 = vmatmul.mubr.msk.bf16.vlgmr.msra.gmra.mrb[32].mxu0 %vm93_vm0, %v1055_v46 }
 0x39b   :  { %3506 = vmatpush3.bf16.msra.mxu1 %v4261_v10  ;;  %3528 = vmatpush3.bf16.msra.mxu0 %v4261_v10 }
 0x39c   :  { %3507 = vmatprep.subr.bf16.mxu1 %v4268_v11  ;;  %3529 = vmatprep.subr.bf16.mxu0 %v4268_v11 }
 0x39f   :  { %3508 = vmatpush3.bf16.msra.mxu1 %v4277_v12  ;;  %3530 = vmatpush3.bf16.msra.mxu0 %v4277_v12 }
 0x3a0   :  { %3509 = vmatprep.subr.bf16.mxu1 %v4284_v13  ;;  %3531 = vmatprep.subr.bf16.mxu0 %v4284_v13 }
 0x3a3   :  { %3510 = vmatpush3.bf16.msra.mxu1 %v4291_v14  ;;  %3532 = vmatpush3.bf16.msra.mxu0 %v4291_v14 }
 0x3a4   :  { %3511 = vmatprep.subr.bf16.mxu1 %v4296_v15  ;;  %3533 = vmatprep.subr.bf16.mxu0 %v4296_v15 }
 0x3a7   :  { %3512 = vmatpush3.bf16.msra.mxu1 %v4305_v16  ;;  %3534 = vmatpush3.bf16.msra.mxu0 %v4305_v16 }
 0x3a8   :  { %3513 = vmatprep.subr.bf16.mxu1 %v4312_v17  ;;  %3535 = vmatprep.subr.bf16.mxu0 %v4312_v17 }
 0x3ab   :  { %3514 = vmatpush3.bf16.msra.mxu1 %v4319_v18  ;;  %3536 = vmatpush3.bf16.msra.mxu0 %v4319_v18 }
 0x3ac   :  { %3515 = vmatprep.subr.bf16.mxu1 %v4326_v19  ;;  %3537 = vmatprep.subr.bf16.mxu0 %v4326_v19 }
 0x3af   :  { %3516 = vmatpush3.bf16.msra.mxu1 %v4333_v20  ;;  %3538 = vmatpush3.bf16.msra.mxu0 %v4333_v20 }
 0x3b0   :  { %3517 = vmatprep.subr.bf16.mxu1 %v4342_v21  ;;  %3539 = vmatprep.subr.bf16.mxu0 %v4342_v21 }
 0x3b3   :  { %3518 = vmatpush3.bf16.msra.mxu1 %v4347_v22  ;;  %3540 = vmatpush3.bf16.msra.mxu0 %v4347_v22 }
 0x3b4   :  { %3519 = vmatprep.subr.bf16.mxu1 %v4356_v23  ;;  %3541 = vmatprep.subr.bf16.mxu0 %v4356_v23 }
 0x3b7   :  { %3520 = vmatpush3.bf16.msra.mxu1 %v4361_v24  ;;  %3542 = vmatpush3.bf16.msra.mxu0 %v4361_v24 }
 0x3b8   :  { %1155 = vmatprep.subr.bf16.mxu1 %v4220_v0  ;;  %1251 = vmatprep.subr.bf16.mxu0 %v4220_v0 }
 0x3f9   :  { %v666_v47 = vpop.permute.xlu1 %665  ;;  %v762_v48 = vpop.permute.xlu0 %761 }
 0x3fa   :  { %669 = vst.msk [vmem:[#allocation2] sm:$0xff] %vm668_vm5, %v666_v47  ;;  %vm2108_vm5 = vcmask 654944  }
 0x3fb   :  { %765 = vst.msk [vmem:[#allocation2] sm:$0xff] %vm764_vm6, %v762_v48  ;;  %vm2204_vm6 = vcmask 687744  }
 0x465   :  { %v3477_v49 = vpop.f32.mrb[28].mxu1  ;;  %v3499_v50 = vpop.f32.mrb[28].mxu0 }
 0x466   :  { %v3478_v51 = vpop.f32.mrb[29].mxu1  ;;  %v3500_v52 = vpop.f32.mrb[29].mxu0 }
 0x467   :  { %v3479_v53 = vadd.f32 %v3478_v51, %v3477_v49  ;;  %v3501_v54 = vadd.f32 %v3500_v52, %v3499_v50  ;;  %v3480_v55 = vpop.f32.mrb[30].mxu1  ;;  %v3502_v56 = vpop.f32.mrb[30].mxu0 }
 0x468   :  { %v3481_v57 = vpop.f32.mrb[31].mxu1  ;;  %v3503_v59 = vpop.f32.mrb[31].mxu0 }
 0x469   :  { %v851_v60 = vadd.f32 %v3479_v53, %v4433_v58  ;;  %v947_v0 = vadd.f32 %v3501_v54, %v4433_v58 }
 0x46b   :  { %857 = vrot.lane.b32.xlu1 %v851_v60, %s4160_s11  ;;  %953 = vrot.lane.b32.xlu0 %v947_v0, %s4161_s12  ;;  %v4673_v0 = vld [vmem:[%s5448_s1] ss:$8 sps:$4 sm:$0xff]   ;;  %s4164_s11 = smov 40   ;;  %s4165_s12 = smov 44  }
 0x46d   :  { %v997_v61 = vpop.f32.mrb[32].mxu1  ;;  %v1093_v62 = vpop.f32.mrb[32].mxu0 }
 0x46e   :  { %v998_v63 = vadd.f32 %v997_v61, %v4372_v30  ;;  %v1094_v5 = vadd.f32 %v1093_v62, %v4372_v30  ;;  %v999_v6 = vpop.f32.mrb[33].mxu1  ;;  %v1095_v8 = vpop.f32.mrb[33].mxu0  ;;  %v1342_v61 = vld [vmem:[%s5447_s0 + $0x60] sm:$0xff]  ;;  %v1438_v62 = vld [vmem:[%s5447_s0 + $0x68] sm:$0xff] }
 0x46f   :  { %v1000_v9 = vadd.f32 %v999_v6, %v4374_v31  ;;  %v1096_v25 = vadd.f32 %v1095_v8, %v4374_v31  ;;  %v1001_v26 = vpop.f32.mrb[34].mxu1  ;;  %v1097_v27 = vpop.f32.mrb[34].mxu0  ;;  %v1439_v6 = vpack.c.bf16 %v1438_v62, %v1438_v62  ;;  %v4695_v8 = vld [vmem:[%s5448_s1 + $0x10] ss:$8 sps:$4 sm:$0xff]  }
 0x470   :  { %v1004_v28 = vmax.f32 %v998_v63, 0.0  ;;  %v1100_v29 = vmax.f32 %v1094_v5, 0.0  ;;  %v1002_v32 = vpop.f32.mrb[35].mxu1  ;;  %v1098_v33 = vpop.f32.mrb[35].mxu0  ;;  %v4686_v63 = vld [vmem:[%s5448_s1 + $0x14] ss:$8 sps:$4 sm:$0xff]   ;;  %v1343_v5 = vpack.c.bf16 %v1342_v61, %v1342_v61 }
 0x471   :  { %v1005_v34 = vmax.f32 %v1000_v9, 0.0  ;;  %v1101_v35 = vmax.f32 %v1096_v25, 0.0  ;;  %v4702_v9 = vld [vmem:[%s5450_s3 + $0x40] sm:$0xff]   ;;  %v4718_v26 = vld [vmem:[%s5450_s3 + $0x48] sm:$0xff]   ;;  %v4746_v32 = vld [vmem:[%s5450_s3 + $0x58] sm:$0xff]  }
 0x472   :  { %v1102_v36 = vpack.c.bf16 %v1100_v29, %v1100_v29  ;;  %v1006_v39 = vpack.c.bf16 %v1004_v28, %v1004_v28  ;;  %v4711_v25 = vld [vmem:[%s5450_s3] sm:$0xff]   ;;  %v4725_v27 = vld [vmem:[%s5450_s3 + $0x8] sm:$0xff]   ;;  %v4732_v28 = vld [vmem:[%s5450_s3 + $0x50] sm:$0xff]  }
 0x473   :  { %v1007_v37 = vpack.c.bf16 %v1005_v34, %v1005_v34  ;;  %v1103_v38 = vpack.c.bf16 %v1101_v35, %v1101_v35  ;;  %v4739_v29 = vld [vmem:[%s5450_s3 + $0x10] sm:$0xff]   ;;  %v4753_v33 = vld [vmem:[%s5450_s3 + $0x18] sm:$0xff]   ;;  %v4760_v34 = vld [vmem:[%s5450_s3 + $0x60] sm:$0xff]  }
 0x474   :  { %v4767_v35 = vld [vmem:[%s5450_s3 + $0x20] sm:$0xff]  }
 0x475   :  { %1040 = vmatprep.mubr.bf16.mxu1 %v1007_v37  ;;  %1136 = vmatprep.mubr.bf16.mxu0 %v1103_v38  ;;  %v4781_v37 = vld [vmem:[%s5450_s3 + $0x28] sm:$0xff]   ;;  %v4788_v38 = vld [vmem:[%s5450_s3 + $0x70] sm:$0xff]  }
 0x476   :  { %1041 = vmatmul.mubr.bf16.vlgmr.msra.gmra.mrb[36].mxu1 %v1006_v39  ;;  %1137 = vmatmul.mubr.bf16.vlgmr.msra.gmra.mrb[36].mxu0 %v1102_v36  ;;  %v4774_v36 = vld [vmem:[%s5450_s3 + $0x68] sm:$0xff]   ;;  %v4795_v39 = vld [vmem:[%s5450_s3 + $0x30] sm:$0xff]  }
 0x477   :  { %1156 = vmatpush1.bf16.msra.mxu1 %v4225_v1  ;;  %1252 = vmatpush1.bf16.msra.mxu0 %v4225_v1  ;;  %v4660_v1 = vld [vmem:[%s5448_s1 + $0x4] ss:$8 sps:$4 sm:$0xff]  }
 0x478   :  { %1157 = vmatprep.subr.bf16.mxu1 %v4234_v3  ;;  %1253 = vmatprep.subr.bf16.mxu0 %v4234_v3 }
 0x479   :  { %1187 = vmatprep.mubr.bf16.mxu1 %v4154_v2  ;;  %1283 = vmatprep.mubr.bf16.mxu0 %v4154_v2 }
 0x47b   :  { %1158 = vmatpush1.bf16.msra.mxu1 %v4239_v4  ;;  %1254 = vmatpush1.bf16.msra.mxu0 %v4239_v4 }
 0x47c   :  { %3549 = vmatprep.subr.bf16.mxu1 %v4254_v7  ;;  %3571 = vmatprep.subr.bf16.mxu0 %v4254_v7 }
 0x47e   :  { %3307 = vmatmul.mubr.msk.bf16.vlgmr.msra.gmra.mrb[40].mxu1 %vm93_vm0, %v1151_v42  ;;  %3308 = vmatmul.mubr.msk.bf16.vlgmr.msra.gmra.mrb[40].mxu0 %vm93_vm0, %v1247_v43 }
 0x47f   :  { %3550 = vmatpush3.bf16.msra.mxu1 %v4261_v10  ;;  %3572 = vmatpush3.bf16.msra.mxu0 %v4261_v10 }
 0x480   :  { %3551 = vmatprep.subr.bf16.mxu1 %v4268_v11  ;;  %3573 = vmatprep.subr.bf16.mxu0 %v4268_v11 }
 0x483   :  { %3552 = vmatpush3.bf16.msra.mxu1 %v4277_v12  ;;  %3574 = vmatpush3.bf16.msra.mxu0 %v4277_v12 }
 0x484   :  { %3553 = vmatprep.subr.bf16.mxu1 %v4284_v13  ;;  %3575 = vmatprep.subr.bf16.mxu0 %v4284_v13 }
 0x487   :  { %3554 = vmatpush3.bf16.msra.mxu1 %v4291_v14  ;;  %3576 = vmatpush3.bf16.msra.mxu0 %v4291_v14 }
 0x488   :  { %3555 = vmatprep.subr.bf16.mxu1 %v4296_v15  ;;  %3577 = vmatprep.subr.bf16.mxu0 %v4296_v15 }
 0x48b   :  { %3556 = vmatpush3.bf16.msra.mxu1 %v4305_v16  ;;  %3578 = vmatpush3.bf16.msra.mxu0 %v4305_v16 }
 0x48c   :  { %3557 = vmatprep.subr.bf16.mxu1 %v4312_v17  ;;  %3579 = vmatprep.subr.bf16.mxu0 %v4312_v17 }
 0x48f   :  { %3558 = vmatpush3.bf16.msra.mxu1 %v4319_v18  ;;  %3580 = vmatpush3.bf16.msra.mxu0 %v4319_v18 }
 0x490   :  { %3559 = vmatprep.subr.bf16.mxu1 %v4326_v19  ;;  %3581 = vmatprep.subr.bf16.mxu0 %v4326_v19 }
 0x493   :  { %3560 = vmatpush3.bf16.msra.mxu1 %v4333_v20  ;;  %3582 = vmatpush3.bf16.msra.mxu0 %v4333_v20 }
 0x494   :  { %3561 = vmatprep.subr.bf16.mxu1 %v4342_v21  ;;  %3583 = vmatprep.subr.bf16.mxu0 %v4342_v21 }
 0x497   :  { %3562 = vmatpush3.bf16.msra.mxu1 %v4347_v22  ;;  %3584 = vmatpush3.bf16.msra.mxu0 %v4347_v22 }
 0x498   :  { %3563 = vmatprep.subr.bf16.mxu1 %v4356_v23  ;;  %3585 = vmatprep.subr.bf16.mxu0 %v4356_v23 }
 0x49b   :  { %3564 = vmatpush3.bf16.msra.mxu1 %v4361_v24  ;;  %3586 = vmatpush3.bf16.msra.mxu0 %v4361_v24 }
 0x49c   :  { %1347 = vmatprep.subr.bf16.mxu1 %v4660_v1  ;;  %1443 = vmatprep.subr.bf16.mxu0 %v4660_v1 }
 0x4dd   :  { %v858_v3 = vpop.permute.xlu1 %857  ;;  %v954_v4 = vpop.permute.xlu0 %953 }
 0x4de   :  { %861 = vst.msk [vmem:[#allocation2] sm:$0xff] %vm860_vm7, %v858_v3  ;;  %vm2300_vm7 = vcmask 720544  }
 0x4df   :  { %957 = vst.msk [vmem:[#allocation2] sm:$0xff] %vm956_vm8, %v954_v4  ;;  %vm2396_vm8 = vcmask 753344  }
 0x549   :  { %v3521_v7 = vpop.f32.mrb[36].mxu1  ;;  %v3543_v10 = vpop.f32.mrb[36].mxu0 }
 0x54a   :  { %v3522_v11 = vpop.f32.mrb[37].mxu1  ;;  %v3544_v12 = vpop.f32.mrb[37].mxu0 }
 0x54b   :  { %v3523_v13 = vadd.f32 %v3522_v11, %v3521_v7  ;;  %v3545_v14 = vadd.f32 %v3544_v12, %v3543_v10  ;;  %v3524_v15 = vpop.f32.mrb[38].mxu1  ;;  %v3546_v16 = vpop.f32.mrb[38].mxu0 }
 0x54c   :  { %v3525_v17 = vpop.f32.mrb[39].mxu1  ;;  %v3547_v18 = vpop.f32.mrb[39].mxu0 }
 0x54d   :  { %v1043_v19 = vadd.f32 %v3523_v13, %v4433_v58  ;;  %v1139_v20 = vadd.f32 %v3545_v14, %v4433_v58 }
 0x54f   :  { %1049 = vrot.lane.b32.xlu1 %v1043_v19, %s4162_s18  ;;  %1145 = vrot.lane.b32.xlu0 %v1139_v20, %s4163_s19  ;;  %s4166_s18 = smov 48   ;;  %s4167_s19 = smov 52  }
 0x551   :  { %v1189_v21 = vpop.f32.mrb[40].mxu1  ;;  %v1285_v22 = vpop.f32.mrb[40].mxu0 }
 0x552   :  { %v1190_v23 = vadd.f32 %v1189_v21, %v4372_v30  ;;  %v1286_v24 = vadd.f32 %v1285_v22, %v4372_v30  ;;  %v1191_v44 = vpop.f32.mrb[41].mxu1  ;;  %v1287_v45 = vpop.f32.mrb[41].mxu0 }
 0x553   :  { %v1192_v46 = vadd.f32 %v1191_v44, %v4374_v31  ;;  %v1288_v47 = vadd.f32 %v1287_v45, %v4374_v31  ;;  %v1193_v48 = vpop.f32.mrb[42].mxu1  ;;  %v1289_v49 = vpop.f32.mrb[42].mxu0 }
 0x554   :  { %v1196_v50 = vmax.f32 %v1190_v23, 0.0  ;;  %v1292_v51 = vmax.f32 %v1286_v24, 0.0  ;;  %v1194_v52 = vpop.f32.mrb[43].mxu1  ;;  %v1290_v53 = vpop.f32.mrb[43].mxu0 }
 0x555   :  { %v1197_v54 = vmax.f32 %v1192_v46, 0.0  ;;  %v1293_v55 = vmax.f32 %v1288_v47, 0.0 }
 0x556   :  { %v1294_v56 = vpack.c.bf16 %v1292_v51, %v1292_v51  ;;  %v1198_v60 = vpack.c.bf16 %v1196_v50, %v1196_v50 }
 0x557   :  { %v1199_v57 = vpack.c.bf16 %v1197_v54, %v1197_v54  ;;  %v1295_v59 = vpack.c.bf16 %v1293_v55, %v1293_v55 }
 0x559   :  { %1232 = vmatprep.mubr.bf16.mxu1 %v1199_v57  ;;  %1328 = vmatprep.mubr.bf16.mxu0 %v1295_v59  ;;  %v1534_v57 = vld [vmem:[%s5447_s0 + $0x70] sm:$0xff]  ;;  %v1630_v59 = vld [vmem:[%s5447_s0 + $0x78] sm:$0xff] }
 0x55a   :  { %1233 = vmatmul.mubr.bf16.vlgmr.msra.gmra.mrb[44].mxu1 %v1198_v60  ;;  %1329 = vmatmul.mubr.bf16.vlgmr.msra.gmra.mrb[44].mxu0 %v1294_v56  ;;  %v1535_v60 = vpack.c.bf16 %v1534_v57, %v1534_v57  ;;  %v1631_v61 = vpack.c.bf16 %v1630_v59, %v1630_v59 }
 0x55b   :  { %1348 = vmatpush1.bf16.msra.mxu1 %v4673_v0  ;;  %1444 = vmatpush1.bf16.msra.mxu0 %v4673_v0 }
 0x55c   :  { %1349 = vmatprep.subr.bf16.mxu1 %v4686_v63  ;;  %1445 = vmatprep.subr.bf16.mxu0 %v4686_v63 }
 0x55d   :  { %1379 = vmatprep.mubr.bf16.mxu1 %v4154_v2  ;;  %1475 = vmatprep.mubr.bf16.mxu0 %v4154_v2 }
 0x55f   :  { %1350 = vmatpush1.bf16.msra.mxu1 %v4695_v8  ;;  %1446 = vmatpush1.bf16.msra.mxu0 %v4695_v8 }
 0x560   :  { %3593 = vmatprep.subr.bf16.mxu1 %v4702_v9  ;;  %3615 = vmatprep.subr.bf16.mxu0 %v4702_v9 }
 0x562   :  { %3309 = vmatmul.mubr.msk.bf16.vlgmr.msra.gmra.mrb[48].mxu1 %vm93_vm0, %v1343_v5  ;;  %3310 = vmatmul.mubr.msk.bf16.vlgmr.msra.gmra.mrb[48].mxu0 %vm93_vm0, %v1439_v6 }
 0x563   :  { %3594 = vmatpush3.bf16.msra.mxu1 %v4711_v25  ;;  %3616 = vmatpush3.bf16.msra.mxu0 %v4711_v25 }
 0x564   :  { %3595 = vmatprep.subr.bf16.mxu1 %v4718_v26  ;;  %3617 = vmatprep.subr.bf16.mxu0 %v4718_v26 }
 0x567   :  { %3596 = vmatpush3.bf16.msra.mxu1 %v4725_v27  ;;  %3618 = vmatpush3.bf16.msra.mxu0 %v4725_v27 }
 0x568   :  { %3597 = vmatprep.subr.bf16.mxu1 %v4732_v28  ;;  %3619 = vmatprep.subr.bf16.mxu0 %v4732_v28 }
 0x56b   :  { %3598 = vmatpush3.bf16.msra.mxu1 %v4739_v29  ;;  %3620 = vmatpush3.bf16.msra.mxu0 %v4739_v29 }
 0x56c   :  { %3599 = vmatprep.subr.bf16.mxu1 %v4746_v32  ;;  %3621 = vmatprep.subr.bf16.mxu0 %v4746_v32 }
 0x56f   :  { %3600 = vmatpush3.bf16.msra.mxu1 %v4753_v33  ;;  %3622 = vmatpush3.bf16.msra.mxu0 %v4753_v33 }
 0x570   :  { %3601 = vmatprep.subr.bf16.mxu1 %v4760_v34  ;;  %3623 = vmatprep.subr.bf16.mxu0 %v4760_v34 }
 0x573   :  { %3602 = vmatpush3.bf16.msra.mxu1 %v4767_v35  ;;  %3624 = vmatpush3.bf16.msra.mxu0 %v4767_v35 }
 0x574   :  { %3603 = vmatprep.subr.bf16.mxu1 %v4774_v36  ;;  %3625 = vmatprep.subr.bf16.mxu0 %v4774_v36 }
 0x577   :  { %3604 = vmatpush3.bf16.msra.mxu1 %v4781_v37  ;;  %3626 = vmatpush3.bf16.msra.mxu0 %v4781_v37 }
 0x578   :  { %3605 = vmatprep.subr.bf16.mxu1 %v4788_v38  ;;  %3627 = vmatprep.subr.bf16.mxu0 %v4788_v38 }
 0x57b   :  { %3606 = vmatpush3.bf16.msra.mxu1 %v4795_v39  ;;  %3628 = vmatpush3.bf16.msra.mxu0 %v4795_v39 }
 0x57c   :  { %3607 = vmatprep.subr.bf16.mxu1 %v4802_v40  ;;  %3629 = vmatprep.subr.bf16.mxu0 %v4802_v40 }
 0x57f   :  { %3608 = vmatpush3.bf16.msra.mxu1 %v4809_v41  ;;  %3630 = vmatpush3.bf16.msra.mxu0 %v4809_v41 }
 0x580   :  { %1539 = vmatprep.subr.bf16.mxu1 %v4660_v1  ;;  %1635 = vmatprep.subr.bf16.mxu0 %v4660_v1 }
 0x5c1   :  { %v1050_v42 = vpop.permute.xlu1 %1049  ;;  %v1146_v43 = vpop.permute.xlu0 %1145 }
 0x5c2   :  { %1053 = vst.msk [vmem:[#allocation2] sm:$0xff] %vm1052_vm9, %v1050_v42  ;;  %vm2492_vm9 = vcmask 786144  }
 0x5c3   :  { %1149 = vst.msk [vmem:[#allocation2] sm:$0xff] %vm1148_vm10, %v1146_v43  ;;  %vm2588_vm10 = vcmask 818944  }
 0x62d   :  { %v3565_v3 = vpop.f32.mrb[44].mxu1  ;;  %v3587_v4 = vpop.f32.mrb[44].mxu0 }
 0x62e   :  { %v3566_v7 = vpop.f32.mrb[45].mxu1  ;;  %v3588_v10 = vpop.f32.mrb[45].mxu0 }
 0x62f   :  { %v3567_v11 = vadd.f32 %v3566_v7, %v3565_v3  ;;  %v3589_v12 = vadd.f32 %v3588_v10, %v3587_v4  ;;  %v3568_v13 = vpop.f32.mrb[46].mxu1  ;;  %v3590_v14 = vpop.f32.mrb[46].mxu0 }
 0x630   :  { %v3569_v15 = vpop.f32.mrb[47].mxu1  ;;  %v3591_v16 = vpop.f32.mrb[47].mxu0  ;;  %v4874_v14 = vld [vmem:[%s5451_s4] ss:$0 sm:$0xff] }
 0x631   :  { %v1235_v17 = vadd.f32 %v3567_v11, %v4433_v58  ;;  %v1331_v18 = vadd.f32 %v3589_v12, %v4433_v58 }
 0x633   :  { %1241 = vrot.lane.b32.xlu1 %v1235_v17, %s4164_s11  ;;  %1337 = vrot.lane.b32.xlu0 %v1331_v18, %s4165_s12  ;;  %s4172_s11 = smov 72   ;;  %s4173_s12 = smov 76  }
 0x635   :  { %v1381_v19 = vpop.f32.mrb[48].mxu1  ;;  %v1477_v20 = vpop.f32.mrb[48].mxu0 }
 0x636   :  { %v1382_v21 = vadd.f32 %v1381_v19, %v4372_v30  ;;  %v1478_v22 = vadd.f32 %v1477_v20, %v4372_v30  ;;  %v1383_v23 = vpop.f32.mrb[49].mxu1  ;;  %v1479_v24 = vpop.f32.mrb[49].mxu0 }
 0x637   :  { %v1384_v44 = vadd.f32 %v1383_v23, %v4374_v31  ;;  %v1480_v45 = vadd.f32 %v1479_v24, %v4374_v31  ;;  %v1385_v46 = vpop.f32.mrb[50].mxu1  ;;  %v1481_v47 = vpop.f32.mrb[50].mxu0 }
 0x638   :  { %v1388_v48 = vmax.f32 %v1382_v21, 0.0  ;;  %v1484_v58 = vmax.f32 %v1478_v22, 0.0  ;;  %v1386_v49 = vpop.f32.mrb[51].mxu1  ;;  %v1482_v50 = vpop.f32.mrb[51].mxu0 }
 0x639   :  { %v1389_v51 = vmax.f32 %v1384_v44, 0.0  ;;  %v1485_v52 = vmax.f32 %v1480_v45, 0.0 }
 0x63a   :  { %v1486_v53 = vpack.c.bf16 %v1484_v58, %v1484_v58  ;;  %v1390_v56 = vpack.c.bf16 %v1388_v48, %v1388_v48 }
 0x63b   :  { %v1391_v54 = vpack.c.bf16 %v1389_v51, %v1389_v51  ;;  %v1487_v55 = vpack.c.bf16 %v1485_v52, %v1485_v52 }
 0x63d   :  { %1424 = vmatprep.mubr.bf16.mxu1 %v1391_v54  ;;  %1520 = vmatprep.mubr.bf16.mxu0 %v1487_v55  ;;  %v1726_v55 = vld [vmem:[%s5447_s0 + $0x80] sm:$0xff] }
 0x63e   :  { %1425 = vmatmul.mubr.bf16.vlgmr.msra.gmra.mrb[52].mxu1 %v1390_v56  ;;  %1521 = vmatmul.mubr.bf16.vlgmr.msra.gmra.mrb[52].mxu0 %v1486_v53  ;;  %v1822_v56 = vld [vmem:[%s5447_s0 + $0x88] sm:$0xff]  ;;  %v1727_v57 = vpack.c.bf16 %v1726_v55, %v1726_v55 }
 0x63f   :  { %1540 = vmatpush1.bf16.msra.mxu1 %v4673_v0  ;;  %1636 = vmatpush1.bf16.msra.mxu0 %v4673_v0  ;;  %v1823_v59 = vpack.c.bf16 %v1822_v56, %v1822_v56 }
 0x640   :  { %1541 = vmatprep.subr.bf16.mxu1 %v4686_v63  ;;  %1637 = vmatprep.subr.bf16.mxu0 %v4686_v63 }
 0x641   :  { %1571 = vmatprep.mubr.bf16.mxu1 %v4154_v2  ;;  %1667 = vmatprep.mubr.bf16.mxu0 %v4154_v2 }
 0x643   :  { %1542 = vmatpush1.bf16.msra.mxu1 %v4695_v8  ;;  %1638 = vmatpush1.bf16.msra.mxu0 %v4695_v8 }
 0x644   :  { %3637 = vmatprep.subr.bf16.mxu1 %v4702_v9  ;;  %3659 = vmatprep.subr.bf16.mxu0 %v4702_v9 }
 0x646   :  { %3311 = vmatmul.mubr.msk.bf16.vlgmr.msra.gmra.mrb[56].mxu1 %vm93_vm0, %v1535_v60  ;;  %3312 = vmatmul.mubr.msk.bf16.vlgmr.msra.gmra.mrb[56].mxu0 %vm93_vm0, %v1631_v61 }
 0x647   :  { %3638 = vmatpush3.bf16.msra.mxu1 %v4711_v25  ;;  %3660 = vmatpush3.bf16.msra.mxu0 %v4711_v25 }
 0x648   :  { %3639 = vmatprep.subr.bf16.mxu1 %v4718_v26  ;;  %3661 = vmatprep.subr.bf16.mxu0 %v4718_v26 }
 0x64b   :  { %3640 = vmatpush3.bf16.msra.mxu1 %v4725_v27  ;;  %3662 = vmatpush3.bf16.msra.mxu0 %v4725_v27 }
 0x64c   :  { %3641 = vmatprep.subr.bf16.mxu1 %v4732_v28  ;;  %3663 = vmatprep.subr.bf16.mxu0 %v4732_v28 }
 0x64f   :  { %3642 = vmatpush3.bf16.msra.mxu1 %v4739_v29  ;;  %3664 = vmatpush3.bf16.msra.mxu0 %v4739_v29 }
 0x650   :  { %3643 = vmatprep.subr.bf16.mxu1 %v4746_v32  ;;  %3665 = vmatprep.subr.bf16.mxu0 %v4746_v32 }
 0x653   :  { %3644 = vmatpush3.bf16.msra.mxu1 %v4753_v33  ;;  %3666 = vmatpush3.bf16.msra.mxu0 %v4753_v33 }
 0x654   :  { %3645 = vmatprep.subr.bf16.mxu1 %v4760_v34  ;;  %3667 = vmatprep.subr.bf16.mxu0 %v4760_v34 }
 0x657   :  { %3646 = vmatpush3.bf16.msra.mxu1 %v4767_v35  ;;  %3668 = vmatpush3.bf16.msra.mxu0 %v4767_v35 }
 0x658   :  { %3647 = vmatprep.subr.bf16.mxu1 %v4774_v36  ;;  %3669 = vmatprep.subr.bf16.mxu0 %v4774_v36 }
 0x65b   :  { %3648 = vmatpush3.bf16.msra.mxu1 %v4781_v37  ;;  %3670 = vmatpush3.bf16.msra.mxu0 %v4781_v37 }
 0x65c   :  { %3649 = vmatprep.subr.bf16.mxu1 %v4788_v38  ;;  %3671 = vmatprep.subr.bf16.mxu0 %v4788_v38 }
 0x65f   :  { %3650 = vmatpush3.bf16.msra.mxu1 %v4795_v39  ;;  %3672 = vmatpush3.bf16.msra.mxu0 %v4795_v39 }
 0x660   :  { %3651 = vmatprep.subr.bf16.mxu1 %v4802_v40  ;;  %3673 = vmatprep.subr.bf16.mxu0 %v4802_v40 }
 0x663   :  { %3652 = vmatpush3.bf16.msra.mxu1 %v4809_v41  ;;  %3674 = vmatpush3.bf16.msra.mxu0 %v4809_v41 }
 0x664   :  { %1731 = vmatprep.subr.bf16.mxu1 %v4660_v1  ;;  %1827 = vmatprep.subr.bf16.mxu0 %v4660_v1 }
 0x6a5   :  { %v1242_v62 = vpop.permute.xlu1 %1241  ;;  %v1338_v5 = vpop.permute.xlu0 %1337 }
 0x6a6   :  { %1245 = vst.msk [vmem:[#allocation2] sm:$0xff] %vm1244_vm11, %v1242_v62  ;;  %vm2684_vm11 = vcmask 851744  }
 0x6a7   :  { %1341 = vst.msk [vmem:[#allocation2] sm:$0xff] %vm1340_vm12, %v1338_v5  ;;  %vm2876_vm12 = vcmask 917344  }
 0x711   :  { %v3609_v6 = vpop.f32.mrb[52].mxu1  ;;  %v3631_v42 = vpop.f32.mrb[52].mxu0 }
 0x712   :  { %v3610_v43 = vpop.f32.mrb[53].mxu1  ;;  %v3632_v3 = vpop.f32.mrb[53].mxu0 }
 0x713   :  { %v3611_v4 = vadd.f32 %v3610_v43, %v3609_v6  ;;  %v3633_v7 = vadd.f32 %v3632_v3, %v3631_v42  ;;  %v3612_v10 = vpop.f32.mrb[54].mxu1  ;;  %v3634_v11 = vpop.f32.mrb[54].mxu0 }
 0x714   :  { %v3613_v12 = vpop.f32.mrb[55].mxu1  ;;  %v3635_v13 = vpop.f32.mrb[55].mxu0 }
 0x715   :  { %v1427_v15 = vadd.f32 %v4874_v14, %v3611_v4  ;;  %v1523_v16 = vadd.f32 %v4874_v14, %v3633_v7 }
 0x717   :  { %1433 = vrot.lane.b32.xlu1 %v1427_v15, %s4166_s18  ;;  %1529 = vrot.lane.b32.xlu0 %v1523_v16, %s4167_s19  ;;  %s4174_s18 = smov 80   ;;  %s4175_s19 = smov 84  }
 0x719   :  { %v1573_v17 = vpop.f32.mrb[56].mxu1  ;;  %v1669_v18 = vpop.f32.mrb[56].mxu0 }
 0x71a   :  { %v1574_v19 = vadd.f32 %v1573_v17, %v4372_v30  ;;  %v1670_v20 = vadd.f32 %v1669_v18, %v4372_v30  ;;  %v1575_v21 = vpop.f32.mrb[57].mxu1  ;;  %v1671_v22 = vpop.f32.mrb[57].mxu0 }
 0x71b   :  { %v1576_v23 = vadd.f32 %v1575_v21, %v4374_v31  ;;  %v1672_v24 = vadd.f32 %v1671_v22, %v4374_v31  ;;  %v1577_v44 = vpop.f32.mrb[58].mxu1  ;;  %v1673_v45 = vpop.f32.mrb[58].mxu0 }
 0x71c   :  { %v1580_v46 = vmax.f32 %v1574_v19, 0.0  ;;  %v1676_v47 = vmax.f32 %v1670_v20, 0.0  ;;  %v1578_v48 = vpop.f32.mrb[59].mxu1  ;;  %v1674_v58 = vpop.f32.mrb[59].mxu0 }
 0x71d   :  { %v1581_v49 = vmax.f32 %v1576_v23, 0.0  ;;  %v1677_v50 = vmax.f32 %v1672_v24, 0.0 }
 0x71e   :  { %v1678_v51 = vpack.c.bf16 %v1676_v47, %v1676_v47  ;;  %v1582_v54 = vpack.c.bf16 %v1580_v46, %v1580_v46 }
 0x71f   :  { %v1583_v52 = vpack.c.bf16 %v1581_v49, %v1581_v49  ;;  %v1679_v53 = vpack.c.bf16 %v1677_v50, %v1677_v50 }
 0x721   :  { %1616 = vmatprep.mubr.bf16.mxu1 %v1583_v52  ;;  %1712 = vmatprep.mubr.bf16.mxu0 %v1679_v53  ;;  %v1918_v53 = vld [vmem:[%s5447_s0 + $0x90] sm:$0xff] }
 0x722   :  { %1617 = vmatmul.mubr.bf16.vlgmr.msra.gmra.mrb[60].mxu1 %v1582_v54  ;;  %1713 = vmatmul.mubr.bf16.vlgmr.msra.gmra.mrb[60].mxu0 %v1678_v51  ;;  %v2014_v54 = vld [vmem:[%s5447_s0 + $0x98] sm:$0xff]  ;;  %v1919_v55 = vpack.c.bf16 %v1918_v53, %v1918_v53 }
 0x723   :  { %1732 = vmatpush1.bf16.msra.mxu1 %v4673_v0  ;;  %1828 = vmatpush1.bf16.msra.mxu0 %v4673_v0  ;;  %v2015_v56 = vpack.c.bf16 %v2014_v54, %v2014_v54 }
 0x724   :  { %1733 = vmatprep.subr.bf16.mxu1 %v4686_v63  ;;  %1829 = vmatprep.subr.bf16.mxu0 %v4686_v63 }
 0x725   :  { %1763 = vmatprep.mubr.bf16.mxu1 %v4154_v2  ;;  %1859 = vmatprep.mubr.bf16.mxu0 %v4154_v2 }
 0x727   :  { %1734 = vmatpush1.bf16.msra.mxu1 %v4695_v8  ;;  %1830 = vmatpush1.bf16.msra.mxu0 %v4695_v8 }
 0x728   :  { %3681 = vmatprep.subr.bf16.mxu1 %v4702_v9  ;;  %3703 = vmatprep.subr.bf16.mxu0 %v4702_v9 }
 0x72a   :  { %3313 = vmatmul.mubr.msk.bf16.vlgmr.msra.gmra.mrb[64].mxu1 %vm93_vm0, %v1727_v57  ;;  %3314 = vmatmul.mubr.msk.bf16.vlgmr.msra.gmra.mrb[64].mxu0 %vm93_vm0, %v1823_v59 }
 0x72b   :  { %3682 = vmatpush3.bf16.msra.mxu1 %v4711_v25  ;;  %3704 = vmatpush3.bf16.msra.mxu0 %v4711_v25 }
 0x72c   :  { %3683 = vmatprep.subr.bf16.mxu1 %v4718_v26  ;;  %3705 = vmatprep.subr.bf16.mxu0 %v4718_v26 }
 0x72f   :  { %3684 = vmatpush3.bf16.msra.mxu1 %v4725_v27  ;;  %3706 = vmatpush3.bf16.msra.mxu0 %v4725_v27 }
 0x730   :  { %3685 = vmatprep.subr.bf16.mxu1 %v4732_v28  ;;  %3707 = vmatprep.subr.bf16.mxu0 %v4732_v28 }
 0x733   :  { %3686 = vmatpush3.bf16.msra.mxu1 %v4739_v29  ;;  %3708 = vmatpush3.bf16.msra.mxu0 %v4739_v29 }
 0x734   :  { %3687 = vmatprep.subr.bf16.mxu1 %v4746_v32  ;;  %3709 = vmatprep.subr.bf16.mxu0 %v4746_v32 }
 0x737   :  { %3688 = vmatpush3.bf16.msra.mxu1 %v4753_v33  ;;  %3710 = vmatpush3.bf16.msra.mxu0 %v4753_v33 }
 0x738   :  { %3689 = vmatprep.subr.bf16.mxu1 %v4760_v34  ;;  %3711 = vmatprep.subr.bf16.mxu0 %v4760_v34 }
 0x73b   :  { %3690 = vmatpush3.bf16.msra.mxu1 %v4767_v35  ;;  %3712 = vmatpush3.bf16.msra.mxu0 %v4767_v35 }
 0x73c   :  { %3691 = vmatprep.subr.bf16.mxu1 %v4774_v36  ;;  %3713 = vmatprep.subr.bf16.mxu0 %v4774_v36 }
 0x73f   :  { %3692 = vmatpush3.bf16.msra.mxu1 %v4781_v37  ;;  %3714 = vmatpush3.bf16.msra.mxu0 %v4781_v37 }
 0x740   :  { %3693 = vmatprep.subr.bf16.mxu1 %v4788_v38  ;;  %3715 = vmatprep.subr.bf16.mxu0 %v4788_v38 }
 0x743   :  { %3694 = vmatpush3.bf16.msra.mxu1 %v4795_v39  ;;  %3716 = vmatpush3.bf16.msra.mxu0 %v4795_v39 }
 0x744   :  { %3695 = vmatprep.subr.bf16.mxu1 %v4802_v40  ;;  %3717 = vmatprep.subr.bf16.mxu0 %v4802_v40 }
 0x747   :  { %3696 = vmatpush3.bf16.msra.mxu1 %v4809_v41  ;;  %3718 = vmatpush3.bf16.msra.mxu0 %v4809_v41 }
 0x748   :  { %1923 = vmatprep.subr.bf16.mxu1 %v4660_v1  ;;  %2019 = vmatprep.subr.bf16.mxu0 %v4660_v1 }
 0x789   :  { %v1434_v60 = vpop.permute.xlu1 %1433  ;;  %v1530_v61 = vpop.permute.xlu0 %1529 }
 0x78a   :  { %1437 = vst.msk [vmem:[#allocation2] sm:$0xff] %vm1436_vm13, %v1434_v60  ;;  %vm2972_vm13 = vcmask 950144  }
 0x78b   :  { %1533 = vst.msk [vmem:[#allocation2] sm:$0xff] %vm1532_vm14, %v1530_v61  ;;  %vm3068_vm14 = vcmask 982944  }
 0x7f5   :  { %v3653_v62 = vpop.f32.mrb[60].mxu1  ;;  %v3675_v5 = vpop.f32.mrb[60].mxu0 }
 0x7f6   :  { %v3654_v6 = vpop.f32.mrb[61].mxu1  ;;  %v3676_v42 = vpop.f32.mrb[61].mxu0 }
 0x7f7   :  { %v3655_v43 = vadd.f32 %v3654_v6, %v3653_v62  ;;  %v3677_v3 = vadd.f32 %v3676_v42, %v3675_v5  ;;  %v3656_v4 = vpop.f32.mrb[62].mxu1  ;;  %v3678_v7 = vpop.f32.mrb[62].mxu0 }
 0x7f8   :  { %v3657_v10 = vpop.f32.mrb[63].mxu1  ;;  %v3679_v11 = vpop.f32.mrb[63].mxu0 }
 0x7f9   :  { %v1619_v12 = vadd.f32 %v4874_v14, %v3655_v43  ;;  %v1715_v13 = vadd.f32 %v4874_v14, %v3677_v3 }
 0x7fb   :  { %1625 = vrot.lane.b32.xlu1 %v1619_v12, %s4168_s24  ;;  %1721 = vrot.lane.b32.xlu0 %v1715_v13, %s4169_s25 }
 0x7fd   :  { %v1765_v15 = vpop.f32.mrb[64].mxu1  ;;  %v1861_v16 = vpop.f32.mrb[64].mxu0 }
 0x7fe   :  { %v1766_v17 = vadd.f32 %v1765_v15, %v4372_v30  ;;  %v1862_v18 = vadd.f32 %v1861_v16, %v4372_v30  ;;  %v1767_v19 = vpop.f32.mrb[65].mxu1  ;;  %v1863_v20 = vpop.f32.mrb[65].mxu0 }
 0x7ff   :  { %v1768_v21 = vadd.f32 %v1767_v19, %v4374_v31  ;;  %v1864_v22 = vadd.f32 %v1863_v20, %v4374_v31  ;;  %v1769_v23 = vpop.f32.mrb[66].mxu1  ;;  %v1865_v24 = vpop.f32.mrb[66].mxu0 }
 0x800   :  { %v1772_v44 = vmax.f32 %v1766_v17, 0.0  ;;  %v1868_v45 = vmax.f32 %v1862_v18, 0.0  ;;  %v1770_v46 = vpop.f32.mrb[67].mxu1  ;;  %v1866_v47 = vpop.f32.mrb[67].mxu0 }
 0x801   :  { %v1773_v48 = vmax.f32 %v1768_v21, 0.0  ;;  %v1869_v58 = vmax.f32 %v1864_v22, 0.0 }
 0x802   :  { %v1870_v49 = vpack.c.bf16 %v1868_v45, %v1868_v45  ;;  %v1774_v52 = vpack.c.bf16 %v1772_v44, %v1772_v44 }
 0x803   :  { %v1775_v50 = vpack.c.bf16 %v1773_v48, %v1773_v48  ;;  %v1871_v51 = vpack.c.bf16 %v1869_v58, %v1869_v58 }
 0x805   :  { %1808 = vmatprep.mubr.bf16.mxu1 %v1775_v50  ;;  %1904 = vmatprep.mubr.bf16.mxu0 %v1871_v51  ;;  %v2110_v51 = vld [vmem:[%s5447_s0 + $0xa0] sm:$0xff] }
 0x806   :  { %1809 = vmatmul.mubr.bf16.vlgmr.msra.gmra.mrb[68].mxu1 %v1774_v52  ;;  %1905 = vmatmul.mubr.bf16.vlgmr.msra.gmra.mrb[68].mxu0 %v1870_v49  ;;  %v2206_v52 = vld [vmem:[%s5447_s0 + $0xa8] sm:$0xff]  ;;  %v2111_v53 = vpack.c.bf16 %v2110_v51, %v2110_v51 }
 0x807   :  { %1924 = vmatpush1.bf16.msra.mxu1 %v4673_v0  ;;  %2020 = vmatpush1.bf16.msra.mxu0 %v4673_v0  ;;  %v2207_v54 = vpack.c.bf16 %v2206_v52, %v2206_v52 }
 0x808   :  { %1925 = vmatprep.subr.bf16.mxu1 %v4686_v63  ;;  %2021 = vmatprep.subr.bf16.mxu0 %v4686_v63 }
 0x809   :  { %1955 = vmatprep.mubr.bf16.mxu1 %v4154_v2  ;;  %2051 = vmatprep.mubr.bf16.mxu0 %v4154_v2 }
 0x80b   :  { %1926 = vmatpush1.bf16.msra.mxu1 %v4695_v8  ;;  %2022 = vmatpush1.bf16.msra.mxu0 %v4695_v8 }
 0x80c   :  { %3725 = vmatprep.subr.bf16.mxu1 %v4702_v9  ;;  %3747 = vmatprep.subr.bf16.mxu0 %v4702_v9 }
 0x80e   :  { %3315 = vmatmul.mubr.msk.bf16.vlgmr.msra.gmra.mrb[72].mxu1 %vm93_vm0, %v1919_v55  ;;  %3316 = vmatmul.mubr.msk.bf16.vlgmr.msra.gmra.mrb[72].mxu0 %vm93_vm0, %v2015_v56 }
 0x80f   :  { %3726 = vmatpush3.bf16.msra.mxu1 %v4711_v25  ;;  %3748 = vmatpush3.bf16.msra.mxu0 %v4711_v25 }
 0x810   :  { %3727 = vmatprep.subr.bf16.mxu1 %v4718_v26  ;;  %3749 = vmatprep.subr.bf16.mxu0 %v4718_v26 }
 0x813   :  { %3728 = vmatpush3.bf16.msra.mxu1 %v4725_v27  ;;  %3750 = vmatpush3.bf16.msra.mxu0 %v4725_v27 }
 0x814   :  { %3729 = vmatprep.subr.bf16.mxu1 %v4732_v28  ;;  %3751 = vmatprep.subr.bf16.mxu0 %v4732_v28 }
 0x817   :  { %3730 = vmatpush3.bf16.msra.mxu1 %v4739_v29  ;;  %3752 = vmatpush3.bf16.msra.mxu0 %v4739_v29 }
 0x818   :  { %3731 = vmatprep.subr.bf16.mxu1 %v4746_v32  ;;  %3753 = vmatprep.subr.bf16.mxu0 %v4746_v32 }
 0x81b   :  { %3732 = vmatpush3.bf16.msra.mxu1 %v4753_v33  ;;  %3754 = vmatpush3.bf16.msra.mxu0 %v4753_v33 }
 0x81c   :  { %3733 = vmatprep.subr.bf16.mxu1 %v4760_v34  ;;  %3755 = vmatprep.subr.bf16.mxu0 %v4760_v34 }
 0x81f   :  { %3734 = vmatpush3.bf16.msra.mxu1 %v4767_v35  ;;  %3756 = vmatpush3.bf16.msra.mxu0 %v4767_v35 }
 0x820   :  { %3735 = vmatprep.subr.bf16.mxu1 %v4774_v36  ;;  %3757 = vmatprep.subr.bf16.mxu0 %v4774_v36 }
 0x823   :  { %3736 = vmatpush3.bf16.msra.mxu1 %v4781_v37  ;;  %3758 = vmatpush3.bf16.msra.mxu0 %v4781_v37 }
 0x824   :  { %3737 = vmatprep.subr.bf16.mxu1 %v4788_v38  ;;  %3759 = vmatprep.subr.bf16.mxu0 %v4788_v38 }
 0x827   :  { %3738 = vmatpush3.bf16.msra.mxu1 %v4795_v39  ;;  %3760 = vmatpush3.bf16.msra.mxu0 %v4795_v39 }
 0x828   :  { %3739 = vmatprep.subr.bf16.mxu1 %v4802_v40  ;;  %3761 = vmatprep.subr.bf16.mxu0 %v4802_v40 }
 0x82b   :  { %3740 = vmatpush3.bf16.msra.mxu1 %v4809_v41  ;;  %3762 = vmatpush3.bf16.msra.mxu0 %v4809_v41 }
 0x82c   :  { %2115 = vmatprep.subr.bf16.mxu1 %v4660_v1  ;;  %2211 = vmatprep.subr.bf16.mxu0 %v4660_v1 }
 0x86d   :  { %v1626_v57 = vpop.permute.xlu1 %1625  ;;  %v1722_v59 = vpop.permute.xlu0 %1721 }
 0x86e   :  { %1629 = vst.msk [vmem:[#allocation2] sm:$0xff] %vm1628_vm15, %v1626_v57  ;;  %vm3164_vm15 = vcmask 1015744  }
 0x86f   :  { %1725 = vst.msk [vmem:[#allocation2] sm:$0xff] %vm1724_vm1, %v1722_v59  ;;  %vm3260_vm1 = vcmask 1048544  }
 0x8d9   :  { %v3697_v60 = vpop.f32.mrb[68].mxu1  ;;  %v3719_v61 = vpop.f32.mrb[68].mxu0 }
 0x8da   :  { %v3698_v62 = vpop.f32.mrb[69].mxu1  ;;  %v3720_v5 = vpop.f32.mrb[69].mxu0 }
 0x8db   :  { %v3699_v6 = vadd.f32 %v3698_v62, %v3697_v60  ;;  %v3721_v42 = vadd.f32 %v3720_v5, %v3719_v61  ;;  %v3700_v43 = vpop.f32.mrb[70].mxu1  ;;  %v3722_v3 = vpop.f32.mrb[70].mxu0 }
 0x8dc   :  { %v3701_v4 = vpop.f32.mrb[71].mxu1  ;;  %v3723_v7 = vpop.f32.mrb[71].mxu0 }
 0x8dd   :  { %v1811_v10 = vadd.f32 %v4874_v14, %v3699_v6  ;;  %v1907_v11 = vadd.f32 %v4874_v14, %v3721_v42 }
 0x8df   :  { %1817 = vrot.lane.b32.xlu1 %v1811_v10, %s4170_s30  ;;  %1913 = vrot.lane.b32.xlu0 %v1907_v11, %s4171_s6  ;;  %s3268_s30 = sshll.u32 %s4186_s29, 4  ;;  %s3269_s30 = int_to_ptr.vmem [resolvable:$true] %s3268_s30 }
 0x8e0   :  { %s4130_s6 = scalar_lea.vmem %s3269_s30, 128  ;;  %p4135_p1 = scmp.lt.s32.totalorder %s3269_s30, %s3269_s30 }
 0x8e1   :  { %v1957_v12 = vpop.f32.mrb[72].mxu1  ;;  %v2053_v13 = vpop.f32.mrb[72].mxu0  ;;  %p4131_p0 = scmp.ne.s32.totalorder %s3269_s30, %s4130_s6  ;;  %p4136_p2 = scmp.lt.s32.totalorder %s4130_s6, %s4130_s6 }
 0x8e2   :  { %v1958_v15 = vadd.f32 %v1957_v12, %v4372_v30  ;;  %v2054_v16 = vadd.f32 %v2053_v13, %v4372_v30  ;;  %v1959_v17 = vpop.f32.mrb[73].mxu1  ;;  %v2055_v18 = vpop.f32.mrb[73].mxu0 }
 0x8e3   :  { %v1960_v19 = vadd.f32 %v1959_v17, %v4374_v31  ;;  %v2056_v20 = vadd.f32 %v2055_v18, %v4374_v31  ;;  %v1961_v21 = vpop.f32.mrb[74].mxu1  ;;  %v2057_v22 = vpop.f32.mrb[74].mxu0  ;;  %p4137_p3 = por %p4136_p2, %p4135_p1 }
 0x8e4   :  { %v1964_v23 = vmax.f32 %v1958_v15, 0.0  ;;  %v2060_v24 = vmax.f32 %v2054_v16, 0.0  ;;  %v1962_v44 = vpop.f32.mrb[75].mxu1  ;;  %v2058_v45 = vpop.f32.mrb[75].mxu0 }
 0x8e5   :  { %v1965_v46 = vmax.f32 %v1960_v19, 0.0  ;;  %v2061_v47 = vmax.f32 %v2056_v20, 0.0  ;;  %p4138_p4 = pnand %p4137_p3, %p4131_p0 }
 0x8e6   :  { %v2062_v48 = vpack.c.bf16 %v2060_v24, %v2060_v24  ;;  %v1966_v50 = vpack.c.bf16 %v1964_v23, %v1964_v23 }
 0x8e7   :  { %v1967_v58 = vpack.c.bf16 %v1965_v46, %v1965_v46  ;;  %v2063_v49 = vpack.c.bf16 %v2061_v47, %v2061_v47 }
 0x8e9   :  { %2000 = vmatprep.mubr.bf16.mxu1 %v1967_v58  ;;  %2096 = vmatprep.mubr.bf16.mxu0 %v2063_v49  ;;  %v2302_v58 = vld [vmem:[%s5447_s0 + $0xb0] sm:$0xff]  ;;  %v2398_v49 = vld [vmem:[%s5447_s0 + $0xb8] sm:$0xff] }
 0x8ea   :  { %2001 = vmatmul.mubr.bf16.vlgmr.msra.gmra.mrb[76].mxu1 %v1966_v50  ;;  %2097 = vmatmul.mubr.bf16.vlgmr.msra.gmra.mrb[76].mxu0 %v2062_v48  ;;  %v2303_v50 = vpack.c.bf16 %v2302_v58, %v2302_v58  ;;  %v2399_v51 = vpack.c.bf16 %v2398_v49, %v2398_v49  ;;  %v5243_v58 = vld [vmem:[%s5450_s3 + $0x78] sm:$0xff]  }
 0x8eb   :  { %2116 = vmatpush1.bf16.msra.mxu1 %v4673_v0  ;;  %2212 = vmatpush1.bf16.msra.mxu0 %v4673_v0  ;;  %v5250_v49 = vld [vmem:[%s5450_s3 + $0x38] sm:$0xff]  }
 0x8ec   :  { %2117 = vmatprep.subr.bf16.mxu1 %v4686_v63  ;;  %2213 = vmatprep.subr.bf16.mxu0 %v4686_v63 }
 0x8ed   :  { %2147 = vmatprep.mubr.bf16.mxu1 %v4154_v2  ;;  %2243 = vmatprep.mubr.bf16.mxu0 %v4154_v2 }
 0x8ef   :  { %2118 = vmatpush1.bf16.msra.mxu1 %v4695_v8  ;;  %2214 = vmatpush1.bf16.msra.mxu0 %v4695_v8 }
 0x8f0   :  { %3769 = vmatprep.subr.bf16.mxu1 %v4702_v9  ;;  %3791 = vmatprep.subr.bf16.mxu0 %v4702_v9 }
 0x8f2   :  { %3317 = vmatmul.mubr.msk.bf16.vlgmr.msra.gmra.mrb[80].mxu1 %vm93_vm0, %v2111_v53  ;;  %3318 = vmatmul.mubr.msk.bf16.vlgmr.msra.gmra.mrb[80].mxu0 %vm93_vm0, %v2207_v54 }
 0x8f3   :  { %3770 = vmatpush3.bf16.msra.mxu1 %v4711_v25  ;;  %3792 = vmatpush3.bf16.msra.mxu0 %v4711_v25 }
 0x8f4   :  { %3771 = vmatprep.subr.bf16.mxu1 %v4718_v26  ;;  %3793 = vmatprep.subr.bf16.mxu0 %v4718_v26 }
 0x8f7   :  { %3772 = vmatpush3.bf16.msra.mxu1 %v4725_v27  ;;  %3794 = vmatpush3.bf16.msra.mxu0 %v4725_v27 }
 0x8f8   :  { %3773 = vmatprep.subr.bf16.mxu1 %v4732_v28  ;;  %3795 = vmatprep.subr.bf16.mxu0 %v4732_v28 }
 0x8fb   :  { %3774 = vmatpush3.bf16.msra.mxu1 %v4739_v29  ;;  %3796 = vmatpush3.bf16.msra.mxu0 %v4739_v29 }
 0x8fc   :  { %3775 = vmatprep.subr.bf16.mxu1 %v4746_v32  ;;  %3797 = vmatprep.subr.bf16.mxu0 %v4746_v32 }
 0x8ff   :  { %3776 = vmatpush3.bf16.msra.mxu1 %v4753_v33  ;;  %3798 = vmatpush3.bf16.msra.mxu0 %v4753_v33 }
 0x900   :  { %3777 = vmatprep.subr.bf16.mxu1 %v4760_v34  ;;  %3799 = vmatprep.subr.bf16.mxu0 %v4760_v34 }
 0x903   :  { %3778 = vmatpush3.bf16.msra.mxu1 %v4767_v35  ;;  %3800 = vmatpush3.bf16.msra.mxu0 %v4767_v35 }
 0x904   :  { %3779 = vmatprep.subr.bf16.mxu1 %v4774_v36  ;;  %3801 = vmatprep.subr.bf16.mxu0 %v4774_v36 }
 0x907   :  { %3780 = vmatpush3.bf16.msra.mxu1 %v4781_v37  ;;  %3802 = vmatpush3.bf16.msra.mxu0 %v4781_v37 }
 0x908   :  { %3781 = vmatprep.subr.bf16.mxu1 %v4788_v38  ;;  %3803 = vmatprep.subr.bf16.mxu0 %v4788_v38 }
 0x90b   :  { %3782 = vmatpush3.bf16.msra.mxu1 %v4795_v39  ;;  %3804 = vmatpush3.bf16.msra.mxu0 %v4795_v39 }
 0x90c   :  { %3783 = vmatprep.subr.bf16.mxu1 %v4802_v40  ;;  %3805 = vmatprep.subr.bf16.mxu0 %v4802_v40 }
 0x90f   :  { %3784 = vmatpush3.bf16.msra.mxu1 %v4809_v41  ;;  %3806 = vmatpush3.bf16.msra.mxu0 %v4809_v41 }
 0x910   :  { %2307 = vmatprep.subr.bf16.mxu1 %v4660_v1  ;;  %2403 = vmatprep.subr.bf16.mxu0 %v4660_v1 }
 0x951   :  { %v1818_v55 = vpop.permute.xlu1 %1817  ;;  %v1914_v56 = vpop.permute.xlu0 %1913 }
 0x952   :  { %1821 = vst.msk [vmem:[#allocation2] sm:$0xff] %vm1820_vm2, %v1818_v55 }
 0x953   :  { %1917 = vst.msk [vmem:[#allocation2] sm:$0xff] %vm1916_vm3, %v1914_v56 }
 0x9bd   :  { %v3741_v57 = vpop.f32.mrb[76].mxu1  ;;  %v3763_v59 = vpop.f32.mrb[76].mxu0 }
 0x9be   :  { %v3742_v60 = vpop.f32.mrb[77].mxu1  ;;  %v3764_v61 = vpop.f32.mrb[77].mxu0 }
 0x9bf   :  { %v3743_v62 = vadd.f32 %v3742_v60, %v3741_v57  ;;  %v3765_v5 = vadd.f32 %v3764_v61, %v3763_v59  ;;  %v3744_v6 = vpop.f32.mrb[78].mxu1  ;;  %v3766_v42 = vpop.f32.mrb[78].mxu0 }
 0x9c0   :  { %v3745_v43 = vpop.f32.mrb[79].mxu1  ;;  %v3767_v3 = vpop.f32.mrb[79].mxu0 }
 0x9c1   :  { %v2003_v4 = vadd.f32 %v4874_v14, %v3743_v62  ;;  %v2099_v1 = vadd.f32 %v4874_v14, %v3765_v5 }
 0x9c3   :  { %2009 = vrot.lane.b32.xlu1 %v2003_v4, %s4172_s11  ;;  %2105 = vrot.lane.b32.xlu0 %v2099_v1, %s4173_s12  ;;  %v5114_v1 = vld [vmem:[%s5448_s1] ss:$8 sps:$4 sm:$0xff]  }
 0x9c5   :  { %v2149_v7 = vpop.f32.mrb[80].mxu1  ;;  %v2245_v10 = vpop.f32.mrb[80].mxu0 }
 0x9c6   :  { %v2150_v11 = vadd.f32 %v2149_v7, %v4372_v30  ;;  %v2246_v12 = vadd.f32 %v2245_v10, %v4372_v30  ;;  %v2151_v13 = vpop.f32.mrb[81].mxu1  ;;  %v2247_v15 = vpop.f32.mrb[81].mxu0  ;;  %v2494_v7 = vld [vmem:[%s5447_s0 + $0xc0] sm:$0xff]  ;;  %v2590_v10 = vld [vmem:[%s5447_s0 + $0xc8] sm:$0xff] }
 0x9c7   :  { %v2152_v16 = vadd.f32 %v2151_v13, %v4374_v31  ;;  %v2248_v17 = vadd.f32 %v2247_v15, %v4374_v31  ;;  %v2153_v18 = vpop.f32.mrb[82].mxu1  ;;  %v2249_v19 = vpop.f32.mrb[82].mxu0  ;;  %v2591_v13 = vpack.c.bf16 %v2590_v10, %v2590_v10  ;;  %v5136_v15 = vld [vmem:[%s5448_s1 + $0x10] ss:$8 sps:$4 sm:$0xff]  }
 0x9c8   :  { %v2156_v20 = vmax.f32 %v2150_v11, 0.0  ;;  %v2252_v21 = vmax.f32 %v2246_v12, 0.0  ;;  %v2154_v22 = vpop.f32.mrb[83].mxu1  ;;  %v2250_v23 = vpop.f32.mrb[83].mxu0  ;;  %v5127_v11 = vld [vmem:[%s5448_s1 + $0x14] ss:$8 sps:$4 sm:$0xff]   ;;  %v2495_v12 = vpack.c.bf16 %v2494_v7, %v2494_v7 }
 0x9c9   :  { %v2157_v24 = vmax.f32 %v2152_v16, 0.0  ;;  %v2253_v44 = vmax.f32 %v2248_v17, 0.0  ;;  %v5143_v16 = vld [vmem:[%s5450_s3 + $0x40] sm:$0xff]   ;;  %v5159_v18 = vld [vmem:[%s5450_s3 + $0x48] sm:$0xff]   ;;  %v5187_v22 = vld [vmem:[%s5450_s3 + $0x58] sm:$0xff]  }
 0x9ca   :  { %v2254_v45 = vpack.c.bf16 %v2252_v21, %v2252_v21  ;;  %v2158_v48 = vpack.c.bf16 %v2156_v20, %v2156_v20  ;;  %v5152_v17 = vld [vmem:[%s5450_s3] sm:$0xff]   ;;  %v5166_v19 = vld [vmem:[%s5450_s3 + $0x8] sm:$0xff]   ;;  %v5173_v20 = vld [vmem:[%s5450_s3 + $0x50] sm:$0xff]  }
 0x9cb   :  { %v2159_v46 = vpack.c.bf16 %v2157_v24, %v2157_v24  ;;  %v2255_v47 = vpack.c.bf16 %v2253_v44, %v2253_v44  ;;  %v5180_v21 = vld [vmem:[%s5450_s3 + $0x10] sm:$0xff]   ;;  %v5194_v23 = vld [vmem:[%s5450_s3 + $0x18] sm:$0xff]   ;;  %v5201_v24 = vld [vmem:[%s5450_s3 + $0x60] sm:$0xff]  }
 0x9cc   :  { %v5208_v44 = vld [vmem:[%s5450_s3 + $0x20] sm:$0xff]  }
 0x9cd   :  { %2192 = vmatprep.mubr.bf16.mxu1 %v2159_v46  ;;  %2288 = vmatprep.mubr.bf16.mxu0 %v2255_v47  ;;  %v5222_v46 = vld [vmem:[%s5450_s3 + $0x28] sm:$0xff]   ;;  %v5229_v47 = vld [vmem:[%s5450_s3 + $0x70] sm:$0xff]  }
 0x9ce   :  { %2193 = vmatmul.mubr.bf16.vlgmr.msra.gmra.mrb[84].mxu1 %v2158_v48  ;;  %2289 = vmatmul.mubr.bf16.vlgmr.msra.gmra.mrb[84].mxu0 %v2254_v45  ;;  %v5215_v45 = vld [vmem:[%s5450_s3 + $0x68] sm:$0xff]   ;;  %v5236_v48 = vld [vmem:[%s5450_s3 + $0x30] sm:$0xff]   ;;  %s4176_s3 = smov 88  }
 0x9cf   :  { %2308 = vmatpush1.bf16.msra.mxu1 %v4673_v0  ;;  %2404 = vmatpush1.bf16.msra.mxu0 %v4673_v0  ;;  %v5101_v0 = vld [vmem:[%s5448_s1 + $0x4] ss:$8 sps:$4 sm:$0xff]  }
 0x9d0   :  { %2309 = vmatprep.subr.bf16.mxu1 %v4686_v63  ;;  %2405 = vmatprep.subr.bf16.mxu0 %v4686_v63 }
 0x9d1   :  { %2339 = vmatprep.mubr.bf16.mxu1 %v4154_v2  ;;  %2435 = vmatprep.mubr.bf16.mxu0 %v4154_v2 }
 0x9d3   :  { %2310 = vmatpush1.bf16.msra.mxu1 %v4695_v8  ;;  %2406 = vmatpush1.bf16.msra.mxu0 %v4695_v8 }
 0x9d4   :  { %3813 = vmatprep.subr.bf16.mxu1 %v4702_v9  ;;  %3835 = vmatprep.subr.bf16.mxu0 %v4702_v9 }
 0x9d6   :  { %3319 = vmatmul.mubr.msk.bf16.vlgmr.msra.gmra.mrb[88].mxu1 %vm93_vm0, %v2303_v50  ;;  %3320 = vmatmul.mubr.msk.bf16.vlgmr.msra.gmra.mrb[88].mxu0 %vm93_vm0, %v2399_v51 }
 0x9d7   :  { %3814 = vmatpush3.bf16.msra.mxu1 %v4711_v25  ;;  %3836 = vmatpush3.bf16.msra.mxu0 %v4711_v25 }
 0x9d8   :  { %3815 = vmatprep.subr.bf16.mxu1 %v4718_v26  ;;  %3837 = vmatprep.subr.bf16.mxu0 %v4718_v26 }
 0x9db   :  { %3816 = vmatpush3.bf16.msra.mxu1 %v4725_v27  ;;  %3838 = vmatpush3.bf16.msra.mxu0 %v4725_v27 }
 0x9dc   :  { %3817 = vmatprep.subr.bf16.mxu1 %v4732_v28  ;;  %3839 = vmatprep.subr.bf16.mxu0 %v4732_v28 }
 0x9df   :  { %3818 = vmatpush3.bf16.msra.mxu1 %v4739_v29  ;;  %3840 = vmatpush3.bf16.msra.mxu0 %v4739_v29 }
 0x9e0   :  { %3819 = vmatprep.subr.bf16.mxu1 %v4746_v32  ;;  %3841 = vmatprep.subr.bf16.mxu0 %v4746_v32 }
 0x9e3   :  { %3820 = vmatpush3.bf16.msra.mxu1 %v4753_v33  ;;  %3842 = vmatpush3.bf16.msra.mxu0 %v4753_v33 }
 0x9e4   :  { %3821 = vmatprep.subr.bf16.mxu1 %v4760_v34  ;;  %3843 = vmatprep.subr.bf16.mxu0 %v4760_v34 }
 0x9e7   :  { %3822 = vmatpush3.bf16.msra.mxu1 %v4767_v35  ;;  %3844 = vmatpush3.bf16.msra.mxu0 %v4767_v35 }
 0x9e8   :  { %3823 = vmatprep.subr.bf16.mxu1 %v4774_v36  ;;  %3845 = vmatprep.subr.bf16.mxu0 %v4774_v36 }
 0x9eb   :  { %3824 = vmatpush3.bf16.msra.mxu1 %v4781_v37  ;;  %3846 = vmatpush3.bf16.msra.mxu0 %v4781_v37 }
 0x9ec   :  { %3825 = vmatprep.subr.bf16.mxu1 %v4788_v38  ;;  %3847 = vmatprep.subr.bf16.mxu0 %v4788_v38 }
 0x9ef   :  { %3826 = vmatpush3.bf16.msra.mxu1 %v4795_v39  ;;  %3848 = vmatpush3.bf16.msra.mxu0 %v4795_v39 }
 0x9f0   :  { %3827 = vmatprep.subr.bf16.mxu1 %v4802_v40  ;;  %3849 = vmatprep.subr.bf16.mxu0 %v4802_v40 }
 0x9f3   :  { %3828 = vmatpush3.bf16.msra.mxu1 %v4809_v41  ;;  %3850 = vmatpush3.bf16.msra.mxu0 %v4809_v41 }
 0x9f4   :  { %2499 = vmatprep.subr.bf16.mxu1 %v5101_v0  ;;  %2595 = vmatprep.subr.bf16.mxu0 %v5101_v0 }
 0xa35   :  { %v2010_v63 = vpop.permute.xlu1 %2009  ;;  %v2106_v8 = vpop.permute.xlu0 %2105 }
 0xa36   :  { %2013 = vst.msk [vmem:[#allocation2] sm:$0xff] %vm2012_vm4, %v2010_v63 }
 0xa37   :  { %2109 = vst.msk [vmem:[#allocation2] sm:$0xff] %vm2108_vm5, %v2106_v8 }
 0xaa1   :  { %v3785_v9 = vpop.f32.mrb[84].mxu1  ;;  %v3807_v25 = vpop.f32.mrb[84].mxu0 }
 0xaa2   :  { %v3786_v26 = vpop.f32.mrb[85].mxu1  ;;  %v3808_v27 = vpop.f32.mrb[85].mxu0 }
 0xaa3   :  { %v3787_v28 = vadd.f32 %v3786_v26, %v3785_v9  ;;  %v3809_v29 = vadd.f32 %v3808_v27, %v3807_v25  ;;  %v3788_v32 = vpop.f32.mrb[86].mxu1  ;;  %v3810_v33 = vpop.f32.mrb[86].mxu0 }
 0xaa4   :  { %v3789_v34 = vpop.f32.mrb[87].mxu1  ;;  %v3811_v35 = vpop.f32.mrb[87].mxu0 }
 0xaa5   :  { %v2195_v36 = vadd.f32 %v4874_v14, %v3787_v28  ;;  %v2291_v37 = vadd.f32 %v4874_v14, %v3809_v29 }
 0xaa7   :  { %2201 = vrot.lane.b32.xlu1 %v2195_v36, %s4174_s18  ;;  %2297 = vrot.lane.b32.xlu0 %v2291_v37, %s4175_s19 }
 0xaa9   :  { %v2341_v38 = vpop.f32.mrb[88].mxu1  ;;  %v2437_v39 = vpop.f32.mrb[88].mxu0 }
 0xaaa   :  { %v2342_v40 = vadd.f32 %v2341_v38, %v4372_v30  ;;  %v2438_v41 = vadd.f32 %v2437_v39, %v4372_v30  ;;  %v2343_v52 = vpop.f32.mrb[89].mxu1  ;;  %v2439_v53 = vpop.f32.mrb[89].mxu0 }
 0xaab   :  { %v2344_v54 = vadd.f32 %v2343_v52, %v4374_v31  ;;  %v2440_v55 = vadd.f32 %v2439_v53, %v4374_v31  ;;  %v2345_v56 = vpop.f32.mrb[90].mxu1  ;;  %v2441_v57 = vpop.f32.mrb[90].mxu0 }
 0xaac   :  { %v2348_v59 = vmax.f32 %v2342_v40, 0.0  ;;  %v2444_v60 = vmax.f32 %v2438_v41, 0.0  ;;  %v2346_v61 = vpop.f32.mrb[91].mxu1  ;;  %v2442_v62 = vpop.f32.mrb[91].mxu0 }
 0xaad   :  { %v2349_v5 = vmax.f32 %v2344_v54, 0.0  ;;  %v2445_v6 = vmax.f32 %v2440_v55, 0.0 }
 0xaae   :  { %v2446_v42 = vpack.c.bf16 %v2444_v60, %v2444_v60  ;;  %v2350_v4 = vpack.c.bf16 %v2348_v59, %v2348_v59 }
 0xaaf   :  { %v2351_v43 = vpack.c.bf16 %v2349_v5, %v2349_v5  ;;  %v2447_v3 = vpack.c.bf16 %v2445_v6, %v2445_v6 }
 0xab1   :  { %2384 = vmatprep.mubr.bf16.mxu1 %v2351_v43  ;;  %2480 = vmatprep.mubr.bf16.mxu0 %v2447_v3  ;;  %v2686_v43 = vld [vmem:[%s5447_s0 + $0xd0] sm:$0xff]  ;;  %v2782_v3 = vld [vmem:[%s5447_s0 + $0xd8] sm:$0xff] }
 0xab2   :  { %2385 = vmatmul.mubr.bf16.vlgmr.msra.gmra.mrb[92].mxu1 %v2350_v4  ;;  %2481 = vmatmul.mubr.bf16.vlgmr.msra.gmra.mrb[92].mxu0 %v2446_v42  ;;  %v2687_v4 = vpack.c.bf16 %v2686_v43, %v2686_v43  ;;  %v2783_v7 = vpack.c.bf16 %v2782_v3, %v2782_v3 }
 0xab3   :  { %2500 = vmatpush1.bf16.msra.mxu1 %v5114_v1  ;;  %2596 = vmatpush1.bf16.msra.mxu0 %v5114_v1 }
 0xab4   :  { %2501 = vmatprep.subr.bf16.mxu1 %v5127_v11  ;;  %2597 = vmatprep.subr.bf16.mxu0 %v5127_v11 }
 0xab5   :  { %2531 = vmatprep.mubr.bf16.mxu1 %v4154_v2  ;;  %2627 = vmatprep.mubr.bf16.mxu0 %v4154_v2 }
 0xab7   :  { %2502 = vmatpush1.bf16.msra.mxu1 %v5136_v15  ;;  %2598 = vmatpush1.bf16.msra.mxu0 %v5136_v15 }
 0xab8   :  { %3857 = vmatprep.subr.bf16.mxu1 %v5143_v16  ;;  %3879 = vmatprep.subr.bf16.mxu0 %v5143_v16 }
 0xaba   :  { %3321 = vmatmul.mubr.msk.bf16.vlgmr.msra.gmra.mrb[96].mxu1 %vm93_vm0, %v2495_v12  ;;  %3322 = vmatmul.mubr.msk.bf16.vlgmr.msra.gmra.mrb[96].mxu0 %vm93_vm0, %v2591_v13 }
 0xabb   :  { %3858 = vmatpush3.bf16.msra.mxu1 %v5152_v17  ;;  %3880 = vmatpush3.bf16.msra.mxu0 %v5152_v17 }
 0xabc   :  { %3859 = vmatprep.subr.bf16.mxu1 %v5159_v18  ;;  %3881 = vmatprep.subr.bf16.mxu0 %v5159_v18 }
 0xabf   :  { %3860 = vmatpush3.bf16.msra.mxu1 %v5166_v19  ;;  %3882 = vmatpush3.bf16.msra.mxu0 %v5166_v19 }
 0xac0   :  { %3861 = vmatprep.subr.bf16.mxu1 %v5173_v20  ;;  %3883 = vmatprep.subr.bf16.mxu0 %v5173_v20 }
 0xac3   :  { %3862 = vmatpush3.bf16.msra.mxu1 %v5180_v21  ;;  %3884 = vmatpush3.bf16.msra.mxu0 %v5180_v21 }
 0xac4   :  { %3863 = vmatprep.subr.bf16.mxu1 %v5187_v22  ;;  %3885 = vmatprep.subr.bf16.mxu0 %v5187_v22 }
 0xac7   :  { %3864 = vmatpush3.bf16.msra.mxu1 %v5194_v23  ;;  %3886 = vmatpush3.bf16.msra.mxu0 %v5194_v23 }
 0xac8   :  { %3865 = vmatprep.subr.bf16.mxu1 %v5201_v24  ;;  %3887 = vmatprep.subr.bf16.mxu0 %v5201_v24 }
 0xacb   :  { %3866 = vmatpush3.bf16.msra.mxu1 %v5208_v44  ;;  %3888 = vmatpush3.bf16.msra.mxu0 %v5208_v44 }
 0xacc   :  { %3867 = vmatprep.subr.bf16.mxu1 %v5215_v45  ;;  %3889 = vmatprep.subr.bf16.mxu0 %v5215_v45 }
 0xacf   :  { %3868 = vmatpush3.bf16.msra.mxu1 %v5222_v46  ;;  %3890 = vmatpush3.bf16.msra.mxu0 %v5222_v46 }
 0xad0   :  { %3869 = vmatprep.subr.bf16.mxu1 %v5229_v47  ;;  %3891 = vmatprep.subr.bf16.mxu0 %v5229_v47 }
 0xad3   :  { %3870 = vmatpush3.bf16.msra.mxu1 %v5236_v48  ;;  %3892 = vmatpush3.bf16.msra.mxu0 %v5236_v48 }
 0xad4   :  { %3871 = vmatprep.subr.bf16.mxu1 %v5243_v58  ;;  %3893 = vmatprep.subr.bf16.mxu0 %v5243_v58 }
 0xad7   :  { %3872 = vmatpush3.bf16.msra.mxu1 %v5250_v49  ;;  %3894 = vmatpush3.bf16.msra.mxu0 %v5250_v49 }
 0xad8   :  { %2691 = vmatprep.subr.bf16.mxu1 %v5101_v0  ;;  %2787 = vmatprep.subr.bf16.mxu0 %v5101_v0 }
 0xb19   :  { %v2202_v50 = vpop.permute.xlu1 %2201  ;;  %v2298_v51 = vpop.permute.xlu0 %2297 }
 0xb1a   :  { %2205 = vst.msk [vmem:[#allocation2] sm:$0xff] %vm2204_vm6, %v2202_v50 }
 0xb1b   :  { %2301 = vst.msk [vmem:[#allocation2] sm:$0xff] %vm2300_vm7, %v2298_v51 }
 0xb85   :  { %v3829_v63 = vpop.f32.mrb[92].mxu1  ;;  %v3851_v8 = vpop.f32.mrb[92].mxu0 }
 0xb86   :  { %v3830_v9 = vpop.f32.mrb[93].mxu1  ;;  %v3852_v25 = vpop.f32.mrb[93].mxu0 }
 0xb87   :  { %v3831_v26 = vadd.f32 %v3830_v9, %v3829_v63  ;;  %v3853_v27 = vadd.f32 %v3852_v25, %v3851_v8  ;;  %v3832_v28 = vpop.f32.mrb[94].mxu1  ;;  %v3854_v29 = vpop.f32.mrb[94].mxu0 }
 0xb88   :  { %v3833_v32 = vpop.f32.mrb[95].mxu1  ;;  %v3855_v33 = vpop.f32.mrb[95].mxu0  ;;  %v5315_v29 = vld [vmem:[%s5451_s4] ss:$0 sm:$0xff] }
 0xb89   :  { %v2387_v34 = vadd.f32 %v4874_v14, %v3831_v26  ;;  %v2483_v35 = vadd.f32 %v4874_v14, %v3853_v27 }
 0xb8b   :  { %2393 = vrot.lane.b32.xlu1 %v2387_v34, %s4176_s3  ;;  %2489 = vrot.lane.b32.xlu0 %v2483_v35, %s4177_s9 }
 0xb8d   :  { %v2533_v36 = vpop.f32.mrb[96].mxu1  ;;  %v2629_v37 = vpop.f32.mrb[96].mxu0 }
 0xb8e   :  { %v2534_v38 = vadd.f32 %v2533_v36, %v4372_v30  ;;  %v2630_v39 = vadd.f32 %v2629_v37, %v4372_v30  ;;  %v2535_v40 = vpop.f32.mrb[97].mxu1  ;;  %v2631_v41 = vpop.f32.mrb[97].mxu0 }
 0xb8f   :  { %v2536_v52 = vadd.f32 %v2535_v40, %v4374_v31  ;;  %v2632_v53 = vadd.f32 %v2631_v41, %v4374_v31  ;;  %v2537_v54 = vpop.f32.mrb[98].mxu1  ;;  %v2633_v55 = vpop.f32.mrb[98].mxu0 }
 0xb90   :  { %v2540_v56 = vmax.f32 %v2534_v38, 0.0  ;;  %v2636_v14 = vmax.f32 %v2630_v39, 0.0  ;;  %v2538_v57 = vpop.f32.mrb[99].mxu1  ;;  %v2634_v59 = vpop.f32.mrb[99].mxu0 }
 0xb91   :  { %v2541_v60 = vmax.f32 %v2536_v52, 0.0  ;;  %v2637_v61 = vmax.f32 %v2632_v53, 0.0 }
 0xb92   :  { %v2638_v62 = vpack.c.bf16 %v2636_v14, %v2636_v14  ;;  %v2542_v42 = vpack.c.bf16 %v2540_v56, %v2540_v56 }
 0xb93   :  { %v2543_v5 = vpack.c.bf16 %v2541_v60, %v2541_v60  ;;  %v2639_v6 = vpack.c.bf16 %v2637_v61, %v2637_v61 }
 0xb95   :  { %2576 = vmatprep.mubr.bf16.mxu1 %v2543_v5  ;;  %2672 = vmatprep.mubr.bf16.mxu0 %v2639_v6  ;;  %v2878_v6 = vld [vmem:[%s5447_s0 + $0xe0] sm:$0xff] }
 0xb96   :  { %2577 = vmatmul.mubr.bf16.vlgmr.msra.gmra.mrb[100].mxu1 %v2542_v42  ;;  %2673 = vmatmul.mubr.bf16.vlgmr.msra.gmra.mrb[100].mxu0 %v2638_v62  ;;  %v2974_v42 = vld [vmem:[%s5447_s0 + $0xe8] sm:$0xff]  ;;  %v2879_v43 = vpack.c.bf16 %v2878_v6, %v2878_v6 }
 0xb97   :  { %2692 = vmatpush1.bf16.msra.mxu1 %v5114_v1  ;;  %2788 = vmatpush1.bf16.msra.mxu0 %v5114_v1  ;;  %v2975_v3 = vpack.c.bf16 %v2974_v42, %v2974_v42 }
 0xb98   :  { %2693 = vmatprep.subr.bf16.mxu1 %v5127_v11  ;;  %2789 = vmatprep.subr.bf16.mxu0 %v5127_v11 }
 0xb99   :  { %2723 = vmatprep.mubr.bf16.mxu1 %v4154_v2  ;;  %2819 = vmatprep.mubr.bf16.mxu0 %v4154_v2 }
 0xb9b   :  { %2694 = vmatpush1.bf16.msra.mxu1 %v5136_v15  ;;  %2790 = vmatpush1.bf16.msra.mxu0 %v5136_v15 }
 0xb9c   :  { %3901 = vmatprep.subr.bf16.mxu1 %v5143_v16  ;;  %3923 = vmatprep.subr.bf16.mxu0 %v5143_v16 }
 0xb9e   :  { %3323 = vmatmul.mubr.msk.bf16.vlgmr.msra.gmra.mrb[104].mxu1 %vm93_vm0, %v2687_v4  ;;  %3324 = vmatmul.mubr.msk.bf16.vlgmr.msra.gmra.mrb[104].mxu0 %vm93_vm0, %v2783_v7 }
 0xb9f   :  { %3902 = vmatpush3.bf16.msra.mxu1 %v5152_v17  ;;  %3924 = vmatpush3.bf16.msra.mxu0 %v5152_v17 }
 0xba0   :  { %3903 = vmatprep.subr.bf16.mxu1 %v5159_v18  ;;  %3925 = vmatprep.subr.bf16.mxu0 %v5159_v18 }
 0xba3   :  { %3904 = vmatpush3.bf16.msra.mxu1 %v5166_v19  ;;  %3926 = vmatpush3.bf16.msra.mxu0 %v5166_v19 }
 0xba4   :  { %3905 = vmatprep.subr.bf16.mxu1 %v5173_v20  ;;  %3927 = vmatprep.subr.bf16.mxu0 %v5173_v20 }
 0xba7   :  { %3906 = vmatpush3.bf16.msra.mxu1 %v5180_v21  ;;  %3928 = vmatpush3.bf16.msra.mxu0 %v5180_v21 }
 0xba8   :  { %3907 = vmatprep.subr.bf16.mxu1 %v5187_v22  ;;  %3929 = vmatprep.subr.bf16.mxu0 %v5187_v22 }
 0xbab   :  { %3908 = vmatpush3.bf16.msra.mxu1 %v5194_v23  ;;  %3930 = vmatpush3.bf16.msra.mxu0 %v5194_v23 }
 0xbac   :  { %3909 = vmatprep.subr.bf16.mxu1 %v5201_v24  ;;  %3931 = vmatprep.subr.bf16.mxu0 %v5201_v24 }
 0xbaf   :  { %3910 = vmatpush3.bf16.msra.mxu1 %v5208_v44  ;;  %3932 = vmatpush3.bf16.msra.mxu0 %v5208_v44 }
 0xbb0   :  { %3911 = vmatprep.subr.bf16.mxu1 %v5215_v45  ;;  %3933 = vmatprep.subr.bf16.mxu0 %v5215_v45 }
 0xbb3   :  { %3912 = vmatpush3.bf16.msra.mxu1 %v5222_v46  ;;  %3934 = vmatpush3.bf16.msra.mxu0 %v5222_v46 }
 0xbb4   :  { %3913 = vmatprep.subr.bf16.mxu1 %v5229_v47  ;;  %3935 = vmatprep.subr.bf16.mxu0 %v5229_v47 }
 0xbb7   :  { %3914 = vmatpush3.bf16.msra.mxu1 %v5236_v48  ;;  %3936 = vmatpush3.bf16.msra.mxu0 %v5236_v48 }
 0xbb8   :  { %3915 = vmatprep.subr.bf16.mxu1 %v5243_v58  ;;  %3937 = vmatprep.subr.bf16.mxu0 %v5243_v58 }
 0xbbb   :  { %3916 = vmatpush3.bf16.msra.mxu1 %v5250_v49  ;;  %3938 = vmatpush3.bf16.msra.mxu0 %v5250_v49 }
 0xbbc   :  { %2883 = vmatprep.subr.bf16.mxu1 %v5101_v0  ;;  %2979 = vmatprep.subr.bf16.mxu0 %v5101_v0 }
 0xbfd   :  { %v2394_v10 = vpop.permute.xlu1 %2393  ;;  %v2490_v12 = vpop.permute.xlu0 %2489 }
 0xbfe   :  { %2397 = vst.msk [vmem:[#allocation2] sm:$0xff] %vm2396_vm8, %v2394_v10 }
 0xbff   :  { %2493 = vst.msk [vmem:[#allocation2] sm:$0xff] %vm2492_vm9, %v2490_v12 }
 0xc69   :  { %v3873_v13 = vpop.f32.mrb[100].mxu1  ;;  %v3895_v50 = vpop.f32.mrb[100].mxu0 }
 0xc6a   :  { %v3874_v51 = vpop.f32.mrb[101].mxu1  ;;  %v3896_v63 = vpop.f32.mrb[101].mxu0 }
 0xc6b   :  { %v3875_v8 = vadd.f32 %v3874_v51, %v3873_v13  ;;  %v3897_v9 = vadd.f32 %v3896_v63, %v3895_v50  ;;  %v3876_v25 = vpop.f32.mrb[102].mxu1  ;;  %v3898_v26 = vpop.f32.mrb[102].mxu0 }
 0xc6c   :  { %v3877_v27 = vpop.f32.mrb[103].mxu1  ;;  %v3899_v28 = vpop.f32.mrb[103].mxu0 }
 0xc6d   :  { %v2579_v32 = vadd.f32 %v5315_v29, %v3875_v8  ;;  %v2675_v33 = vadd.f32 %v5315_v29, %v3897_v9 }
 0xc6f   :  { %2585 = vrot.lane.b32.xlu1 %v2579_v32, %s4178_s15  ;;  %2681 = vrot.lane.b32.xlu0 %v2675_v33, %s4179_s16 }
 0xc71   :  { %v2725_v34 = vpop.f32.mrb[104].mxu1  ;;  %v2821_v35 = vpop.f32.mrb[104].mxu0 }
 0xc72   :  { %v2726_v36 = vadd.f32 %v2725_v34, %v4372_v30  ;;  %v2822_v37 = vadd.f32 %v2821_v35, %v4372_v30  ;;  %v2727_v38 = vpop.f32.mrb[105].mxu1  ;;  %v2823_v39 = vpop.f32.mrb[105].mxu0 }
 0xc73   :  { %v2728_v40 = vadd.f32 %v2727_v38, %v4374_v31  ;;  %v2824_v41 = vadd.f32 %v2823_v39, %v4374_v31  ;;  %v2729_v52 = vpop.f32.mrb[106].mxu1  ;;  %v2825_v53 = vpop.f32.mrb[106].mxu0 }
 0xc74   :  { %v2732_v54 = vmax.f32 %v2726_v36, 0.0  ;;  %v2828_v55 = vmax.f32 %v2822_v37, 0.0  ;;  %v2730_v56 = vpop.f32.mrb[107].mxu1  ;;  %v2826_v14 = vpop.f32.mrb[107].mxu0 }
 0xc75   :  { %v2733_v57 = vmax.f32 %v2728_v40, 0.0  ;;  %v2829_v59 = vmax.f32 %v2824_v41, 0.0 }
 0xc76   :  { %v2830_v60 = vpack.c.bf16 %v2828_v55, %v2828_v55  ;;  %v2734_v5 = vpack.c.bf16 %v2732_v54, %v2732_v54 }
 0xc77   :  { %v2735_v61 = vpack.c.bf16 %v2733_v57, %v2733_v57  ;;  %v2831_v62 = vpack.c.bf16 %v2829_v59, %v2829_v59 }
 0xc79   :  { %2768 = vmatprep.mubr.bf16.mxu1 %v2735_v61  ;;  %2864 = vmatprep.mubr.bf16.mxu0 %v2831_v62  ;;  %v3070_v61 = vld [vmem:[%s5447_s0 + $0xf0] sm:$0xff]  ;;  %v3166_v62 = vld [vmem:[%s5447_s0 + $0xf8] sm:$0xff]  ;;  %s4182_s0 = smov 112  }
 0xc7a   :  { %2769 = vmatmul.mubr.bf16.vlgmr.msra.gmra.mrb[108].mxu1 %v2734_v5  ;;  %2865 = vmatmul.mubr.bf16.vlgmr.msra.gmra.mrb[108].mxu0 %v2830_v60  ;;  %v3071_v5 = vpack.c.bf16 %v3070_v61, %v3070_v61  ;;  %v3167_v6 = vpack.c.bf16 %v3166_v62, %v3166_v62 }
 0xc7b   :  { %2884 = vmatpush1.bf16.msra.mxu1 %v5114_v1  ;;  %2980 = vmatpush1.bf16.msra.mxu0 %v5114_v1 }
 0xc7c   :  { %2885 = vmatprep.subr.bf16.mxu1 %v5127_v11  ;;  %2981 = vmatprep.subr.bf16.mxu0 %v5127_v11 }
 0xc7d   :  { %2915 = vmatprep.mubr.bf16.mxu1 %v4154_v2  ;;  %3011 = vmatprep.mubr.bf16.mxu0 %v4154_v2 }
 0xc7f   :  { %2886 = vmatpush1.bf16.msra.mxu1 %v5136_v15  ;;  %2982 = vmatpush1.bf16.msra.mxu0 %v5136_v15 }
 0xc80   :  { %3945 = vmatprep.subr.bf16.mxu1 %v5143_v16  ;;  %3967 = vmatprep.subr.bf16.mxu0 %v5143_v16 }
 0xc82   :  { %3325 = vmatmul.mubr.msk.bf16.vlgmr.msra.gmra.mrb[112].mxu1 %vm93_vm0, %v2879_v43  ;;  %3326 = vmatmul.mubr.msk.bf16.vlgmr.msra.gmra.mrb[112].mxu0 %vm93_vm0, %v2975_v3 }
 0xc83   :  { %3946 = vmatpush3.bf16.msra.mxu1 %v5152_v17  ;;  %3968 = vmatpush3.bf16.msra.mxu0 %v5152_v17 }
 0xc84   :  { %3947 = vmatprep.subr.bf16.mxu1 %v5159_v18  ;;  %3969 = vmatprep.subr.bf16.mxu0 %v5159_v18 }
 0xc87   :  { %3948 = vmatpush3.bf16.msra.mxu1 %v5166_v19  ;;  %3970 = vmatpush3.bf16.msra.mxu0 %v5166_v19 }
 0xc88   :  { %3949 = vmatprep.subr.bf16.mxu1 %v5173_v20  ;;  %3971 = vmatprep.subr.bf16.mxu0 %v5173_v20 }
 0xc8b   :  { %3950 = vmatpush3.bf16.msra.mxu1 %v5180_v21  ;;  %3972 = vmatpush3.bf16.msra.mxu0 %v5180_v21 }
 0xc8c   :  { %3951 = vmatprep.subr.bf16.mxu1 %v5187_v22  ;;  %3973 = vmatprep.subr.bf16.mxu0 %v5187_v22 }
 0xc8f   :  { %3952 = vmatpush3.bf16.msra.mxu1 %v5194_v23  ;;  %3974 = vmatpush3.bf16.msra.mxu0 %v5194_v23 }
 0xc90   :  { %3953 = vmatprep.subr.bf16.mxu1 %v5201_v24  ;;  %3975 = vmatprep.subr.bf16.mxu0 %v5201_v24 }
 0xc93   :  { %3954 = vmatpush3.bf16.msra.mxu1 %v5208_v44  ;;  %3976 = vmatpush3.bf16.msra.mxu0 %v5208_v44 }
 0xc94   :  { %3955 = vmatprep.subr.bf16.mxu1 %v5215_v45  ;;  %3977 = vmatprep.subr.bf16.mxu0 %v5215_v45 }
 0xc97   :  { %3956 = vmatpush3.bf16.msra.mxu1 %v5222_v46  ;;  %3978 = vmatpush3.bf16.msra.mxu0 %v5222_v46 }
 0xc98   :  { %3957 = vmatprep.subr.bf16.mxu1 %v5229_v47  ;;  %3979 = vmatprep.subr.bf16.mxu0 %v5229_v47 }
 0xc9b   :  { %3958 = vmatpush3.bf16.msra.mxu1 %v5236_v48  ;;  %3980 = vmatpush3.bf16.msra.mxu0 %v5236_v48 }
 0xc9c   :  { %3959 = vmatprep.subr.bf16.mxu1 %v5243_v58  ;;  %3981 = vmatprep.subr.bf16.mxu0 %v5243_v58 }
 0xc9f   :  { %3960 = vmatpush3.bf16.msra.mxu1 %v5250_v49  ;;  %3982 = vmatpush3.bf16.msra.mxu0 %v5250_v49 }
 0xca0   :  { %3075 = vmatprep.subr.bf16.mxu1 %v5101_v0  ;;  %3171 = vmatprep.subr.bf16.mxu0 %v5101_v0 }
 0xce1   :  { %v2586_v4 = vpop.permute.xlu1 %2585  ;;  %v2682_v7 = vpop.permute.xlu0 %2681 }
 0xce2   :  { %2589 = vst.msk [vmem:[#allocation2] sm:$0xff] %vm2588_vm10, %v2586_v4 }
 0xce3   :  { %2685 = vst.msk [vmem:[#allocation2] sm:$0xff] %vm2684_vm11, %v2682_v7 }
 0xd4d   :  { %v3917_v10 = vpop.f32.mrb[108].mxu1  ;;  %v3939_v12 = vpop.f32.mrb[108].mxu0 }
 0xd4e   :  { %v3918_v13 = vpop.f32.mrb[109].mxu1  ;;  %v3940_v50 = vpop.f32.mrb[109].mxu0 }
 0xd4f   :  { %v3919_v51 = vadd.f32 %v3918_v13, %v3917_v10  ;;  %v3941_v63 = vadd.f32 %v3940_v50, %v3939_v12  ;;  %v3920_v8 = vpop.f32.mrb[110].mxu1  ;;  %v3942_v9 = vpop.f32.mrb[110].mxu0 }
 0xd50   :  { %v3921_v25 = vpop.f32.mrb[111].mxu1  ;;  %v3943_v26 = vpop.f32.mrb[111].mxu0 }
 0xd51   :  { %v2771_v27 = vadd.f32 %v5315_v29, %v3919_v51  ;;  %v2867_v0 = vadd.f32 %v5315_v29, %v3941_v63 }
 0xd53   :  { %2777 = vrot.lane.b32.xlu1 %v2771_v27, %s4180_s20  ;;  %2873 = vrot.lane.b32.xlu0 %v2867_v0, %s4181_s21 }
 0xd55   :  { %v2917_v28 = vpop.f32.mrb[112].mxu1  ;;  %v3013_v32 = vpop.f32.mrb[112].mxu0 }
 0xd56   :  { %v2918_v33 = vadd.f32 %v2917_v28, %v4372_v30  ;;  %v3014_v34 = vadd.f32 %v3013_v32, %v4372_v30  ;;  %v2919_v35 = vpop.f32.mrb[113].mxu1  ;;  %v3015_v36 = vpop.f32.mrb[113].mxu0 }
 0xd57   :  { %v2920_v37 = vadd.f32 %v2919_v35, %v4374_v31  ;;  %v3016_v38 = vadd.f32 %v3015_v36, %v4374_v31  ;;  %v2921_v39 = vpop.f32.mrb[114].mxu1  ;;  %v3017_v40 = vpop.f32.mrb[114].mxu0 }
 0xd58   :  { %v2924_v41 = vmax.f32 %v2918_v33, 0.0  ;;  %v3020_v52 = vmax.f32 %v3014_v34, 0.0  ;;  %v2922_v53 = vpop.f32.mrb[115].mxu1  ;;  %v3018_v54 = vpop.f32.mrb[115].mxu0 }
 0xd59   :  { %v2925_v55 = vmax.f32 %v2920_v37, 0.0  ;;  %v3021_v56 = vmax.f32 %v3016_v38, 0.0 }
 0xd5a   :  { %v3022_v14 = vpack.c.bf16 %v3020_v52, %v3020_v52  ;;  %v2926_v60 = vpack.c.bf16 %v2924_v41, %v2924_v41 }
 0xd5b   :  { %v2927_v57 = vpack.c.bf16 %v2925_v55, %v2925_v55  ;;  %v3023_v59 = vpack.c.bf16 %v3021_v56, %v3021_v56 }
 0xd5d   :  { %2960 = vmatprep.mubr.bf16.mxu1 %v2927_v57  ;;  %3056 = vmatprep.mubr.bf16.mxu0 %v3023_v59 }
 0xd5e   :  { %2961 = vmatmul.mubr.bf16.vlgmr.msra.gmra.mrb[116].mxu1 %v2926_v60  ;;  %3057 = vmatmul.mubr.bf16.vlgmr.msra.gmra.mrb[116].mxu0 %v3022_v14 }
 0xd5f   :  { %3076 = vmatpush1.bf16.msra.mxu1 %v5114_v1  ;;  %3172 = vmatpush1.bf16.msra.mxu0 %v5114_v1 }
 0xd60   :  { %3077 = vmatprep.subr.bf16.mxu1 %v5127_v11  ;;  %3173 = vmatprep.subr.bf16.mxu0 %v5127_v11 }
 0xd61   :  { %3107 = vmatprep.mubr.bf16.mxu1 %v4154_v2  ;;  %3203 = vmatprep.mubr.bf16.mxu0 %v4154_v2 }
 0xd63   :  { %3078 = vmatpush1.bf16.msra.mxu1 %v5136_v15  ;;  %3174 = vmatpush1.bf16.msra.mxu0 %v5136_v15 }
 0xd64   :  { %3989 = vmatprep.subr.bf16.mxu1 %v5143_v16  ;;  %4011 = vmatprep.subr.bf16.mxu0 %v5143_v16 }
 0xd66   :  { %3327 = vmatmul.mubr.msk.bf16.vlgmr.msra.gmra.mrb[120].mxu1 %vm93_vm0, %v3071_v5  ;;  %3328 = vmatmul.mubr.msk.bf16.vlgmr.msra.gmra.mrb[120].mxu0 %vm93_vm0, %v3167_v6  ;;  %vm2780_vm0 = vcmask 884544  }
 0xd67   :  { %3990 = vmatpush3.bf16.msra.mxu1 %v5152_v17  ;;  %4012 = vmatpush3.bf16.msra.mxu0 %v5152_v17 }
 0xd68   :  { %3991 = vmatprep.subr.bf16.mxu1 %v5159_v18  ;;  %4013 = vmatprep.subr.bf16.mxu0 %v5159_v18 }
 0xd6b   :  { %3992 = vmatpush3.bf16.msra.mxu1 %v5166_v19  ;;  %4014 = vmatpush3.bf16.msra.mxu0 %v5166_v19 }
 0xd6c   :  { %3993 = vmatprep.subr.bf16.mxu1 %v5173_v20  ;;  %4015 = vmatprep.subr.bf16.mxu0 %v5173_v20 }
 0xd6f   :  { %3994 = vmatpush3.bf16.msra.mxu1 %v5180_v21  ;;  %4016 = vmatpush3.bf16.msra.mxu0 %v5180_v21 }
 0xd70   :  { %3995 = vmatprep.subr.bf16.mxu1 %v5187_v22  ;;  %4017 = vmatprep.subr.bf16.mxu0 %v5187_v22 }
 0xd73   :  { %3996 = vmatpush3.bf16.msra.mxu1 %v5194_v23  ;;  %4018 = vmatpush3.bf16.msra.mxu0 %v5194_v23 }
 0xd74   :  { %3997 = vmatprep.subr.bf16.mxu1 %v5201_v24  ;;  %4019 = vmatprep.subr.bf16.mxu0 %v5201_v24 }
 0xd77   :  { %3998 = vmatpush3.bf16.msra.mxu1 %v5208_v44  ;;  %4020 = vmatpush3.bf16.msra.mxu0 %v5208_v44 }
 0xd78   :  { %3999 = vmatprep.subr.bf16.mxu1 %v5215_v45  ;;  %4021 = vmatprep.subr.bf16.mxu0 %v5215_v45 }
 0xd7b   :  { %4000 = vmatpush3.bf16.msra.mxu1 %v5222_v46  ;;  %4022 = vmatpush3.bf16.msra.mxu0 %v5222_v46 }
 0xd7c   :  { %4001 = vmatprep.subr.bf16.mxu1 %v5229_v47  ;;  %4023 = vmatprep.subr.bf16.mxu0 %v5229_v47 }
 0xd7f   :  { %4002 = vmatpush3.bf16.msra.mxu1 %v5236_v48  ;;  %4024 = vmatpush3.bf16.msra.mxu0 %v5236_v48 }
 0xd80   :  { %4003 = vmatprep.subr.bf16.mxu1 %v5243_v58  ;;  %4025 = vmatprep.subr.bf16.mxu0 %v5243_v58 }
 0xd83   :  { %4004 = vmatpush3.bf16.msra.mxu1 %v5250_v49  ;;  %4026 = vmatpush3.bf16.msra.mxu0 %v5250_v49 }
 0xdc5   :  { %v2778_v2 = vpop.permute.xlu1 %2777  ;;  %v2874_v1 = vpop.permute.xlu0 %2873 }
 0xdc6   :  { %2781 = vst.msk [vmem:[#allocation2] sm:$0xff] %vm2780_vm0, %v2778_v2 }
 0xdc7   :  { %2877 = vst.msk [vmem:[#allocation2] sm:$0xff] %vm2876_vm12, %v2874_v1 }
 0xe31   :  { %v3961_v11 = vpop.f32.mrb[116].mxu1  ;;  %v3983_v15 = vpop.f32.mrb[116].mxu0 }
 0xe32   :  { %v3962_v16 = vpop.f32.mrb[117].mxu1  ;;  %v3984_v17 = vpop.f32.mrb[117].mxu0 }
 0xe33   :  { %v3963_v18 = vadd.f32 %v3962_v16, %v3961_v11  ;;  %v3985_v19 = vadd.f32 %v3984_v17, %v3983_v15  ;;  %v3964_v20 = vpop.f32.mrb[118].mxu1  ;;  %v3986_v21 = vpop.f32.mrb[118].mxu0 }
 0xe34   :  { %v3965_v22 = vpop.f32.mrb[119].mxu1  ;;  %v3987_v23 = vpop.f32.mrb[119].mxu0 }
 0xe35   :  { %v2963_v24 = vadd.f32 %v5315_v29, %v3963_v18  ;;  %v3059_v44 = vadd.f32 %v5315_v29, %v3985_v19 }
 0xe37   :  { %2969 = vrot.lane.b32.xlu1 %v2963_v24, %s4182_s0  ;;  %3065 = vrot.lane.b32.xlu0 %v3059_v44, %s4183_s26 }
 0xe39   :  { %v3109_v45 = vpop.f32.mrb[120].mxu1  ;;  %v3205_v46 = vpop.f32.mrb[120].mxu0 }
 0xe3a   :  { %v3110_v47 = vadd.f32 %v3109_v45, %v4372_v30  ;;  %v3206_v48 = vadd.f32 %v3205_v46, %v4372_v30  ;;  %v3111_v58 = vpop.f32.mrb[121].mxu1  ;;  %v3207_v49 = vpop.f32.mrb[121].mxu0 }
 0xe3b   :  { %v3112_v42 = vadd.f32 %v3111_v58, %v4374_v31  ;;  %v3208_v43 = vadd.f32 %v3207_v49, %v4374_v31  ;;  %v3113_v3 = vpop.f32.mrb[122].mxu1  ;;  %v3209_v4 = vpop.f32.mrb[122].mxu0 }
 0xe3c   :  { %v3116_v7 = vmax.f32 %v3110_v47, 0.0  ;;  %v3212_v10 = vmax.f32 %v3206_v48, 0.0  ;;  %v3114_v12 = vpop.f32.mrb[123].mxu1  ;;  %v3210_v13 = vpop.f32.mrb[123].mxu0 }
 0xe3d   :  { %v3117_v50 = vmax.f32 %v3112_v42, 0.0  ;;  %v3213_v51 = vmax.f32 %v3208_v43, 0.0 }
 0xe3e   :  { %v3214_v63 = vpack.c.bf16 %v3212_v10, %v3212_v10  ;;  %v3118_v25 = vpack.c.bf16 %v3116_v7, %v3116_v7 }
 0xe3f   :  { %v3119_v8 = vpack.c.bf16 %v3117_v50, %v3117_v50  ;;  %v3215_v9 = vpack.c.bf16 %v3213_v51, %v3213_v51 }
 0xe41   :  { %3152 = vmatprep.mubr.bf16.mxu1 %v3119_v8  ;;  %3248 = vmatprep.mubr.bf16.mxu0 %v3215_v9 }
 0xe42   :  { %3153 = vmatmul.mubr.bf16.vlgmr.msra.gmra.mrb[124].mxu1 %v3118_v25  ;;  %3249 = vmatmul.mubr.bf16.vlgmr.msra.gmra.mrb[124].mxu0 %v3214_v63 }
 0xea9   :  { %v2970_v30 = vpop.permute.xlu1 %2969  ;;  %v3066_v31 = vpop.permute.xlu0 %3065 }
 0xeaa   :  { %2973 = vst.msk [vmem:[#allocation2] sm:$0xff] %vm2972_vm13, %v2970_v30 }
 0xeab   :  { %3069 = vst.msk [vmem:[#allocation2] sm:$0xff] %vm3068_vm14, %v3066_v31 }
 0xf15   :  { %v4005_v26 = vpop.f32.mrb[124].mxu1  ;;  %v4027_v27 = vpop.f32.mrb[124].mxu0 }
 0xf16   :  { %v4006_v0 = vpop.f32.mrb[125].mxu1  ;;  %v4028_v28 = vpop.f32.mrb[125].mxu0 }
 0xf17   :  { %v4007_v32 = vadd.f32 %v4006_v0, %v4005_v26  ;;  %v4029_v33 = vadd.f32 %v4028_v28, %v4027_v27  ;;  %v4008_v34 = vpop.f32.mrb[126].mxu1  ;;  %v4030_v35 = vpop.f32.mrb[126].mxu0 }
 0xf18   :  { %v4009_v36 = vpop.f32.mrb[127].mxu1  ;;  %v4031_v37 = vpop.f32.mrb[127].mxu0 }
 0xf19   :  { %v3155_v38 = vadd.f32 %v5315_v29, %v4007_v32  ;;  %v3251_v39 = vadd.f32 %v5315_v29, %v4029_v33 }
 0xf1b   :  { %3161 = vrot.lane.b32.xlu1 %v3155_v38, %s4184_s27  ;;  %3257 = vrot.lane.b32.xlu0 %v3251_v39, %s4185_s28 }
 0xf8d   :  { %v3162_v40 = vpop.permute.xlu1 %3161  ;;  %v3258_v41 = vpop.permute.xlu0 %3257 }
 0xf8e   :  { %3165 = vst.msk [vmem:[#allocation2] sm:$0xff] %vm3164_vm15, %v3162_v40 }
 0xf8f   :  { %3261 = vst.msk [vmem:[#allocation2] sm:$0xff] %vm3260_vm1, %v3258_v41 }
 0xf90   :  { %4141 = shalt.err (!%p4138_p4)
}
 0xf91   :  { %s4142_s8 = scalar_lea.hbm %s5452_s5, 128 }
 0xf92   :  { %p4143_p5 = scmp.ne.s32.totalorder %s5452_s5, %s4142_s8  ;;  %p4146_p6 = scmp.lt.u32.totalorder %s4142_s8, %s5452_s5 }
 0xf94   :  { %p4148_p7 = pnand %p4146_p6, %p4143_p5 }
 0xf96   :  { %4151 = shalt.err (!%p4148_p7)
}
 0xf97   :  { %3271 = dma.vmem_to_hbm [thread:$0]  %s3269_s30, 128, %s5452_s5, [#allocation3]  }
 0xf98   :  { %4152 = dma.done.wait [#allocation3], 128  }
 0xf99   :  { %4153 = vsyncadd [#allocation3], 4294967168 }
 0xf9a   :  { %3275 = vsyncpa [#allocation3], 1 }

</bundles_post_ra>
